<compile_context>
chip_gen: v7x
topology: tpu7x:2x2x1
jax: 0.10.0
libtpu: 0.0.40
codegen_flags: <defaults>
</compile_context>

<pallas_src>
import functools

import numpy as np

import jax
import jax.numpy as jnp
from jax.experimental import pallas as pl
from jax.experimental.pallas import tpu as pltpu

_EPS = 1e-5  # nn.InstanceNorm2d default eps


# ---------------------------------------------------------------------------
# Fused decoder kernel (one grid step == one batch sample)
# ---------------------------------------------------------------------------
def _decoder_kernel(*refs, n_res, ups, activ, h0, w0):
    """refs layout:
      inputs : x            (1, dim, H*W)                 lane-dense
               [w1, w2] * n_res                           each (C, 9*C)
               [U, w_up] * ups                            (P, 4P), (C//2, 25*C)
               w_final      (out_dim, 49*C_last)
               b_final      (out_dim, 1)
               colidx_l     (1, P_l) for l = 0..ups       flat column-index vecs
      output : o            (1, out_dim, H_out*W_out)     lane-dense
      scratch: line_ref     (max_cin, max(P + 2*M))       shared 1-D line buffer
               col_ref      (max_K,  max_P)               shared im2col buffer
    """
    n_main = 1 + 2 * n_res + 2 * ups + 2
    n_in = n_main + ups + 1
    in_refs = refs[:n_in]
    o_ref = refs[n_in]
    line_ref, col_ref = refs[n_in + 1:]
    colidx_refs = in_refs[n_main:n_in]

    if activ == "relu":
        act = lambda v: jnp.maximum(v, 0.0)
    elif activ == "lrelu":
        act = lambda v: jnp.where(v > 0, v, 0.2 * v)
    elif activ == "tanh":
        act = jnp.tanh
    else:  # 'none'  (prelu/selu not needed for this config)
        act = lambda v: v

    def instance_norm(y):  # (C, P): per-channel stats over the lane (pixel) axis
        mean = jnp.mean(y, axis=1, keepdims=True)
        var = jnp.mean(jnp.square(y - mean), axis=1, keepdims=True)
        return (y - mean) * jax.lax.rsqrt(var + _EPS)

    def conv(cur, w_ref, colidx_ref, ksz, pad, hh, ww):
        """Zero-padded 'same' conv: (Cin, P) -> (Cout, P), with P = hh*ww.

        The flat activation is written into a line buffer with an
        M = pad*ww + pad zero halo on each side; each of the ksz^2 taps is a
        static lane-shifted window of that buffer.  Vertical out-of-bounds
        rows land in the zero halo; horizontal row-wrap pixels are zeroed by
        a static per-dj column mask.  All windows are packed into one im2col
        buffer and contracted with the weights in a single MXU matmul.
        """
        cin, pp = cur.shape
        kk = ksz * ksz * cin
        m = pad * ww + pad
        zero_halo = jnp.zeros((cin, m), jnp.float32)
        line_ref[pl.ds(0, cin), pl.ds(0, m)] = zero_halo          # halo only
        line_ref[pl.ds(0, cin), pl.ds(m, pp)] = cur               # interior
        line_ref[pl.ds(0, cin), pl.ds(m + pp, m)] = zero_halo     # halo only

        colidx = colidx_ref[...]                                  # (1, pp) f32
        col_masks = []
        for dj in range(ksz):
            if dj == pad:
                col_masks.append(None)                            # all columns valid
            else:
                lo, hi = float(pad - dj), float(ww + pad - dj)
                col_masks.append(
                    ((colidx >= lo) & (colidx < hi)).astype(jnp.float32))

        for di in range(ksz):
            for dj in range(ksz):
                t = di * ksz + dj
                off = (di - pad) * ww + (dj - pad)                # static offset
                win = line_ref[pl.ds(0, cin), pl.ds(m + off, pp)]
                if col_masks[dj] is not None:
                    win = win * col_masks[dj]
                col_ref[pl.ds(t * cin, cin), pl.ds(0, pp)] = win

        colv = col_ref[pl.ds(0, kk), pl.ds(0, pp)]                # (K, P)
        return jax.lax.dot_general(                               # (Cout, P)
            w_ref[...], colv, (((1,), (0,)), ((), ())),
            preferred_element_type=jnp.float32)

    idx = 1
    hh, ww = h0, w0
    cur = in_refs[0][0].astype(jnp.float32)                       # (dim, P)

    # ---- ResBlocks: x + [Conv3x3 -> IN -> act -> Conv3x3 -> IN](x) ---------
    # (conv biases before affine-free InstanceNorm cancel exactly -> skipped)
    for _ in range(n_res):
        w1_ref, w2_ref = in_refs[idx], in_refs[idx + 1]
        idx += 2
        y = conv(cur, w1_ref, colidx_refs[0], 3, 1, hh, ww)
        y = act(instance_norm(y))
        y = conv(y, w2_ref, colidx_refs[0], 3, 1, hh, ww)
        cur = cur + instance_norm(y)                              # residual add

    # ---- [Upsample(x2 nearest) -> Conv5x5 -> IN -> act] * ups --------------
    for u in range(ups):
        u_ref, wu_ref = in_refs[idx], in_refs[idx + 1]
        idx += 2
        # Exact nearest x2 upsample as (C, P) @ (P, 4P) 0/1 matmul (lane-dense,
        # well-shaped on the MXU at these sizes).
        # TODO(synk): at realistic resolutions replace this O(P^2) one-hot
        # matmul with in-kernel nearest replication / a row-band pipelined
        # variant (also required to fit v7x's 64 MiB VMEM at MUNIT scale).
        cur = jax.lax.dot_general(cur, u_ref[...], (((1,), (0,)), ((), ())),
                                  preferred_element_type=jnp.float32)
        hh, ww = 2 * hh, 2 * ww
        y = conv(cur, wu_ref, colidx_refs[u + 1], 5, 2, hh, ww)
        cur = act(instance_norm(y))

    # ---- Final Conv7x7 -> bias -> tanh, lane-dense (out_dim, P_out) --------
    wf_ref, bf_ref = in_refs[idx], in_refs[idx + 1]
    y = conv(cur, wf_ref, colidx_refs[ups], 7, 3, hh, ww)
    o_ref[0] = jnp.tanh(y + bf_ref[...]).astype(o_ref.dtype)


# ---------------------------------------------------------------------------
# Wrapper-side (pure layout) helpers
# ---------------------------------------------------------------------------
def _conv_weight(w):
    """HWIO (KH, KW, Cin, Cout) -> (Cout, KH*KW*Cin) f32 (tap-major, then Cin),
    matching the im2col row order built inside the kernel."""
    kh, kw, cin, cout = w.shape
    return jnp.transpose(w, (3, 0, 1, 2)).reshape(cout, kh * kw * cin).astype(jnp.float32)


def _nearest_up2_matrix(h, w):
    """0/1 matrix U (hw, 4hw) with (x_flat @ U) == nearest-neighbour x2 upsample."""
    p_out = np.arange(4 * h * w)
    i_o, j_o = p_out // (2 * w), p_out % (2 * w)
    src = (i_o // 2) * w + (j_o // 2)
    u = (np.arange(h * w)[:, None] == src[None, :]).astype(np.float32)
    return jnp.asarray(u)


def _colidx(h, w):
    """Flat per-pixel column index (1, h*w) f32, used for conv edge masks."""
    return jnp.asarray(np.tile(np.arange(w, dtype=np.float32), h)[None, :])


# ---------------------------------------------------------------------------
# Decoder forward (NCHW in / NCHW out, like the PyTorch module)
# ---------------------------------------------------------------------------
def decoder_forward(x, params, *, activ="relu"):
    """x: (N, dim, H, W).  Implements res_norm='in', pad_type='zero'."""
    n, dim, h, w = x.shape
    n_res = len(params["res"])
    ups = len(params["ups"])

    p0 = h * w
    x_flat = x.reshape(n, dim, p0).astype(jnp.float32)   # free reshape, lane-dense

    inputs = [x_flat]
    in_specs = [pl.BlockSpec((1, dim, p0), lambda i: (i, 0, 0))]

    def add_full(arr):
        inputs.append(arr)
        nd = arr.ndim
        in_specs.append(pl.BlockSpec(arr.shape, lambda i, _nd=nd: (0,) * _nd))

    # shared-scratch sizing (one line buffer + one im2col buffer for ALL convs)
    max_line, max_k, max_p, max_cin = 1, 1, 1, 1

    def track(cin, ksz, pad, hh, ww):
        nonlocal max_line, max_k, max_p, max_cin
        pp = hh * ww
        m = pad * ww + pad
        max_line = max(max_line, pp + 2 * m)
        max_k = max(max_k, ksz * ksz * cin)
        max_p = max(max_p, pp)
        max_cin = max(max_cin, cin)

    ch, cw, cdim = h, w, dim
    for (w1, _b1, w2, _b2) in params["res"]:
        # biases before affine-free InstanceNorm are exact no-ops -> skipped
        add_full(_conv_weight(w1))
        add_full(_conv_weight(w2))
        track(cdim, 3, 1, ch, cw)
    for (wu, _bu) in params["ups"]:
        add_full(_nearest_up2_matrix(ch, cw))
        add_full(_conv_weight(wu))
        ch, cw = 2 * ch, 2 * cw
        track(cdim, 5, 2, ch, cw)
        cdim //= 2
    wf, bf = params["final"]
    out_dim = wf.shape[-1]
    add_full(_conv_weight(wf))
    add_full(bf.reshape(out_dim, 1).astype(jnp.float32))
    track(cdim, 7, 3, ch, cw)

    # one flat column-index vector per resolution level (for conv edge masks)
    chh, cww = h, w
    for _ in range(ups + 1):
        add_full(_colidx(chh, cww))
        chh, cww = 2 * chh, 2 * cww

    p_out = ch * cw
    kernel = functools.partial(_decoder_kernel, n_res=n_res, ups=ups,
                               activ=activ, h0=h, w0=w)
    # NOTE(v7x): for n == 1 add a second "parallel" axis (e.g. split output
    # rows) so the second TensorCore is not idle; n == 2 here maps one sample
    # per core already.
    out = pl.pallas_call(
        kernel,
        out_shape=jax.ShapeDtypeStruct((n, out_dim, p_out), jnp.float32),
        grid=(n,),
        in_specs=in_specs,
        out_specs=pl.BlockSpec((1, out_dim, p_out), lambda i: (i, 0, 0)),
        scratch_shapes=[
            pltpu.VMEM((max_cin, max_line), jnp.float32),   # shared line buffer
            pltpu.VMEM((max_k, max_p), jnp.float32),        # shared im2col buffer
        ],
        compiler_params=pltpu.CompilerParams(
            dimension_semantics=("parallel",)),
    )(*inputs)
    return out.reshape(n, out_dim, ch, cw)  # NCHW


# ---------------------------------------------------------------------------
# Parameter init (HWIO weights; biases kept for fidelity, IN-layer ones unused)
# ---------------------------------------------------------------------------
def init_decoder_params(key, *, ups, n_res, dim, out_dim):
    params = {"res": [], "ups": [], "final": None}
    scale = 0.1
    d = dim
    for _ in range(n_res):
        key, k1, k2, k3, k4 = jax.random.split(key, 5)
        params["res"].append((
            jax.random.normal(k1, (3, 3, d, d), jnp.float32) * scale,
            jax.random.normal(k2, (d,), jnp.float32) * scale,
            jax.random.normal(k3, (3, 3, d, d), jnp.float32) * scale,
            jax.random.normal(k4, (d,), jnp.float32) * scale,
        ))
    for _ in range(ups):
        key, k1, k2 = jax.random.split(key, 3)
        params["ups"].append((
            jax.random.normal(k1, (5, 5, d, d // 2), jnp.float32) * scale,
            jax.random.normal(k2, (d // 2,), jnp.float32) * scale,
        ))
        d //= 2
    key, k1, k2 = jax.random.split(key, 3)
    params["final"] = (
        jax.random.normal(k1, (7, 7, d, out_dim), jnp.float32) * scale,
        jax.random.normal(k2, (out_dim,), jnp.float32) * scale,
    )
    return params


# ---------------------------------------------------------------------------
# Pure-JAX reference (same math, outside Pallas) for a numerics sanity check
# ---------------------------------------------------------------------------
def _reference_forward(x, params, activ="relu"):
    act = jax.nn.relu if activ == "relu" else (lambda v: v)

    def conv2d(z, w, b, pad):
        y = jax.lax.conv_general_dilated(
            z, w, (1, 1), [(pad, pad), (pad, pad)],
            dimension_numbers=("NCHW", "HWIO", "NCHW"),
            precision=jax.lax.Precision.HIGHEST)
        return y + b.reshape(1, -1, 1, 1)

    def inorm(y):
        mean = y.mean(axis=(2, 3), keepdims=True)
        var = jnp.square(y - mean).mean(axis=(2, 3), keepdims=True)
        return (y - mean) * jax.lax.rsqrt(var + _EPS)

    cur = x.astype(jnp.float32)
    for (w1, b1, w2, b2) in params["res"]:
        y = act(inorm(conv2d(cur, w1, b1, 1)))
        y = inorm(conv2d(y, w2, b2, 1))
        cur = cur + y
    for (wu, bu) in params["ups"]:
        cur = jnp.repeat(jnp.repeat(cur, 2, axis=2), 2, axis=3)
        cur = act(inorm(conv2d(cur, wu, bu, 2)))
    wf, bf = params["final"]
    return jnp.tanh(conv2d(cur, wf, bf, 3))


if __name__ == "__main__":
    # Decoder(ups=1, n_res=1, dim=8, out_dim=3, res_norm='in', activ='relu',
    #         pad_type='zero'); input is NCHW like the PyTorch module.
    UPS, N_RES, DIM, OUT_DIM = 1, 1, 8, 3
    N, H, W = 2, 8, 8

    key = jax.random.PRNGKey(0)
    key, kx, kp = jax.random.split(key, 3)
    x = jax.random.normal(kx, (N, DIM, H, W), jnp.float32)
    params = init_decoder_params(kp, ups=UPS, n_res=N_RES, dim=DIM, out_dim=OUT_DIM)

    fwd = jax.jit(decoder_forward)
    out = jax.block_until_ready(fwd(x, params))
    assert out.shape == (N, OUT_DIM, 2 * H, 2 * W), out.shape
    assert bool(jnp.all(jnp.isfinite(out)))

    ref = _reference_forward(x, params)
    max_err = float(jnp.max(jnp.abs(out - ref)))
    assert max_err < 5e-2, f"max abs err vs reference = {max_err}"
    print("KERNEL_OK")
</pallas_src>

<mosaic_0001>
module attributes {stable_mosaic.version = 11 : i64} {
  func.func @_decoder_kernel(%arg0: i32, %arg1: memref<1x8x64xf32, #tpu.memory_space<vmem>>, %arg2: memref<8x72xf32, #tpu.memory_space<vmem>>, %arg3: memref<8x72xf32, #tpu.memory_space<vmem>>, %arg4: memref<64x256xf32, #tpu.memory_space<vmem>>, %arg5: memref<4x200xf32, #tpu.memory_space<vmem>>, %arg6: memref<3x196xf32, #tpu.memory_space<vmem>>, %arg7: memref<3x1xf32, #tpu.memory_space<vmem>>, %arg8: memref<1x64xf32, #tpu.memory_space<vmem>>, %arg9: memref<1x256xf32, #tpu.memory_space<vmem>>, %arg10: memref<1x3x256xf32, #tpu.memory_space<vmem>>, %arg11: memref<8x358xf32, #tpu.memory_space<vmem>>, %arg12: memref<200x256xf32, #tpu.memory_space<vmem>>) attributes {dimension_semantics = [#tpu.dimension_semantics<parallel>], iteration_bounds = array<i64: 2>, scalar_prefetch = 0 : i64, scratch_operands = 2 : i64, tpu.core_type = #tpu.core_type<tc>, window_params = [{transform_indices = @transform_0, window_bounds = array<i64: 1, 8, 64>}, {pipeline_mode = #tpu.pipeline_mode<synchronous>, transform_indices = @transform_1, window_bounds = array<i64: 8, 72>}, {pipeline_mode = #tpu.pipeline_mode<synchronous>, transform_indices = @transform_2, window_bounds = array<i64: 8, 72>}, {pipeline_mode = #tpu.pipeline_mode<synchronous>, transform_indices = @transform_3, window_bounds = array<i64: 64, 256>}, {pipeline_mode = #tpu.pipeline_mode<synchronous>, transform_indices = @transform_4, window_bounds = array<i64: 4, 200>}, {pipeline_mode = #tpu.pipeline_mode<synchronous>, transform_indices = @transform_5, window_bounds = array<i64: 3, 196>}, {pipeline_mode = #tpu.pipeline_mode<synchronous>, transform_indices = @transform_6, window_bounds = array<i64: 3, 1>}, {pipeline_mode = #tpu.pipeline_mode<synchronous>, transform_indices = @transform_7, window_bounds = array<i64: 1, 64>}, {pipeline_mode = #tpu.pipeline_mode<synchronous>, transform_indices = @transform_8, window_bounds = array<i64: 1, 256>}, {transform_indices = @transform_9, window_bounds = array<i64: 1, 3, 256>}]} {
    %c0 = arith.constant 0 : index
    %c0_0 = arith.constant 0 : index
    %c0_1 = arith.constant 0 : index
    %0 = vector.load %arg1[%c0, %c0_0, %c0_1] : memref<1x8x64xf32, #tpu.memory_space<vmem>>, vector<1x8x64xf32>
    %1 = vector.shape_cast %0 : vector<1x8x64xf32> to vector<8x64xf32>
    %cst = arith.constant 0.000000e+00 : f32
    %2 = vector.broadcast %cst : f32 to vector<8x9xf32>
    %c0_2 = arith.constant 0 : index
    %c0_3 = arith.constant 0 : index
    %3 = vector.load %arg11[%c0_2, %c0_3] : memref<8x358xf32, #tpu.memory_space<vmem>>, vector<8x9xf32>
    tpu.vector_store %arg11[%c0_2, %c0_3], %2 {strides = array<i32>} : memref<8x358xf32, #tpu.memory_space<vmem>>, vector<8x9xf32>,
    %c0_4 = arith.constant 0 : index
    %c9 = arith.constant 9 : index
    %4 = vector.load %arg11[%c0_4, %c9] : memref<8x358xf32, #tpu.memory_space<vmem>>, vector<8x64xf32>
    tpu.vector_store %arg11[%c0_4, %c9], %1 {strides = array<i32>} : memref<8x358xf32, #tpu.memory_space<vmem>>, vector<8x64xf32>,
    %c0_5 = arith.constant 0 : index
    %c73 = arith.constant 73 : index
    %5 = vector.load %arg11[%c0_5, %c73] : memref<8x358xf32, #tpu.memory_space<vmem>>, vector<8x9xf32>
    tpu.vector_store %arg11[%c0_5, %c73], %2 {strides = array<i32>} : memref<8x358xf32, #tpu.memory_space<vmem>>, vector<8x9xf32>,
    %c0_6 = arith.constant 0 : index
    %c0_7 = arith.constant 0 : index
    %6 = vector.load %arg8[%c0_6, %c0_7] : memref<1x64xf32, #tpu.memory_space<vmem>>, vector<1x64xf32>
    %cst_8 = arith.constant 1.000000e+00 : f32
    %7 = vector.broadcast %cst_8 : f32 to vector<1x64xf32>
    %8 = arith.cmpf oge, %6, %7 : vector<1x64xf32>
    %cst_9 = arith.constant 9.000000e+00 : f32
    %9 = vector.broadcast %cst_9 : f32 to vector<1x64xf32>
    %10 = arith.cmpf olt, %6, %9 : vector<1x64xf32>
    %11 = arith.andi %8, %10 : vector<1x64xi1>
    %12 = arith.extui %11 : vector<1x64xi1> to vector<1x64xi32>
    %13 = arith.sitofp %12 : vector<1x64xi32> to vector<1x64xf32>
    %cst_10 = arith.constant -1.000000e+00 : f32
    %14 = vector.broadcast %cst_10 : f32 to vector<1x64xf32>
    %15 = arith.cmpf oge, %6, %14 : vector<1x64xf32>
    %cst_11 = arith.constant 7.000000e+00 : f32
    %16 = vector.broadcast %cst_11 : f32 to vector<1x64xf32>
    %17 = arith.cmpf olt, %6, %16 : vector<1x64xf32>
    %18 = arith.andi %15, %17 : vector<1x64xi1>
    %19 = arith.extui %18 : vector<1x64xi1> to vector<1x64xi32>
    %20 = arith.sitofp %19 : vector<1x64xi32> to vector<1x64xf32>
    %c0_12 = arith.constant 0 : index
    %c0_13 = arith.constant 0 : index
    %21 = vector.load %arg11[%c0_12, %c0_13] : memref<8x358xf32, #tpu.memory_space<vmem>>, vector<8x64xf32>
    %22 = vector.broadcast %13 : vector<1x64xf32> to vector<8x64xf32>
    %23 = arith.mulf %21, %22 : vector<8x64xf32>
    %c0_14 = arith.constant 0 : index
    %c0_15 = arith.constant 0 : index
    %24 = vector.load %arg12[%c0_14, %c0_15] : memref<200x256xf32, #tpu.memory_space<vmem>>, vector<8x64xf32>
    tpu.vector_store %arg12[%c0_14, %c0_15], %23 {strides = array<i32>} : memref<200x256xf32, #tpu.memory_space<vmem>>, vector<8x64xf32>,
    %c0_16 = arith.constant 0 : index
    %c1 = arith.constant 1 : index
    %25 = vector.load %arg11[%c0_16, %c1] : memref<8x358xf32, #tpu.memory_space<vmem>>, vector<8x64xf32>
    %c8 = arith.constant 8 : index
    %c0_17 = arith.constant 0 : index
    %26 = vector.load %arg12[%c8, %c0_17] : memref<200x256xf32, #tpu.memory_space<vmem>>, vector<8x64xf32>
    tpu.vector_store %arg12[%c8, %c0_17], %25 {strides = array<i32>} : memref<200x256xf32, #tpu.memory_space<vmem>>, vector<8x64xf32>,
    %c0_18 = arith.constant 0 : index
    %c2 = arith.constant 2 : index
    %27 = vector.load %arg11[%c0_18, %c2] : memref<8x358xf32, #tpu.memory_space<vmem>>, vector<8x64xf32>
    %28 = vector.broadcast %20 : vector<1x64xf32> to vector<8x64xf32>
    %29 = arith.mulf %27, %28 : vector<8x64xf32>
    %c16 = arith.constant 16 : index
    %c0_19 = arith.constant 0 : index
    %30 = vector.load %arg12[%c16, %c0_19] : memref<200x256xf32, #tpu.memory_space<vmem>>, vector<8x64xf32>
    tpu.vector_store %arg12[%c16, %c0_19], %29 {strides = array<i32>} : memref<200x256xf32, #tpu.memory_space<vmem>>, vector<8x64xf32>,
    %c0_20 = arith.constant 0 : index
    %c8_21 = arith.constant 8 : index
    %31 = vector.load %arg11[%c0_20, %c8_21] : memref<8x358xf32, #tpu.memory_space<vmem>>, vector<8x64xf32>
    %32 = vector.broadcast %13 : vector<1x64xf32> to vector<8x64xf32>
    %33 = arith.mulf %31, %32 : vector<8x64xf32>
    %c24 = arith.constant 24 : index
    %c0_22 = arith.constant 0 : index
    %34 = vector.load %arg12[%c24, %c0_22] : memref<200x256xf32, #tpu.memory_space<vmem>>, vector<8x64xf32>
    tpu.vector_store %arg12[%c24, %c0_22], %33 {strides = array<i32>} : memref<200x256xf32, #tpu.memory_space<vmem>>, vector<8x64xf32>,
    %c0_23 = arith.constant 0 : index
    %c9_24 = arith.constant 9 : index
    %35 = vector.load %arg11[%c0_23, %c9_24] : memref<8x358xf32, #tpu.memory_space<vmem>>, vector<8x64xf32>
    %c32 = arith.constant 32 : index
    %c0_25 = arith.constant 0 : index
    %36 = vector.load %arg12[%c32, %c0_25] : memref<200x256xf32, #tpu.memory_space<vmem>>, vector<8x64xf32>
    tpu.vector_store %arg12[%c32, %c0_25], %35 {strides = array<i32>} : memref<200x256xf32, #tpu.memory_space<vmem>>, vector<8x64xf32>,
    %c0_26 = arith.constant 0 : index
    %c10 = arith.constant 10 : index
    %37 = vector.load %arg11[%c0_26, %c10] : memref<8x358xf32, #tpu.memory_space<vmem>>, vector<8x64xf32>
    %38 = vector.broadcast %20 : vector<1x64xf32> to vector<8x64xf32>
    %39 = arith.mulf %37, %38 : vector<8x64xf32>
    %c40 = arith.constant 40 : index
    %c0_27 = arith.constant 0 : index
    %40 = vector.load %arg12[%c40, %c0_27] : memref<200x256xf32, #tpu.memory_space<vmem>>, vector<8x64xf32>
    tpu.vector_store %arg12[%c40, %c0_27], %39 {strides = array<i32>} : memref<200x256xf32, #tpu.memory_space<vmem>>, vector<8x64xf32>,
    %c0_28 = arith.constant 0 : index
    %c16_29 = arith.constant 16 : index
    %41 = vector.load %arg11[%c0_28, %c16_29] : memref<8x358xf32, #tpu.memory_space<vmem>>, vector<8x64xf32>
    %42 = vector.broadcast %13 : vector<1x64xf32> to vector<8x64xf32>
    %43 = arith.mulf %41, %42 : vector<8x64xf32>
    %c48 = arith.constant 48 : index
    %c0_30 = arith.constant 0 : index
    %44 = vector.load %arg12[%c48, %c0_30] : memref<200x256xf32, #tpu.memory_space<vmem>>, vector<8x64xf32>
    tpu.vector_store %arg12[%c48, %c0_30], %43 {strides = array<i32>} : memref<200x256xf32, #tpu.memory_space<vmem>>, vector<8x64xf32>,
    %c0_31 = arith.constant 0 : index
    %c17 = arith.constant 17 : index
    %45 = vector.load %arg11[%c0_31, %c17] : memref<8x358xf32, #tpu.memory_space<vmem>>, vector<8x64xf32>
    %c56 = arith.constant 56 : index
    %c0_32 = arith.constant 0 : index
    %46 = vector.load %arg12[%c56, %c0_32] : memref<200x256xf32, #tpu.memory_space<vmem>>, vector<8x64xf32>
    tpu.vector_store %arg12[%c56, %c0_32], %45 {strides = array<i32>} : memref<200x256xf32, #tpu.memory_space<vmem>>, vector<8x64xf32>,
    %c0_33 = arith.constant 0 : index
    %c18 = arith.constant 18 : index
    %47 = vector.load %arg11[%c0_33, %c18] : memref<8x358xf32, #tpu.memory_space<vmem>>, vector<8x64xf32>
    %48 = vector.broadcast %20 : vector<1x64xf32> to vector<8x64xf32>
    %49 = arith.mulf %47, %48 : vector<8x64xf32>
    %c64 = arith.constant 64 : index
    %c0_34 = arith.constant 0 : index
    %50 = vector.load %arg12[%c64, %c0_34] : memref<200x256xf32, #tpu.memory_space<vmem>>, vector<8x64xf32>
    tpu.vector_store %arg12[%c64, %c0_34], %49 {strides = array<i32>} : memref<200x256xf32, #tpu.memory_space<vmem>>, vector<8x64xf32>,
    %c0_35 = arith.constant 0 : index
    %c0_36 = arith.constant 0 : index
    %51 = vector.load %arg12[%c0_35, %c0_36] : memref<200x256xf32, #tpu.memory_space<vmem>>, vector<72x64xf32>
    %c0_37 = arith.constant 0 : index
    %c0_38 = arith.constant 0 : index
    %52 = vector.load %arg2[%c0_37, %c0_38] : memref<8x72xf32, #tpu.memory_space<vmem>>, vector<8x72xf32>
    %cst_39 = arith.constant dense<0.000000e+00> : vector<8x64xf32>
    %53 = tpu.matmul %52, %51, %cst_39 {dimension_numbers = #tpu.dot_dimension_numbers<[1], [0], [0], [1], [0, 0, 1, 1], [], []>} : vector<8x72xf32>, vector<72x64xf32>, vector<8x64xf32> -> vector<8x64xf32>
    %cst_40 = arith.constant dense<0.000000e+00> : vector<8xf32>
    %54 = vector.multi_reduction <add>, %53, %cst_40 [1] : vector<8x64xf32> to vector<8xf32>
    %55 = vector.shape_cast %54 : vector<8xf32> to vector<8x1xf32>
    %cst_41 = arith.constant 6.400000e+01 : f32
    %56 = vector.broadcast %cst_41 : f32 to vector<8x1xf32>
    %57 = arith.divf %55, %56 : vector<8x1xf32>
    %58 = vector.broadcast %57 : vector<8x1xf32> to vector<8x64xf32>
    %59 = arith.subf %53, %58 : vector<8x64xf32>
    %60 = arith.mulf %59, %59 : vector<8x64xf32>
    %cst_42 = arith.constant dense<0.000000e+00> : vector<8xf32>
    %61 = vector.multi_reduction <add>, %60, %cst_42 [1] : vector<8x64xf32> to vector<8xf32>
    %62 = vector.shape_cast %61 : vector<8xf32> to vector<8x1xf32>
    %cst_43 = arith.constant 6.400000e+01 : f32
    %63 = vector.broadcast %cst_43 : f32 to vector<8x1xf32>
    %64 = arith.divf %62, %63 : vector<8x1xf32>
    %65 = vector.broadcast %57 : vector<8x1xf32> to vector<8x64xf32>
    %66 = arith.subf %53, %65 : vector<8x64xf32>
    %cst_44 = arith.constant 9.99999974E-6 : f32
    %67 = vector.broadcast %cst_44 : f32 to vector<8x1xf32>
    %68 = arith.addf %64, %67 : vector<8x1xf32>
    %69 = math.rsqrt %68 : vector<8x1xf32>
    %70 = vector.broadcast %69 : vector<8x1xf32> to vector<8x64xf32>
    %71 = arith.mulf %66, %70 : vector<8x64xf32>
    %cst_45 = arith.constant 0.000000e+00 : f32
    %72 = vector.broadcast %cst_45 : f32 to vector<8x64xf32>
    %73 = arith.maximumf %71, %72 : vector<8x64xf32>
    %cst_46 = arith.constant 0.000000e+00 : f32
    %74 = vector.broadcast %cst_46 : f32 to vector<8x9xf32>
    %c0_47 = arith.constant 0 : index
    %c0_48 = arith.constant 0 : index
    %75 = vector.load %arg11[%c0_47, %c0_48] : memref<8x358xf32, #tpu.memory_space<vmem>>, vector<8x9xf32>
    tpu.vector_store %arg11[%c0_47, %c0_48], %74 {strides = array<i32>} : memref<8x358xf32, #tpu.memory_space<vmem>>, vector<8x9xf32>,
    %c0_49 = arith.constant 0 : index
    %c9_50 = arith.constant 9 : index
    %76 = vector.load %arg11[%c0_49, %c9_50] : memref<8x358xf32, #tpu.memory_space<vmem>>, vector<8x64xf32>
    tpu.vector_store %arg11[%c0_49, %c9_50], %73 {strides = array<i32>} : memref<8x358xf32, #tpu.memory_space<vmem>>, vector<8x64xf32>,
    %c0_51 = arith.constant 0 : index
    %c73_52 = arith.constant 73 : index
    %77 = vector.load %arg11[%c0_51, %c73_52] : memref<8x358xf32, #tpu.memory_space<vmem>>, vector<8x9xf32>
    tpu.vector_store %arg11[%c0_51, %c73_52], %74 {strides = array<i32>} : memref<8x358xf32, #tpu.memory_space<vmem>>, vector<8x9xf32>,
    %c0_53 = arith.constant 0 : index
    %c0_54 = arith.constant 0 : index
    %78 = vector.load %arg8[%c0_53, %c0_54] : memref<1x64xf32, #tpu.memory_space<vmem>>, vector<1x64xf32>
    %cst_55 = arith.constant 1.000000e+00 : f32
    %79 = vector.broadcast %cst_55 : f32 to vector<1x64xf32>
    %80 = arith.cmpf oge, %78, %79 : vector<1x64xf32>
    %cst_56 = arith.constant 9.000000e+00 : f32
    %81 = vector.broadcast %cst_56 : f32 to vector<1x64xf32>
    %82 = arith.cmpf olt, %78, %81 : vector<1x64xf32>
    %83 = arith.andi %80, %82 : vector<1x64xi1>
    %84 = arith.extui %83 : vector<1x64xi1> to vector<1x64xi32>
    %85 = arith.sitofp %84 : vector<1x64xi32> to vector<1x64xf32>
    %cst_57 = arith.constant -1.000000e+00 : f32
    %86 = vector.broadcast %cst_57 : f32 to vector<1x64xf32>
    %87 = arith.cmpf oge, %78, %86 : vector<1x64xf32>
    %cst_58 = arith.constant 7.000000e+00 : f32
    %88 = vector.broadcast %cst_58 : f32 to vector<1x64xf32>
    %89 = arith.cmpf olt, %78, %88 : vector<1x64xf32>
    %90 = arith.andi %87, %89 : vector<1x64xi1>
    %91 = arith.extui %90 : vector<1x64xi1> to vector<1x64xi32>
    %92 = arith.sitofp %91 : vector<1x64xi32> to vector<1x64xf32>
    %c0_59 = arith.constant 0 : index
    %c0_60 = arith.constant 0 : index
    %93 = vector.load %arg11[%c0_59, %c0_60] : memref<8x358xf32, #tpu.memory_space<vmem>>, vector<8x64xf32>
    %94 = vector.broadcast %85 : vector<1x64xf32> to vector<8x64xf32>
    %95 = arith.mulf %93, %94 : vector<8x64xf32>
    %c0_61 = arith.constant 0 : index
    %c0_62 = arith.constant 0 : index
    %96 = vector.load %arg12[%c0_61, %c0_62] : memref<200x256xf32, #tpu.memory_space<vmem>>, vector<8x64xf32>
    tpu.vector_store %arg12[%c0_61, %c0_62], %95 {strides = array<i32>} : memref<200x256xf32, #tpu.memory_space<vmem>>, vector<8x64xf32>,
    %c0_63 = arith.constant 0 : index
    %c1_64 = arith.constant 1 : index
    %97 = vector.load %arg11[%c0_63, %c1_64] : memref<8x358xf32, #tpu.memory_space<vmem>>, vector<8x64xf32>
    %c8_65 = arith.constant 8 : index
    %c0_66 = arith.constant 0 : index
    %98 = vector.load %arg12[%c8_65, %c0_66] : memref<200x256xf32, #tpu.memory_space<vmem>>, vector<8x64xf32>
    tpu.vector_store %arg12[%c8_65, %c0_66], %97 {strides = array<i32>} : memref<200x256xf32, #tpu.memory_space<vmem>>, vector<8x64xf32>,
    %c0_67 = arith.constant 0 : index
    %c2_68 = arith.constant 2 : index
    %99 = vector.load %arg11[%c0_67, %c2_68] : memref<8x358xf32, #tpu.memory_space<vmem>>, vector<8x64xf32>
    %100 = vector.broadcast %92 : vector<1x64xf32> to vector<8x64xf32>
    %101 = arith.mulf %99, %100 : vector<8x64xf32>
    %c16_69 = arith.constant 16 : index
    %c0_70 = arith.constant 0 : index
    %102 = vector.load %arg12[%c16_69, %c0_70] : memref<200x256xf32, #tpu.memory_space<vmem>>, vector<8x64xf32>
    tpu.vector_store %arg12[%c16_69, %c0_70], %101 {strides = array<i32>} : memref<200x256xf32, #tpu.memory_space<vmem>>, vector<8x64xf32>,
    %c0_71 = arith.constant 0 : index
    %c8_72 = arith.constant 8 : index
    %103 = vector.load %arg11[%c0_71, %c8_72] : memref<8x358xf32, #tpu.memory_space<vmem>>, vector<8x64xf32>
    %104 = vector.broadcast %85 : vector<1x64xf32> to vector<8x64xf32>
    %105 = arith.mulf %103, %104 : vector<8x64xf32>
    %c24_73 = arith.constant 24 : index
    %c0_74 = arith.constant 0 : index
    %106 = vector.load %arg12[%c24_73, %c0_74] : memref<200x256xf32, #tpu.memory_space<vmem>>, vector<8x64xf32>
    tpu.vector_store %arg12[%c24_73, %c0_74], %105 {strides = array<i32>} : memref<200x256xf32, #tpu.memory_space<vmem>>, vector<8x64xf32>,
    %c0_75 = arith.constant 0 : index
    %c9_76 = arith.constant 9 : index
    %107 = vector.load %arg11[%c0_75, %c9_76] : memref<8x358xf32, #tpu.memory_space<vmem>>, vector<8x64xf32>
    %c32_77 = arith.constant 32 : index
    %c0_78 = arith.constant 0 : index
    %108 = vector.load %arg12[%c32_77, %c0_78] : memref<200x256xf32, #tpu.memory_space<vmem>>, vector<8x64xf32>
    tpu.vector_store %arg12[%c32_77, %c0_78], %107 {strides = array<i32>} : memref<200x256xf32, #tpu.memory_space<vmem>>, vector<8x64xf32>,
    %c0_79 = arith.constant 0 : index
    %c10_80 = arith.constant 10 : index
    %109 = vector.load %arg11[%c0_79, %c10_80] : memref<8x358xf32, #tpu.memory_space<vmem>>, vector<8x64xf32>
    %110 = vector.broadcast %92 : vector<1x64xf32> to vector<8x64xf32>
    %111 = arith.mulf %109, %110 : vector<8x64xf32>
    %c40_81 = arith.constant 40 : index
    %c0_82 = arith.constant 0 : index
    %112 = vector.load %arg12[%c40_81, %c0_82] : memref<200x256xf32, #tpu.memory_space<vmem>>, vector<8x64xf32>
    tpu.vector_store %arg12[%c40_81, %c0_82], %111 {strides = array<i32>} : memref<200x256xf32, #tpu.memory_space<vmem>>, vector<8x64xf32>,
    %c0_83 = arith.constant 0 : index
    %c16_84 = arith.constant 16 : index
    %113 = vector.load %arg11[%c0_83, %c16_84] : memref<8x358xf32, #tpu.memory_space<vmem>>, vector<8x64xf32>
    %114 = vector.broadcast %85 : vector<1x64xf32> to vector<8x64xf32>
    %115 = arith.mulf %113, %114 : vector<8x64xf32>
    %c48_85 = arith.constant 48 : index
    %c0_86 = arith.constant 0 : index
    %116 = vector.load %arg12[%c48_85, %c0_86] : memref<200x256xf32, #tpu.memory_space<vmem>>, vector<8x64xf32>
    tpu.vector_store %arg12[%c48_85, %c0_86], %115 {strides = array<i32>} : memref<200x256xf32, #tpu.memory_space<vmem>>, vector<8x64xf32>,
    %c0_87 = arith.constant 0 : index
    %c17_88 = arith.constant 17 : index
    %117 = vector.load %arg11[%c0_87, %c17_88] : memref<8x358xf32, #tpu.memory_space<vmem>>, vector<8x64xf32>
    %c56_89 = arith.constant 56 : index
    %c0_90 = arith.constant 0 : index
    %118 = vector.load %arg12[%c56_89, %c0_90] : memref<200x256xf32, #tpu.memory_space<vmem>>, vector<8x64xf32>
    tpu.vector_store %arg12[%c56_89, %c0_90], %117 {strides = array<i32>} : memref<200x256xf32, #tpu.memory_space<vmem>>, vector<8x64xf32>,
    %c0_91 = arith.constant 0 : index
    %c18_92 = arith.constant 18 : index
    %119 = vector.load %arg11[%c0_91, %c18_92] : memref<8x358xf32, #tpu.memory_space<vmem>>, vector<8x64xf32>
    %120 = vector.broadcast %92 : vector<1x64xf32> to vector<8x64xf32>
    %121 = arith.mulf %119, %120 : vector<8x64xf32>
    %c64_93 = arith.constant 64 : index
    %c0_94 = arith.constant 0 : index
    %122 = vector.load %arg12[%c64_93, %c0_94] : memref<200x256xf32, #tpu.memory_space<vmem>>, vector<8x64xf32>
    tpu.vector_store %arg12[%c64_93, %c0_94], %121 {strides = array<i32>} : memref<200x256xf32, #tpu.memory_space<vmem>>, vector<8x64xf32>,
    %c0_95 = arith.constant 0 : index
    %c0_96 = arith.constant 0 : index
    %123 = vector.load %arg12[%c0_95, %c0_96] : memref<200x256xf32, #tpu.memory_space<vmem>>, vector<72x64xf32>
    %c0_97 = arith.constant 0 : index
    %c0_98 = arith.constant 0 : index
    %124 = vector.load %arg3[%c0_97, %c0_98] : memref<8x72xf32, #tpu.memory_space<vmem>>, vector<8x72xf32>
    %cst_99 = arith.constant dense<0.000000e+00> : vector<8x64xf32>
    %125 = tpu.matmul %124, %123, %cst_99 {dimension_numbers = #tpu.dot_dimension_numbers<[1], [0], [0], [1], [0, 0, 1, 1], [], []>} : vector<8x72xf32>, vector<72x64xf32>, vector<8x64xf32> -> vector<8x64xf32>
    %cst_100 = arith.constant dense<0.000000e+00> : vector<8xf32>
    %126 = vector.multi_reduction <add>, %125, %cst_100 [1] : vector<8x64xf32> to vector<8xf32>
    %127 = vector.shape_cast %126 : vector<8xf32> to vector<8x1xf32>
    %cst_101 = arith.constant 6.400000e+01 : f32
    %128 = vector.broadcast %cst_101 : f32 to vector<8x1xf32>
    %129 = arith.divf %127, %128 : vector<8x1xf32>
    %130 = vector.broadcast %129 : vector<8x1xf32> to vector<8x64xf32>
    %131 = arith.subf %125, %130 : vector<8x64xf32>
    %132 = arith.mulf %131, %131 : vector<8x64xf32>
    %cst_102 = arith.constant dense<0.000000e+00> : vector<8xf32>
    %133 = vector.multi_reduction <add>, %132, %cst_102 [1] : vector<8x64xf32> to vector<8xf32>
    %134 = vector.shape_cast %133 : vector<8xf32> to vector<8x1xf32>
    %cst_103 = arith.constant 6.400000e+01 : f32
    %135 = vector.broadcast %cst_103 : f32 to vector<8x1xf32>
    %136 = arith.divf %134, %135 : vector<8x1xf32>
    %137 = vector.broadcast %129 : vector<8x1xf32> to vector<8x64xf32>
    %138 = arith.subf %125, %137 : vector<8x64xf32>
    %cst_104 = arith.constant 9.99999974E-6 : f32
    %139 = vector.broadcast %cst_104 : f32 to vector<8x1xf32>
    %140 = arith.addf %136, %139 : vector<8x1xf32>
    %141 = math.rsqrt %140 : vector<8x1xf32>
    %142 = vector.broadcast %141 : vector<8x1xf32> to vector<8x64xf32>
    %143 = arith.mulf %138, %142 : vector<8x64xf32>
    %144 = arith.addf %1, %143 : vector<8x64xf32>
    %c0_105 = arith.constant 0 : index
    %c0_106 = arith.constant 0 : index
    %145 = vector.load %arg4[%c0_105, %c0_106] : memref<64x256xf32, #tpu.memory_space<vmem>>, vector<64x256xf32>
    %cst_107 = arith.constant dense<0.000000e+00> : vector<8x256xf32>
    %146 = tpu.matmul %144, %145, %cst_107 {dimension_numbers = #tpu.dot_dimension_numbers<[1], [0], [0], [1], [0, 0, 1, 1], [], []>} : vector<8x64xf32>, vector<64x256xf32>, vector<8x256xf32> -> vector<8x256xf32>
    %cst_108 = arith.constant 0.000000e+00 : f32
    %147 = vector.broadcast %cst_108 : f32 to vector<8x34xf32>
    %c0_109 = arith.constant 0 : index
    %c0_110 = arith.constant 0 : index
    %148 = vector.load %arg11[%c0_109, %c0_110] : memref<8x358xf32, #tpu.memory_space<vmem>>, vector<8x34xf32>
    tpu.vector_store %arg11[%c0_109, %c0_110], %147 {strides = array<i32>} : memref<8x358xf32, #tpu.memory_space<vmem>>, vector<8x34xf32>,
    %c0_111 = arith.constant 0 : index
    %c34 = arith.constant 34 : index
    %149 = vector.load %arg11[%c0_111, %c34] : memref<8x358xf32, #tpu.memory_space<vmem>>, vector<8x256xf32>
    tpu.vector_store %arg11[%c0_111, %c34], %146 {strides = array<i32>} : memref<8x358xf32, #tpu.memory_space<vmem>>, vector<8x256xf32>,
    %c0_112 = arith.constant 0 : index
    %c290 = arith.constant 290 : index
    %150 = vector.load %arg11[%c0_112, %c290] : memref<8x358xf32, #tpu.memory_space<vmem>>, vector<8x34xf32>
    tpu.vector_store %arg11[%c0_112, %c290], %147 {strides = array<i32>} : memref<8x358xf32, #tpu.memory_space<vmem>>, vector<8x34xf32>,
    %c0_113 = arith.constant 0 : index
    %c0_114 = arith.constant 0 : index
    %151 = vector.load %arg9[%c0_113, %c0_114] : memref<1x256xf32, #tpu.memory_space<vmem>>, vector<1x256xf32>
    %cst_115 = arith.constant 2.000000e+00 : f32
    %152 = vector.broadcast %cst_115 : f32 to vector<1x256xf32>
    %153 = arith.cmpf oge, %151, %152 : vector<1x256xf32>
    %cst_116 = arith.constant 1.800000e+01 : f32
    %154 = vector.broadcast %cst_116 : f32 to vector<1x256xf32>
    %155 = arith.cmpf olt, %151, %154 : vector<1x256xf32>
    %156 = arith.andi %153, %155 : vector<1x256xi1>
    %157 = arith.extui %156 : vector<1x256xi1> to vector<1x256xi32>
    %158 = arith.sitofp %157 : vector<1x256xi32> to vector<1x256xf32>
    %cst_117 = arith.constant 1.000000e+00 : f32
    %159 = vector.broadcast %cst_117 : f32 to vector<1x256xf32>
    %160 = arith.cmpf oge, %151, %159 : vector<1x256xf32>
    %cst_118 = arith.constant 1.700000e+01 : f32
    %161 = vector.broadcast %cst_118 : f32 to vector<1x256xf32>
    %162 = arith.cmpf olt, %151, %161 : vector<1x256xf32>
    %163 = arith.andi %160, %162 : vector<1x256xi1>
    %164 = arith.extui %163 : vector<1x256xi1> to vector<1x256xi32>
    %165 = arith.sitofp %164 : vector<1x256xi32> to vector<1x256xf32>
    %cst_119 = arith.constant -1.000000e+00 : f32
    %166 = vector.broadcast %cst_119 : f32 to vector<1x256xf32>
    %167 = arith.cmpf oge, %151, %166 : vector<1x256xf32>
    %cst_120 = arith.constant 1.500000e+01 : f32
    %168 = vector.broadcast %cst_120 : f32 to vector<1x256xf32>
    %169 = arith.cmpf olt, %151, %168 : vector<1x256xf32>
    %170 = arith.andi %167, %169 : vector<1x256xi1>
    %171 = arith.extui %170 : vector<1x256xi1> to vector<1x256xi32>
    %172 = arith.sitofp %171 : vector<1x256xi32> to vector<1x256xf32>
    %cst_121 = arith.constant -2.000000e+00 : f32
    %173 = vector.broadcast %cst_121 : f32 to vector<1x256xf32>
    %174 = arith.cmpf oge, %151, %173 : vector<1x256xf32>
    %cst_122 = arith.constant 1.400000e+01 : f32
    %175 = vector.broadcast %cst_122 : f32 to vector<1x256xf32>
    %176 = arith.cmpf olt, %151, %175 : vector<1x256xf32>
    %177 = arith.andi %174, %176 : vector<1x256xi1>
    %178 = arith.extui %177 : vector<1x256xi1> to vector<1x256xi32>
    %179 = arith.sitofp %178 : vector<1x256xi32> to vector<1x256xf32>
    %c0_123 = arith.constant 0 : index
    %c0_124 = arith.constant 0 : index
    %180 = vector.load %arg11[%c0_123, %c0_124] : memref<8x358xf32, #tpu.memory_space<vmem>>, vector<8x256xf32>
    %181 = vector.broadcast %158 : vector<1x256xf32> to vector<8x256xf32>
    %182 = arith.mulf %180, %181 : vector<8x256xf32>
    %c0_125 = arith.constant 0 : index
    %c0_126 = arith.constant 0 : index
    %183 = vector.load %arg12[%c0_125, %c0_126] : memref<200x256xf32, #tpu.memory_space<vmem>>, vector<8x256xf32>
    tpu.vector_store %arg12[%c0_125, %c0_126], %182 {strides = array<i32>} : memref<200x256xf32, #tpu.memory_space<vmem>>, vector<8x256xf32>,
    %c0_127 = arith.constant 0 : index
    %c1_128 = arith.constant 1 : index
    %184 = vector.load %arg11[%c0_127, %c1_128] : memref<8x358xf32, #tpu.memory_space<vmem>>, vector<8x256xf32>
    %185 = vector.broadcast %165 : vector<1x256xf32> to vector<8x256xf32>
    %186 = arith.mulf %184, %185 : vector<8x256xf32>
    %c8_129 = arith.constant 8 : index
    %c0_130 = arith.constant 0 : index
    %187 = vector.load %arg12[%c8_129, %c0_130] : memref<200x256xf32, #tpu.memory_space<vmem>>, vector<8x256xf32>
    tpu.vector_store %arg12[%c8_129, %c0_130], %186 {strides = array<i32>} : memref<200x256xf32, #tpu.memory_space<vmem>>, vector<8x256xf32>,
    %c0_131 = arith.constant 0 : index
    %c2_132 = arith.constant 2 : index
    %188 = vector.load %arg11[%c0_131, %c2_132] : memref<8x358xf32, #tpu.memory_space<vmem>>, vector<8x256xf32>
    %c16_133 = arith.constant 16 : index
    %c0_134 = arith.constant 0 : index
    %189 = vector.load %arg12[%c16_133, %c0_134] : memref<200x256xf32, #tpu.memory_space<vmem>>, vector<8x256xf32>
    tpu.vector_store %arg12[%c16_133, %c0_134], %188 {strides = array<i32>} : memref<200x256xf32, #tpu.memory_space<vmem>>, vector<8x256xf32>,
    %c0_135 = arith.constant 0 : index
    %c3 = arith.constant 3 : index
    %190 = vector.load %arg11[%c0_135, %c3] : memref<8x358xf32, #tpu.memory_space<vmem>>, vector<8x256xf32>
    %191 = vector.broadcast %172 : vector<1x256xf32> to vector<8x256xf32>
    %192 = arith.mulf %190, %191 : vector<8x256xf32>
    %c24_136 = arith.constant 24 : index
    %c0_137 = arith.constant 0 : index
    %193 = vector.load %arg12[%c24_136, %c0_137] : memref<200x256xf32, #tpu.memory_space<vmem>>, vector<8x256xf32>
    tpu.vector_store %arg12[%c24_136, %c0_137], %192 {strides = array<i32>} : memref<200x256xf32, #tpu.memory_space<vmem>>, vector<8x256xf32>,
    %c0_138 = arith.constant 0 : index
    %c4 = arith.constant 4 : index
    %194 = vector.load %arg11[%c0_138, %c4] : memref<8x358xf32, #tpu.memory_space<vmem>>, vector<8x256xf32>
    %195 = vector.broadcast %179 : vector<1x256xf32> to vector<8x256xf32>
    %196 = arith.mulf %194, %195 : vector<8x256xf32>
    %c32_139 = arith.constant 32 : index
    %c0_140 = arith.constant 0 : index
    %197 = vector.load %arg12[%c32_139, %c0_140] : memref<200x256xf32, #tpu.memory_space<vmem>>, vector<8x256xf32>
    tpu.vector_store %arg12[%c32_139, %c0_140], %196 {strides = array<i32>} : memref<200x256xf32, #tpu.memory_space<vmem>>, vector<8x256xf32>,
    %c0_141 = arith.constant 0 : index
    %c16_142 = arith.constant 16 : index
    %198 = vector.load %arg11[%c0_141, %c16_142] : memref<8x358xf32, #tpu.memory_space<vmem>>, vector<8x256xf32>
    %199 = vector.broadcast %158 : vector<1x256xf32> to vector<8x256xf32>
    %200 = arith.mulf %198, %199 : vector<8x256xf32>
    %c40_143 = arith.constant 40 : index
    %c0_144 = arith.constant 0 : index
    %201 = vector.load %arg12[%c40_143, %c0_144] : memref<200x256xf32, #tpu.memory_space<vmem>>, vector<8x256xf32>
    tpu.vector_store %arg12[%c40_143, %c0_144], %200 {strides = array<i32>} : memref<200x256xf32, #tpu.memory_space<vmem>>, vector<8x256xf32>,
    %c0_145 = arith.constant 0 : index
    %c17_146 = arith.constant 17 : index
    %202 = vector.load %arg11[%c0_145, %c17_146] : memref<8x358xf32, #tpu.memory_space<vmem>>, vector<8x256xf32>
    %203 = vector.broadcast %165 : vector<1x256xf32> to vector<8x256xf32>
    %204 = arith.mulf %202, %203 : vector<8x256xf32>
    %c48_147 = arith.constant 48 : index
    %c0_148 = arith.constant 0 : index
    %205 = vector.load %arg12[%c48_147, %c0_148] : memref<200x256xf32, #tpu.memory_space<vmem>>, vector<8x256xf32>
    tpu.vector_store %arg12[%c48_147, %c0_148], %204 {strides = array<i32>} : memref<200x256xf32, #tpu.memory_space<vmem>>, vector<8x256xf32>,
    %c0_149 = arith.constant 0 : index
    %c18_150 = arith.constant 18 : index
    %206 = vector.load %arg11[%c0_149, %c18_150] : memref<8x358xf32, #tpu.memory_space<vmem>>, vector<8x256xf32>
    %c56_151 = arith.constant 56 : index
    %c0_152 = arith.constant 0 : index
    %207 = vector.load %arg12[%c56_151, %c0_152] : memref<200x256xf32, #tpu.memory_space<vmem>>, vector<8x256xf32>
    tpu.vector_store %arg12[%c56_151, %c0_152], %206 {strides = array<i32>} : memref<200x256xf32, #tpu.memory_space<vmem>>, vector<8x256xf32>,
    %c0_153 = arith.constant 0 : index
    %c19 = arith.constant 19 : index
    %208 = vector.load %arg11[%c0_153, %c19] : memref<8x358xf32, #tpu.memory_space<vmem>>, vector<8x256xf32>
    %209 = vector.broadcast %172 : vector<1x256xf32> to vector<8x256xf32>
    %210 = arith.mulf %208, %209 : vector<8x256xf32>
    %c64_154 = arith.constant 64 : index
    %c0_155 = arith.constant 0 : index
    %211 = vector.load %arg12[%c64_154, %c0_155] : memref<200x256xf32, #tpu.memory_space<vmem>>, vector<8x256xf32>
    tpu.vector_store %arg12[%c64_154, %c0_155], %210 {strides = array<i32>} : memref<200x256xf32, #tpu.memory_space<vmem>>, vector<8x256xf32>,
    %c0_156 = arith.constant 0 : index
    %c20 = arith.constant 20 : index
    %212 = vector.load %arg11[%c0_156, %c20] : memref<8x358xf32, #tpu.memory_space<vmem>>, vector<8x256xf32>
    %213 = vector.broadcast %179 : vector<1x256xf32> to vector<8x256xf32>
    %214 = arith.mulf %212, %213 : vector<8x256xf32>
    %c72 = arith.constant 72 : index
    %c0_157 = arith.constant 0 : index
    %215 = vector.load %arg12[%c72, %c0_157] : memref<200x256xf32, #tpu.memory_space<vmem>>, vector<8x256xf32>
    tpu.vector_store %arg12[%c72, %c0_157], %214 {strides = array<i32>} : memref<200x256xf32, #tpu.memory_space<vmem>>, vector<8x256xf32>,
    %c0_158 = arith.constant 0 : index
    %c32_159 = arith.constant 32 : index
    %216 = vector.load %arg11[%c0_158, %c32_159] : memref<8x358xf32, #tpu.memory_space<vmem>>, vector<8x256xf32>
    %217 = vector.broadcast %158 : vector<1x256xf32> to vector<8x256xf32>
    %218 = arith.mulf %216, %217 : vector<8x256xf32>
    %c80 = arith.constant 80 : index
    %c0_160 = arith.constant 0 : index
    %219 = vector.load %arg12[%c80, %c0_160] : memref<200x256xf32, #tpu.memory_space<vmem>>, vector<8x256xf32>
    tpu.vector_store %arg12[%c80, %c0_160], %218 {strides = array<i32>} : memref<200x256xf32, #tpu.memory_space<vmem>>, vector<8x256xf32>,
    %c0_161 = arith.constant 0 : index
    %c33 = arith.constant 33 : index
    %220 = vector.load %arg11[%c0_161, %c33] : memref<8x358xf32, #tpu.memory_space<vmem>>, vector<8x256xf32>
    %221 = vector.broadcast %165 : vector<1x256xf32> to vector<8x256xf32>
    %222 = arith.mulf %220, %221 : vector<8x256xf32>
    %c88 = arith.constant 88 : index
    %c0_162 = arith.constant 0 : index
    %223 = vector.load %arg12[%c88, %c0_162] : memref<200x256xf32, #tpu.memory_space<vmem>>, vector<8x256xf32>
    tpu.vector_store %arg12[%c88, %c0_162], %222 {strides = array<i32>} : memref<200x256xf32, #tpu.memory_space<vmem>>, vector<8x256xf32>,
    %c0_163 = arith.constant 0 : index
    %c34_164 = arith.constant 34 : index
    %224 = vector.load %arg11[%c0_163, %c34_164] : memref<8x358xf32, #tpu.memory_space<vmem>>, vector<8x256xf32>
    %c96 = arith.constant 96 : index
    %c0_165 = arith.constant 0 : index
    %225 = vector.load %arg12[%c96, %c0_165] : memref<200x256xf32, #tpu.memory_space<vmem>>, vector<8x256xf32>
    tpu.vector_store %arg12[%c96, %c0_165], %224 {strides = array<i32>} : memref<200x256xf32, #tpu.memory_space<vmem>>, vector<8x256xf32>,
    %c0_166 = arith.constant 0 : index
    %c35 = arith.constant 35 : index
    %226 = vector.load %arg11[%c0_166, %c35] : memref<8x358xf32, #tpu.memory_space<vmem>>, vector<8x256xf32>
    %227 = vector.broadcast %172 : vector<1x256xf32> to vector<8x256xf32>
    %228 = arith.mulf %226, %227 : vector<8x256xf32>
    %c104 = arith.constant 104 : index
    %c0_167 = arith.constant 0 : index
    %229 = vector.load %arg12[%c104, %c0_167] : memref<200x256xf32, #tpu.memory_space<vmem>>, vector<8x256xf32>
    tpu.vector_store %arg12[%c104, %c0_167], %228 {strides = array<i32>} : memref<200x256xf32, #tpu.memory_space<vmem>>, vector<8x256xf32>,
    %c0_168 = arith.constant 0 : index
    %c36 = arith.constant 36 : index
    %230 = vector.load %arg11[%c0_168, %c36] : memref<8x358xf32, #tpu.memory_space<vmem>>, vector<8x256xf32>
    %231 = vector.broadcast %179 : vector<1x256xf32> to vector<8x256xf32>
    %232 = arith.mulf %230, %231 : vector<8x256xf32>
    %c112 = arith.constant 112 : index
    %c0_169 = arith.constant 0 : index
    %233 = vector.load %arg12[%c112, %c0_169] : memref<200x256xf32, #tpu.memory_space<vmem>>, vector<8x256xf32>
    tpu.vector_store %arg12[%c112, %c0_169], %232 {strides = array<i32>} : memref<200x256xf32, #tpu.memory_space<vmem>>, vector<8x256xf32>,
    %c0_170 = arith.constant 0 : index
    %c48_171 = arith.constant 48 : index
    %234 = vector.load %arg11[%c0_170, %c48_171] : memref<8x358xf32, #tpu.memory_space<vmem>>, vector<8x256xf32>
    %235 = vector.broadcast %158 : vector<1x256xf32> to vector<8x256xf32>
    %236 = arith.mulf %234, %235 : vector<8x256xf32>
    %c120 = arith.constant 120 : index
    %c0_172 = arith.constant 0 : index
    %237 = vector.load %arg12[%c120, %c0_172] : memref<200x256xf32, #tpu.memory_space<vmem>>, vector<8x256xf32>
    tpu.vector_store %arg12[%c120, %c0_172], %236 {strides = array<i32>} : memref<200x256xf32, #tpu.memory_space<vmem>>, vector<8x256xf32>,
    %c0_173 = arith.constant 0 : index
    %c49 = arith.constant 49 : index
    %238 = vector.load %arg11[%c0_173, %c49] : memref<8x358xf32, #tpu.memory_space<vmem>>, vector<8x256xf32>
    %239 = vector.broadcast %165 : vector<1x256xf32> to vector<8x256xf32>
    %240 = arith.mulf %238, %239 : vector<8x256xf32>
    %c128 = arith.constant 128 : index
    %c0_174 = arith.constant 0 : index
    %241 = vector.load %arg12[%c128, %c0_174] : memref<200x256xf32, #tpu.memory_space<vmem>>, vector<8x256xf32>
    tpu.vector_store %arg12[%c128, %c0_174], %240 {strides = array<i32>} : memref<200x256xf32, #tpu.memory_space<vmem>>, vector<8x256xf32>,
    %c0_175 = arith.constant 0 : index
    %c50 = arith.constant 50 : index
    %242 = vector.load %arg11[%c0_175, %c50] : memref<8x358xf32, #tpu.memory_space<vmem>>, vector<8x256xf32>
    %c136 = arith.constant 136 : index
    %c0_176 = arith.constant 0 : index
    %243 = vector.load %arg12[%c136, %c0_176] : memref<200x256xf32, #tpu.memory_space<vmem>>, vector<8x256xf32>
    tpu.vector_store %arg12[%c136, %c0_176], %242 {strides = array<i32>} : memref<200x256xf32, #tpu.memory_space<vmem>>, vector<8x256xf32>,
    %c0_177 = arith.constant 0 : index
    %c51 = arith.constant 51 : index
    %244 = vector.load %arg11[%c0_177, %c51] : memref<8x358xf32, #tpu.memory_space<vmem>>, vector<8x256xf32>
    %245 = vector.broadcast %172 : vector<1x256xf32> to vector<8x256xf32>
    %246 = arith.mulf %244, %245 : vector<8x256xf32>
    %c144 = arith.constant 144 : index
    %c0_178 = arith.constant 0 : index
    %247 = vector.load %arg12[%c144, %c0_178] : memref<200x256xf32, #tpu.memory_space<vmem>>, vector<8x256xf32>
    tpu.vector_store %arg12[%c144, %c0_178], %246 {strides = array<i32>} : memref<200x256xf32, #tpu.memory_space<vmem>>, vector<8x256xf32>,
    %c0_179 = arith.constant 0 : index
    %c52 = arith.constant 52 : index
    %248 = vector.load %arg11[%c0_179, %c52] : memref<8x358xf32, #tpu.memory_space<vmem>>, vector<8x256xf32>
    %249 = vector.broadcast %179 : vector<1x256xf32> to vector<8x256xf32>
    %250 = arith.mulf %248, %249 : vector<8x256xf32>
    %c152 = arith.constant 152 : index
    %c0_180 = arith.constant 0 : index
    %251 = vector.load %arg12[%c152, %c0_180] : memref<200x256xf32, #tpu.memory_space<vmem>>, vector<8x256xf32>
    tpu.vector_store %arg12[%c152, %c0_180], %250 {strides = array<i32>} : memref<200x256xf32, #tpu.memory_space<vmem>>, vector<8x256xf32>,
    %c0_181 = arith.constant 0 : index
    %c64_182 = arith.constant 64 : index
    %252 = vector.load %arg11[%c0_181, %c64_182] : memref<8x358xf32, #tpu.memory_space<vmem>>, vector<8x256xf32>
    %253 = vector.broadcast %158 : vector<1x256xf32> to vector<8x256xf32>
    %254 = arith.mulf %252, %253 : vector<8x256xf32>
    %c160 = arith.constant 160 : index
    %c0_183 = arith.constant 0 : index
    %255 = vector.load %arg12[%c160, %c0_183] : memref<200x256xf32, #tpu.memory_space<vmem>>, vector<8x256xf32>
    tpu.vector_store %arg12[%c160, %c0_183], %254 {strides = array<i32>} : memref<200x256xf32, #tpu.memory_space<vmem>>, vector<8x256xf32>,
    %c0_184 = arith.constant 0 : index
    %c65 = arith.constant 65 : index
    %256 = vector.load %arg11[%c0_184, %c65] : memref<8x358xf32, #tpu.memory_space<vmem>>, vector<8x256xf32>
    %257 = vector.broadcast %165 : vector<1x256xf32> to vector<8x256xf32>
    %258 = arith.mulf %256, %257 : vector<8x256xf32>
    %c168 = arith.constant 168 : index
    %c0_185 = arith.constant 0 : index
    %259 = vector.load %arg12[%c168, %c0_185] : memref<200x256xf32, #tpu.memory_space<vmem>>, vector<8x256xf32>
    tpu.vector_store %arg12[%c168, %c0_185], %258 {strides = array<i32>} : memref<200x256xf32, #tpu.memory_space<vmem>>, vector<8x256xf32>,
    %c0_186 = arith.constant 0 : index
    %c66 = arith.constant 66 : index
    %260 = vector.load %arg11[%c0_186, %c66] : memref<8x358xf32, #tpu.memory_space<vmem>>, vector<8x256xf32>
    %c176 = arith.constant 176 : index
    %c0_187 = arith.constant 0 : index
    %261 = vector.load %arg12[%c176, %c0_187] : memref<200x256xf32, #tpu.memory_space<vmem>>, vector<8x256xf32>
    tpu.vector_store %arg12[%c176, %c0_187], %260 {strides = array<i32>} : memref<200x256xf32, #tpu.memory_space<vmem>>, vector<8x256xf32>,
    %c0_188 = arith.constant 0 : index
    %c67 = arith.constant 67 : index
    %262 = vector.load %arg11[%c0_188, %c67] : memref<8x358xf32, #tpu.memory_space<vmem>>, vector<8x256xf32>
    %263 = vector.broadcast %172 : vector<1x256xf32> to vector<8x256xf32>
    %264 = arith.mulf %262, %263 : vector<8x256xf32>
    %c184 = arith.constant 184 : index
    %c0_189 = arith.constant 0 : index
    %265 = vector.load %arg12[%c184, %c0_189] : memref<200x256xf32, #tpu.memory_space<vmem>>, vector<8x256xf32>
    tpu.vector_store %arg12[%c184, %c0_189], %264 {strides = array<i32>} : memref<200x256xf32, #tpu.memory_space<vmem>>, vector<8x256xf32>,
    %c0_190 = arith.constant 0 : index
    %c68 = arith.constant 68 : index
    %266 = vector.load %arg11[%c0_190, %c68] : memref<8x358xf32, #tpu.memory_space<vmem>>, vector<8x256xf32>
    %267 = vector.broadcast %179 : vector<1x256xf32> to vector<8x256xf32>
    %268 = arith.mulf %266, %267 : vector<8x256xf32>
    %c192 = arith.constant 192 : index
    %c0_191 = arith.constant 0 : index
    %269 = vector.load %arg12[%c192, %c0_191] : memref<200x256xf32, #tpu.memory_space<vmem>>, vector<8x256xf32>
    tpu.vector_store %arg12[%c192, %c0_191], %268 {strides = array<i32>} : memref<200x256xf32, #tpu.memory_space<vmem>>, vector<8x256xf32>,
    %c0_192 = arith.constant 0 : index
    %c0_193 = arith.constant 0 : index
    %270 = vector.load %arg12[%c0_192, %c0_193] : memref<200x256xf32, #tpu.memory_space<vmem>>, vector<200x256xf32>
    %c0_194 = arith.constant 0 : index
    %c0_195 = arith.constant 0 : index
    %271 = vector.load %arg5[%c0_194, %c0_195] : memref<4x200xf32, #tpu.memory_space<vmem>>, vector<4x200xf32>
    %cst_196 = arith.constant dense<0.000000e+00> : vector<4x256xf32>
    %272 = tpu.matmul %271, %270, %cst_196 {dimension_numbers = #tpu.dot_dimension_numbers<[1], [0], [0], [1], [0, 0, 1, 1], [], []>} : vector<4x200xf32>, vector<200x256xf32>, vector<4x256xf32> -> vector<4x256xf32>
    %cst_197 = arith.constant dense<0.000000e+00> : vector<4xf32>
    %273 = vector.multi_reduction <add>, %272, %cst_197 [1] : vector<4x256xf32> to vector<4xf32>
    %274 = vector.shape_cast %273 : vector<4xf32> to vector<4x1xf32>
    %cst_198 = arith.constant 2.560000e+02 : f32
    %275 = vector.broadcast %cst_198 : f32 to vector<4x1xf32>
    %276 = arith.divf %274, %275 : vector<4x1xf32>
    %277 = vector.broadcast %276 : vector<4x1xf32> to vector<4x256xf32>
    %278 = arith.subf %272, %277 : vector<4x256xf32>
    %279 = arith.mulf %278, %278 : vector<4x256xf32>
    %cst_199 = arith.constant dense<0.000000e+00> : vector<4xf32>
    %280 = vector.multi_reduction <add>, %279, %cst_199 [1] : vector<4x256xf32> to vector<4xf32>
    %281 = vector.shape_cast %280 : vector<4xf32> to vector<4x1xf32>
    %cst_200 = arith.constant 2.560000e+02 : f32
    %282 = vector.broadcast %cst_200 : f32 to vector<4x1xf32>
    %283 = arith.divf %281, %282 : vector<4x1xf32>
    %284 = vector.broadcast %276 : vector<4x1xf32> to vector<4x256xf32>
    %285 = arith.subf %272, %284 : vector<4x256xf32>
    %cst_201 = arith.constant 9.99999974E-6 : f32
    %286 = vector.broadcast %cst_201 : f32 to vector<4x1xf32>
    %287 = arith.addf %283, %286 : vector<4x1xf32>
    %288 = math.rsqrt %287 : vector<4x1xf32>
    %289 = vector.broadcast %288 : vector<4x1xf32> to vector<4x256xf32>
    %290 = arith.mulf %285, %289 : vector<4x256xf32>
    %cst_202 = arith.constant 0.000000e+00 : f32
    %291 = vector.broadcast %cst_202 : f32 to vector<4x256xf32>
    %292 = arith.maximumf %290, %291 : vector<4x256xf32>
    %cst_203 = arith.constant 0.000000e+00 : f32
    %293 = vector.broadcast %cst_203 : f32 to vector<4x51xf32>
    %c0_204 = arith.constant 0 : index
    %c0_205 = arith.constant 0 : index
    %294 = vector.load %arg11[%c0_204, %c0_205] : memref<8x358xf32, #tpu.memory_space<vmem>>, vector<4x51xf32>
    tpu.vector_store %arg11[%c0_204, %c0_205], %293 {strides = array<i32>} : memref<8x358xf32, #tpu.memory_space<vmem>>, vector<4x51xf32>,
    %c0_206 = arith.constant 0 : index
    %c51_207 = arith.constant 51 : index
    %295 = vector.load %arg11[%c0_206, %c51_207] : memref<8x358xf32, #tpu.memory_space<vmem>>, vector<4x256xf32>
    tpu.vector_store %arg11[%c0_206, %c51_207], %292 {strides = array<i32>} : memref<8x358xf32, #tpu.memory_space<vmem>>, vector<4x256xf32>,
    %c0_208 = arith.constant 0 : index
    %c307 = arith.constant 307 : index
    %296 = vector.load %arg11[%c0_208, %c307] : memref<8x358xf32, #tpu.memory_space<vmem>>, vector<4x51xf32>
    tpu.vector_store %arg11[%c0_208, %c307], %293 {strides = array<i32>} : memref<8x358xf32, #tpu.memory_space<vmem>>, vector<4x51xf32>,
    %c0_209 = arith.constant 0 : index
    %c0_210 = arith.constant 0 : index
    %297 = vector.load %arg9[%c0_209, %c0_210] : memref<1x256xf32, #tpu.memory_space<vmem>>, vector<1x256xf32>
    %cst_211 = arith.constant 3.000000e+00 : f32
    %298 = vector.broadcast %cst_211 : f32 to vector<1x256xf32>
    %299 = arith.cmpf oge, %297, %298 : vector<1x256xf32>
    %cst_212 = arith.constant 1.900000e+01 : f32
    %300 = vector.broadcast %cst_212 : f32 to vector<1x256xf32>
    %301 = arith.cmpf olt, %297, %300 : vector<1x256xf32>
    %302 = arith.andi %299, %301 : vector<1x256xi1>
    %303 = arith.extui %302 : vector<1x256xi1> to vector<1x256xi32>
    %304 = arith.sitofp %303 : vector<1x256xi32> to vector<1x256xf32>
    %cst_213 = arith.constant 2.000000e+00 : f32
    %305 = vector.broadcast %cst_213 : f32 to vector<1x256xf32>
    %306 = arith.cmpf oge, %297, %305 : vector<1x256xf32>
    %cst_214 = arith.constant 1.800000e+01 : f32
    %307 = vector.broadcast %cst_214 : f32 to vector<1x256xf32>
    %308 = arith.cmpf olt, %297, %307 : vector<1x256xf32>
    %309 = arith.andi %306, %308 : vector<1x256xi1>
    %310 = arith.extui %309 : vector<1x256xi1> to vector<1x256xi32>
    %311 = arith.sitofp %310 : vector<1x256xi32> to vector<1x256xf32>
    %cst_215 = arith.constant 1.000000e+00 : f32
    %312 = vector.broadcast %cst_215 : f32 to vector<1x256xf32>
    %313 = arith.cmpf oge, %297, %312 : vector<1x256xf32>
    %cst_216 = arith.constant 1.700000e+01 : f32
    %314 = vector.broadcast %cst_216 : f32 to vector<1x256xf32>
    %315 = arith.cmpf olt, %297, %314 : vector<1x256xf32>
    %316 = arith.andi %313, %315 : vector<1x256xi1>
    %317 = arith.extui %316 : vector<1x256xi1> to vector<1x256xi32>
    %318 = arith.sitofp %317 : vector<1x256xi32> to vector<1x256xf32>
    %cst_217 = arith.constant -1.000000e+00 : f32
    %319 = vector.broadcast %cst_217 : f32 to vector<1x256xf32>
    %320 = arith.cmpf oge, %297, %319 : vector<1x256xf32>
    %cst_218 = arith.constant 1.500000e+01 : f32
    %321 = vector.broadcast %cst_218 : f32 to vector<1x256xf32>
    %322 = arith.cmpf olt, %297, %321 : vector<1x256xf32>
    %323 = arith.andi %320, %322 : vector<1x256xi1>
    %324 = arith.extui %323 : vector<1x256xi1> to vector<1x256xi32>
    %325 = arith.sitofp %324 : vector<1x256xi32> to vector<1x256xf32>
    %cst_219 = arith.constant -2.000000e+00 : f32
    %326 = vector.broadcast %cst_219 : f32 to vector<1x256xf32>
    %327 = arith.cmpf oge, %297, %326 : vector<1x256xf32>
    %cst_220 = arith.constant 1.400000e+01 : f32
    %328 = vector.broadcast %cst_220 : f32 to vector<1x256xf32>
    %329 = arith.cmpf olt, %297, %328 : vector<1x256xf32>
    %330 = arith.andi %327, %329 : vector<1x256xi1>
    %331 = arith.extui %330 : vector<1x256xi1> to vector<1x256xi32>
    %332 = arith.sitofp %331 : vector<1x256xi32> to vector<1x256xf32>
    %cst_221 = arith.constant -3.000000e+00 : f32
    %333 = vector.broadcast %cst_221 : f32 to vector<1x256xf32>
    %334 = arith.cmpf oge, %297, %333 : vector<1x256xf32>
    %cst_222 = arith.constant 1.300000e+01 : f32
    %335 = vector.broadcast %cst_222 : f32 to vector<1x256xf32>
    %336 = arith.cmpf olt, %297, %335 : vector<1x256xf32>
    %337 = arith.andi %334, %336 : vector<1x256xi1>
    %338 = arith.extui %337 : vector<1x256xi1> to vector<1x256xi32>
    %339 = arith.sitofp %338 : vector<1x256xi32> to vector<1x256xf32>
    %c0_223 = arith.constant 0 : index
    %c0_224 = arith.constant 0 : index
    %340 = vector.load %arg11[%c0_223, %c0_224] : memref<8x358xf32, #tpu.memory_space<vmem>>, vector<4x256xf32>
    %341 = vector.broadcast %304 : vector<1x256xf32> to vector<4x256xf32>
    %342 = arith.mulf %340, %341 : vector<4x256xf32>
    %c0_225 = arith.constant 0 : index
    %c0_226 = arith.constant 0 : index
    %343 = vector.load %arg12[%c0_225, %c0_226] : memref<200x256xf32, #tpu.memory_space<vmem>>, vector<4x256xf32>
    tpu.vector_store %arg12[%c0_225, %c0_226], %342 {strides = array<i32>} : memref<200x256xf32, #tpu.memory_space<vmem>>, vector<4x256xf32>,
    %c0_227 = arith.constant 0 : index
    %c1_228 = arith.constant 1 : index
    %344 = vector.load %arg11[%c0_227, %c1_228] : memref<8x358xf32, #tpu.memory_space<vmem>>, vector<4x256xf32>
    %345 = vector.broadcast %311 : vector<1x256xf32> to vector<4x256xf32>
    %346 = arith.mulf %344, %345 : vector<4x256xf32>
    %c4_229 = arith.constant 4 : index
    %c0_230 = arith.constant 0 : index
    %347 = vector.load %arg12[%c4_229, %c0_230] : memref<200x256xf32, #tpu.memory_space<vmem>>, vector<4x256xf32>
    tpu.vector_store %arg12[%c4_229, %c0_230], %346 {strides = array<i32>} : memref<200x256xf32, #tpu.memory_space<vmem>>, vector<4x256xf32>,
    %c0_231 = arith.constant 0 : index
    %c2_232 = arith.constant 2 : index
    %348 = vector.load %arg11[%c0_231, %c2_232] : memref<8x358xf32, #tpu.memory_space<vmem>>, vector<4x256xf32>
    %349 = vector.broadcast %318 : vector<1x256xf32> to vector<4x256xf32>
    %350 = arith.mulf %348, %349 : vector<4x256xf32>
    %c8_233 = arith.constant 8 : index
    %c0_234 = arith.constant 0 : index
    %351 = vector.load %arg12[%c8_233, %c0_234] : memref<200x256xf32, #tpu.memory_space<vmem>>, vector<4x256xf32>
    tpu.vector_store %arg12[%c8_233, %c0_234], %350 {strides = array<i32>} : memref<200x256xf32, #tpu.memory_space<vmem>>, vector<4x256xf32>,
    %c0_235 = arith.constant 0 : index
    %c3_236 = arith.constant 3 : index
    %352 = vector.load %arg11[%c0_235, %c3_236] : memref<8x358xf32, #tpu.memory_space<vmem>>, vector<4x256xf32>
    %c12 = arith.constant 12 : index
    %c0_237 = arith.constant 0 : index
    %353 = vector.load %arg12[%c12, %c0_237] : memref<200x256xf32, #tpu.memory_space<vmem>>, vector<4x256xf32>
    tpu.vector_store %arg12[%c12, %c0_237], %352 {strides = array<i32>} : memref<200x256xf32, #tpu.memory_space<vmem>>, vector<4x256xf32>,
    %c0_238 = arith.constant 0 : index
    %c4_239 = arith.constant 4 : index
    %354 = vector.load %arg11[%c0_238, %c4_239] : memref<8x358xf32, #tpu.memory_space<vmem>>, vector<4x256xf32>
    %355 = vector.broadcast %325 : vector<1x256xf32> to vector<4x256xf32>
    %356 = arith.mulf %354, %355 : vector<4x256xf32>
    %c16_240 = arith.constant 16 : index
    %c0_241 = arith.constant 0 : index
    %357 = vector.load %arg12[%c16_240, %c0_241] : memref<200x256xf32, #tpu.memory_space<vmem>>, vector<4x256xf32>
    tpu.vector_store %arg12[%c16_240, %c0_241], %356 {strides = array<i32>} : memref<200x256xf32, #tpu.memory_space<vmem>>, vector<4x256xf32>,
    %c0_242 = arith.constant 0 : index
    %c5 = arith.constant 5 : index
    %358 = vector.load %arg11[%c0_242, %c5] : memref<8x358xf32, #tpu.memory_space<vmem>>, vector<4x256xf32>
    %359 = vector.broadcast %332 : vector<1x256xf32> to vector<4x256xf32>
    %360 = arith.mulf %358, %359 : vector<4x256xf32>
    %c20_243 = arith.constant 20 : index
    %c0_244 = arith.constant 0 : index
    %361 = vector.load %arg12[%c20_243, %c0_244] : memref<200x256xf32, #tpu.memory_space<vmem>>, vector<4x256xf32>
    tpu.vector_store %arg12[%c20_243, %c0_244], %360 {strides = array<i32>} : memref<200x256xf32, #tpu.memory_space<vmem>>, vector<4x256xf32>,
    %c0_245 = arith.constant 0 : index
    %c6 = arith.constant 6 : index
    %362 = vector.load %arg11[%c0_245, %c6] : memref<8x358xf32, #tpu.memory_space<vmem>>, vector<4x256xf32>
    %363 = vector.broadcast %339 : vector<1x256xf32> to vector<4x256xf32>
    %364 = arith.mulf %362, %363 : vector<4x256xf32>
    %c24_246 = arith.constant 24 : index
    %c0_247 = arith.constant 0 : index
    %365 = vector.load %arg12[%c24_246, %c0_247] : memref<200x256xf32, #tpu.memory_space<vmem>>, vector<4x256xf32>
    tpu.vector_store %arg12[%c24_246, %c0_247], %364 {strides = array<i32>} : memref<200x256xf32, #tpu.memory_space<vmem>>, vector<4x256xf32>,
    %c0_248 = arith.constant 0 : index
    %c16_249 = arith.constant 16 : index
    %366 = vector.load %arg11[%c0_248, %c16_249] : memref<8x358xf32, #tpu.memory_space<vmem>>, vector<4x256xf32>
    %367 = vector.broadcast %304 : vector<1x256xf32> to vector<4x256xf32>
    %368 = arith.mulf %366, %367 : vector<4x256xf32>
    %c28 = arith.constant 28 : index
    %c0_250 = arith.constant 0 : index
    %369 = vector.load %arg12[%c28, %c0_250] : memref<200x256xf32, #tpu.memory_space<vmem>>, vector<4x256xf32>
    tpu.vector_store %arg12[%c28, %c0_250], %368 {strides = array<i32>} : memref<200x256xf32, #tpu.memory_space<vmem>>, vector<4x256xf32>,
    %c0_251 = arith.constant 0 : index
    %c17_252 = arith.constant 17 : index
    %370 = vector.load %arg11[%c0_251, %c17_252] : memref<8x358xf32, #tpu.memory_space<vmem>>, vector<4x256xf32>
    %371 = vector.broadcast %311 : vector<1x256xf32> to vector<4x256xf32>
    %372 = arith.mulf %370, %371 : vector<4x256xf32>
    %c32_253 = arith.constant 32 : index
    %c0_254 = arith.constant 0 : index
    %373 = vector.load %arg12[%c32_253, %c0_254] : memref<200x256xf32, #tpu.memory_space<vmem>>, vector<4x256xf32>
    tpu.vector_store %arg12[%c32_253, %c0_254], %372 {strides = array<i32>} : memref<200x256xf32, #tpu.memory_space<vmem>>, vector<4x256xf32>,
    %c0_255 = arith.constant 0 : index
    %c18_256 = arith.constant 18 : index
    %374 = vector.load %arg11[%c0_255, %c18_256] : memref<8x358xf32, #tpu.memory_space<vmem>>, vector<4x256xf32>
    %375 = vector.broadcast %318 : vector<1x256xf32> to vector<4x256xf32>
    %376 = arith.mulf %374, %375 : vector<4x256xf32>
    %c36_257 = arith.constant 36 : index
    %c0_258 = arith.constant 0 : index
    %377 = vector.load %arg12[%c36_257, %c0_258] : memref<200x256xf32, #tpu.memory_space<vmem>>, vector<4x256xf32>
    tpu.vector_store %arg12[%c36_257, %c0_258], %376 {strides = array<i32>} : memref<200x256xf32, #tpu.memory_space<vmem>>, vector<4x256xf32>,
    %c0_259 = arith.constant 0 : index
    %c19_260 = arith.constant 19 : index
    %378 = vector.load %arg11[%c0_259, %c19_260] : memref<8x358xf32, #tpu.memory_space<vmem>>, vector<4x256xf32>
    %c40_261 = arith.constant 40 : index
    %c0_262 = arith.constant 0 : index
    %379 = vector.load %arg12[%c40_261, %c0_262] : memref<200x256xf32, #tpu.memory_space<vmem>>, vector<4x256xf32>
    tpu.vector_store %arg12[%c40_261, %c0_262], %378 {strides = array<i32>} : memref<200x256xf32, #tpu.memory_space<vmem>>, vector<4x256xf32>,
    %c0_263 = arith.constant 0 : index
    %c20_264 = arith.constant 20 : index
    %380 = vector.load %arg11[%c0_263, %c20_264] : memref<8x358xf32, #tpu.memory_space<vmem>>, vector<4x256xf32>
    %381 = vector.broadcast %325 : vector<1x256xf32> to vector<4x256xf32>
    %382 = arith.mulf %380, %381 : vector<4x256xf32>
    %c44 = arith.constant 44 : index
    %c0_265 = arith.constant 0 : index
    %383 = vector.load %arg12[%c44, %c0_265] : memref<200x256xf32, #tpu.memory_space<vmem>>, vector<4x256xf32>
    tpu.vector_store %arg12[%c44, %c0_265], %382 {strides = array<i32>} : memref<200x256xf32, #tpu.memory_space<vmem>>, vector<4x256xf32>,
    %c0_266 = arith.constant 0 : index
    %c21 = arith.constant 21 : index
    %384 = vector.load %arg11[%c0_266, %c21] : memref<8x358xf32, #tpu.memory_space<vmem>>, vector<4x256xf32>
    %385 = vector.broadcast %332 : vector<1x256xf32> to vector<4x256xf32>
    %386 = arith.mulf %384, %385 : vector<4x256xf32>
    %c48_267 = arith.constant 48 : index
    %c0_268 = arith.constant 0 : index
    %387 = vector.load %arg12[%c48_267, %c0_268] : memref<200x256xf32, #tpu.memory_space<vmem>>, vector<4x256xf32>
    tpu.vector_store %arg12[%c48_267, %c0_268], %386 {strides = array<i32>} : memref<200x256xf32, #tpu.memory_space<vmem>>, vector<4x256xf32>,
    %c0_269 = arith.constant 0 : index
    %c22 = arith.constant 22 : index
    %388 = vector.load %arg11[%c0_269, %c22] : memref<8x358xf32, #tpu.memory_space<vmem>>, vector<4x256xf32>
    %389 = vector.broadcast %339 : vector<1x256xf32> to vector<4x256xf32>
    %390 = arith.mulf %388, %389 : vector<4x256xf32>
    %c52_270 = arith.constant 52 : index
    %c0_271 = arith.constant 0 : index
    %391 = vector.load %arg12[%c52_270, %c0_271] : memref<200x256xf32, #tpu.memory_space<vmem>>, vector<4x256xf32>
    tpu.vector_store %arg12[%c52_270, %c0_271], %390 {strides = array<i32>} : memref<200x256xf32, #tpu.memory_space<vmem>>, vector<4x256xf32>,
    %c0_272 = arith.constant 0 : index
    %c32_273 = arith.constant 32 : index
    %392 = vector.load %arg11[%c0_272, %c32_273] : memref<8x358xf32, #tpu.memory_space<vmem>>, vector<4x256xf32>
    %393 = vector.broadcast %304 : vector<1x256xf32> to vector<4x256xf32>
    %394 = arith.mulf %392, %393 : vector<4x256xf32>
    %c56_274 = arith.constant 56 : index
    %c0_275 = arith.constant 0 : index
    %395 = vector.load %arg12[%c56_274, %c0_275] : memref<200x256xf32, #tpu.memory_space<vmem>>, vector<4x256xf32>
    tpu.vector_store %arg12[%c56_274, %c0_275], %394 {strides = array<i32>} : memref<200x256xf32, #tpu.memory_space<vmem>>, vector<4x256xf32>,
    %c0_276 = arith.constant 0 : index
    %c33_277 = arith.constant 33 : index
    %396 = vector.load %arg11[%c0_276, %c33_277] : memref<8x358xf32, #tpu.memory_space<vmem>>, vector<4x256xf32>
    %397 = vector.broadcast %311 : vector<1x256xf32> to vector<4x256xf32>
    %398 = arith.mulf %396, %397 : vector<4x256xf32>
    %c60 = arith.constant 60 : index
    %c0_278 = arith.constant 0 : index
    %399 = vector.load %arg12[%c60, %c0_278] : memref<200x256xf32, #tpu.memory_space<vmem>>, vector<4x256xf32>
    tpu.vector_store %arg12[%c60, %c0_278], %398 {strides = array<i32>} : memref<200x256xf32, #tpu.memory_space<vmem>>, vector<4x256xf32>,
    %c0_279 = arith.constant 0 : index
    %c34_280 = arith.constant 34 : index
    %400 = vector.load %arg11[%c0_279, %c34_280] : memref<8x358xf32, #tpu.memory_space<vmem>>, vector<4x256xf32>
    %401 = vector.broadcast %318 : vector<1x256xf32> to vector<4x256xf32>
    %402 = arith.mulf %400, %401 : vector<4x256xf32>
    %c64_281 = arith.constant 64 : index
    %c0_282 = arith.constant 0 : index
    %403 = vector.load %arg12[%c64_281, %c0_282] : memref<200x256xf32, #tpu.memory_space<vmem>>, vector<4x256xf32>
    tpu.vector_store %arg12[%c64_281, %c0_282], %402 {strides = array<i32>} : memref<200x256xf32, #tpu.memory_space<vmem>>, vector<4x256xf32>,
    %c0_283 = arith.constant 0 : index
    %c35_284 = arith.constant 35 : index
    %404 = vector.load %arg11[%c0_283, %c35_284] : memref<8x358xf32, #tpu.memory_space<vmem>>, vector<4x256xf32>
    %c68_285 = arith.constant 68 : index
    %c0_286 = arith.constant 0 : index
    %405 = vector.load %arg12[%c68_285, %c0_286] : memref<200x256xf32, #tpu.memory_space<vmem>>, vector<4x256xf32>
    tpu.vector_store %arg12[%c68_285, %c0_286], %404 {strides = array<i32>} : memref<200x256xf32, #tpu.memory_space<vmem>>, vector<4x256xf32>,
    %c0_287 = arith.constant 0 : index
    %c36_288 = arith.constant 36 : index
    %406 = vector.load %arg11[%c0_287, %c36_288] : memref<8x358xf32, #tpu.memory_space<vmem>>, vector<4x256xf32>
    %407 = vector.broadcast %325 : vector<1x256xf32> to vector<4x256xf32>
    %408 = arith.mulf %406, %407 : vector<4x256xf32>
    %c72_289 = arith.constant 72 : index
    %c0_290 = arith.constant 0 : index
    %409 = vector.load %arg12[%c72_289, %c0_290] : memref<200x256xf32, #tpu.memory_space<vmem>>, vector<4x256xf32>
    tpu.vector_store %arg12[%c72_289, %c0_290], %408 {strides = array<i32>} : memref<200x256xf32, #tpu.memory_space<vmem>>, vector<4x256xf32>,
    %c0_291 = arith.constant 0 : index
    %c37 = arith.constant 37 : index
    %410 = vector.load %arg11[%c0_291, %c37] : memref<8x358xf32, #tpu.memory_space<vmem>>, vector<4x256xf32>
    %411 = vector.broadcast %332 : vector<1x256xf32> to vector<4x256xf32>
    %412 = arith.mulf %410, %411 : vector<4x256xf32>
    %c76 = arith.constant 76 : index
    %c0_292 = arith.constant 0 : index
    %413 = vector.load %arg12[%c76, %c0_292] : memref<200x256xf32, #tpu.memory_space<vmem>>, vector<4x256xf32>
    tpu.vector_store %arg12[%c76, %c0_292], %412 {strides = array<i32>} : memref<200x256xf32, #tpu.memory_space<vmem>>, vector<4x256xf32>,
    %c0_293 = arith.constant 0 : index
    %c38 = arith.constant 38 : index
    %414 = vector.load %arg11[%c0_293, %c38] : memref<8x358xf32, #tpu.memory_space<vmem>>, vector<4x256xf32>
    %415 = vector.broadcast %339 : vector<1x256xf32> to vector<4x256xf32>
    %416 = arith.mulf %414, %415 : vector<4x256xf32>
    %c80_294 = arith.constant 80 : index
    %c0_295 = arith.constant 0 : index
    %417 = vector.load %arg12[%c80_294, %c0_295] : memref<200x256xf32, #tpu.memory_space<vmem>>, vector<4x256xf32>
    tpu.vector_store %arg12[%c80_294, %c0_295], %416 {strides = array<i32>} : memref<200x256xf32, #tpu.memory_space<vmem>>, vector<4x256xf32>,
    %c0_296 = arith.constant 0 : index
    %c48_297 = arith.constant 48 : index
    %418 = vector.load %arg11[%c0_296, %c48_297] : memref<8x358xf32, #tpu.memory_space<vmem>>, vector<4x256xf32>
    %419 = vector.broadcast %304 : vector<1x256xf32> to vector<4x256xf32>
    %420 = arith.mulf %418, %419 : vector<4x256xf32>
    %c84 = arith.constant 84 : index
    %c0_298 = arith.constant 0 : index
    %421 = vector.load %arg12[%c84, %c0_298] : memref<200x256xf32, #tpu.memory_space<vmem>>, vector<4x256xf32>
    tpu.vector_store %arg12[%c84, %c0_298], %420 {strides = array<i32>} : memref<200x256xf32, #tpu.memory_space<vmem>>, vector<4x256xf32>,
    %c0_299 = arith.constant 0 : index
    %c49_300 = arith.constant 49 : index
    %422 = vector.load %arg11[%c0_299, %c49_300] : memref<8x358xf32, #tpu.memory_space<vmem>>, vector<4x256xf32>
    %423 = vector.broadcast %311 : vector<1x256xf32> to vector<4x256xf32>
    %424 = arith.mulf %422, %423 : vector<4x256xf32>
    %c88_301 = arith.constant 88 : index
    %c0_302 = arith.constant 0 : index
    %425 = vector.load %arg12[%c88_301, %c0_302] : memref<200x256xf32, #tpu.memory_space<vmem>>, vector<4x256xf32>
    tpu.vector_store %arg12[%c88_301, %c0_302], %424 {strides = array<i32>} : memref<200x256xf32, #tpu.memory_space<vmem>>, vector<4x256xf32>,
    %c0_303 = arith.constant 0 : index
    %c50_304 = arith.constant 50 : index
    %426 = vector.load %arg11[%c0_303, %c50_304] : memref<8x358xf32, #tpu.memory_space<vmem>>, vector<4x256xf32>
    %427 = vector.broadcast %318 : vector<1x256xf32> to vector<4x256xf32>
    %428 = arith.mulf %426, %427 : vector<4x256xf32>
    %c92 = arith.constant 92 : index
    %c0_305 = arith.constant 0 : index
    %429 = vector.load %arg12[%c92, %c0_305] : memref<200x256xf32, #tpu.memory_space<vmem>>, vector<4x256xf32>
    tpu.vector_store %arg12[%c92, %c0_305], %428 {strides = array<i32>} : memref<200x256xf32, #tpu.memory_space<vmem>>, vector<4x256xf32>,
    %c0_306 = arith.constant 0 : index
    %c51_307 = arith.constant 51 : index
    %430 = vector.load %arg11[%c0_306, %c51_307] : memref<8x358xf32, #tpu.memory_space<vmem>>, vector<4x256xf32>
    %c96_308 = arith.constant 96 : index
    %c0_309 = arith.constant 0 : index
    %431 = vector.load %arg12[%c96_308, %c0_309] : memref<200x256xf32, #tpu.memory_space<vmem>>, vector<4x256xf32>
    tpu.vector_store %arg12[%c96_308, %c0_309], %430 {strides = array<i32>} : memref<200x256xf32, #tpu.memory_space<vmem>>, vector<4x256xf32>,
    %c0_310 = arith.constant 0 : index
    %c52_311 = arith.constant 52 : index
    %432 = vector.load %arg11[%c0_310, %c52_311] : memref<8x358xf32, #tpu.memory_space<vmem>>, vector<4x256xf32>
    %433 = vector.broadcast %325 : vector<1x256xf32> to vector<4x256xf32>
    %434 = arith.mulf %432, %433 : vector<4x256xf32>
    %c100 = arith.constant 100 : index
    %c0_312 = arith.constant 0 : index
    %435 = vector.load %arg12[%c100, %c0_312] : memref<200x256xf32, #tpu.memory_space<vmem>>, vector<4x256xf32>
    tpu.vector_store %arg12[%c100, %c0_312], %434 {strides = array<i32>} : memref<200x256xf32, #tpu.memory_space<vmem>>, vector<4x256xf32>,
    %c0_313 = arith.constant 0 : index
    %c53 = arith.constant 53 : index
    %436 = vector.load %arg11[%c0_313, %c53] : memref<8x358xf32, #tpu.memory_space<vmem>>, vector<4x256xf32>
    %437 = vector.broadcast %332 : vector<1x256xf32> to vector<4x256xf32>
    %438 = arith.mulf %436, %437 : vector<4x256xf32>
    %c104_314 = arith.constant 104 : index
    %c0_315 = arith.constant 0 : index
    %439 = vector.load %arg12[%c104_314, %c0_315] : memref<200x256xf32, #tpu.memory_space<vmem>>, vector<4x256xf32>
    tpu.vector_store %arg12[%c104_314, %c0_315], %438 {strides = array<i32>} : memref<200x256xf32, #tpu.memory_space<vmem>>, vector<4x256xf32>,
    %c0_316 = arith.constant 0 : index
    %c54 = arith.constant 54 : index
    %440 = vector.load %arg11[%c0_316, %c54] : memref<8x358xf32, #tpu.memory_space<vmem>>, vector<4x256xf32>
    %441 = vector.broadcast %339 : vector<1x256xf32> to vector<4x256xf32>
    %442 = arith.mulf %440, %441 : vector<4x256xf32>
    %c108 = arith.constant 108 : index
    %c0_317 = arith.constant 0 : index
    %443 = vector.load %arg12[%c108, %c0_317] : memref<200x256xf32, #tpu.memory_space<vmem>>, vector<4x256xf32>
    tpu.vector_store %arg12[%c108, %c0_317], %442 {strides = array<i32>} : memref<200x256xf32, #tpu.memory_space<vmem>>, vector<4x256xf32>,
    %c0_318 = arith.constant 0 : index
    %c64_319 = arith.constant 64 : index
    %444 = vector.load %arg11[%c0_318, %c64_319] : memref<8x358xf32, #tpu.memory_space<vmem>>, vector<4x256xf32>
    %445 = vector.broadcast %304 : vector<1x256xf32> to vector<4x256xf32>
    %446 = arith.mulf %444, %445 : vector<4x256xf32>
    %c112_320 = arith.constant 112 : index
    %c0_321 = arith.constant 0 : index
    %447 = vector.load %arg12[%c112_320, %c0_321] : memref<200x256xf32, #tpu.memory_space<vmem>>, vector<4x256xf32>
    tpu.vector_store %arg12[%c112_320, %c0_321], %446 {strides = array<i32>} : memref<200x256xf32, #tpu.memory_space<vmem>>, vector<4x256xf32>,
    %c0_322 = arith.constant 0 : index
    %c65_323 = arith.constant 65 : index
    %448 = vector.load %arg11[%c0_322, %c65_323] : memref<8x358xf32, #tpu.memory_space<vmem>>, vector<4x256xf32>
    %449 = vector.broadcast %311 : vector<1x256xf32> to vector<4x256xf32>
    %450 = arith.mulf %448, %449 : vector<4x256xf32>
    %c116 = arith.constant 116 : index
    %c0_324 = arith.constant 0 : index
    %451 = vector.load %arg12[%c116, %c0_324] : memref<200x256xf32, #tpu.memory_space<vmem>>, vector<4x256xf32>
    tpu.vector_store %arg12[%c116, %c0_324], %450 {strides = array<i32>} : memref<200x256xf32, #tpu.memory_space<vmem>>, vector<4x256xf32>,
    %c0_325 = arith.constant 0 : index
    %c66_326 = arith.constant 66 : index
    %452 = vector.load %arg11[%c0_325, %c66_326] : memref<8x358xf32, #tpu.memory_space<vmem>>, vector<4x256xf32>
    %453 = vector.broadcast %318 : vector<1x256xf32> to vector<4x256xf32>
    %454 = arith.mulf %452, %453 : vector<4x256xf32>
    %c120_327 = arith.constant 120 : index
    %c0_328 = arith.constant 0 : index
    %455 = vector.load %arg12[%c120_327, %c0_328] : memref<200x256xf32, #tpu.memory_space<vmem>>, vector<4x256xf32>
    tpu.vector_store %arg12[%c120_327, %c0_328], %454 {strides = array<i32>} : memref<200x256xf32, #tpu.memory_space<vmem>>, vector<4x256xf32>,
    %c0_329 = arith.constant 0 : index
    %c67_330 = arith.constant 67 : index
    %456 = vector.load %arg11[%c0_329, %c67_330] : memref<8x358xf32, #tpu.memory_space<vmem>>, vector<4x256xf32>
    %c124 = arith.constant 124 : index
    %c0_331 = arith.constant 0 : index
    %457 = vector.load %arg12[%c124, %c0_331] : memref<200x256xf32, #tpu.memory_space<vmem>>, vector<4x256xf32>
    tpu.vector_store %arg12[%c124, %c0_331], %456 {strides = array<i32>} : memref<200x256xf32, #tpu.memory_space<vmem>>, vector<4x256xf32>,
    %c0_332 = arith.constant 0 : index
    %c68_333 = arith.constant 68 : index
    %458 = vector.load %arg11[%c0_332, %c68_333] : memref<8x358xf32, #tpu.memory_space<vmem>>, vector<4x256xf32>
    %459 = vector.broadcast %325 : vector<1x256xf32> to vector<4x256xf32>
    %460 = arith.mulf %458, %459 : vector<4x256xf32>
    %c128_334 = arith.constant 128 : index
    %c0_335 = arith.constant 0 : index
    %461 = vector.load %arg12[%c128_334, %c0_335] : memref<200x256xf32, #tpu.memory_space<vmem>>, vector<4x256xf32>
    tpu.vector_store %arg12[%c128_334, %c0_335], %460 {strides = array<i32>} : memref<200x256xf32, #tpu.memory_space<vmem>>, vector<4x256xf32>,
    %c0_336 = arith.constant 0 : index
    %c69 = arith.constant 69 : index
    %462 = vector.load %arg11[%c0_336, %c69] : memref<8x358xf32, #tpu.memory_space<vmem>>, vector<4x256xf32>
    %463 = vector.broadcast %332 : vector<1x256xf32> to vector<4x256xf32>
    %464 = arith.mulf %462, %463 : vector<4x256xf32>
    %c132 = arith.constant 132 : index
    %c0_337 = arith.constant 0 : index
    %465 = vector.load %arg12[%c132, %c0_337] : memref<200x256xf32, #tpu.memory_space<vmem>>, vector<4x256xf32>
    tpu.vector_store %arg12[%c132, %c0_337], %464 {strides = array<i32>} : memref<200x256xf32, #tpu.memory_space<vmem>>, vector<4x256xf32>,
    %c0_338 = arith.constant 0 : index
    %c70 = arith.constant 70 : index
    %466 = vector.load %arg11[%c0_338, %c70] : memref<8x358xf32, #tpu.memory_space<vmem>>, vector<4x256xf32>
    %467 = vector.broadcast %339 : vector<1x256xf32> to vector<4x256xf32>
    %468 = arith.mulf %466, %467 : vector<4x256xf32>
    %c136_339 = arith.constant 136 : index
    %c0_340 = arith.constant 0 : index
    %469 = vector.load %arg12[%c136_339, %c0_340] : memref<200x256xf32, #tpu.memory_space<vmem>>, vector<4x256xf32>
    tpu.vector_store %arg12[%c136_339, %c0_340], %468 {strides = array<i32>} : memref<200x256xf32, #tpu.memory_space<vmem>>, vector<4x256xf32>,
    %c0_341 = arith.constant 0 : index
    %c80_342 = arith.constant 80 : index
    %470 = vector.load %arg11[%c0_341, %c80_342] : memref<8x358xf32, #tpu.memory_space<vmem>>, vector<4x256xf32>
    %471 = vector.broadcast %304 : vector<1x256xf32> to vector<4x256xf32>
    %472 = arith.mulf %470, %471 : vector<4x256xf32>
    %c140 = arith.constant 140 : index
    %c0_343 = arith.constant 0 : index
    %473 = vector.load %arg12[%c140, %c0_343] : memref<200x256xf32, #tpu.memory_space<vmem>>, vector<4x256xf32>
    tpu.vector_store %arg12[%c140, %c0_343], %472 {strides = array<i32>} : memref<200x256xf32, #tpu.memory_space<vmem>>, vector<4x256xf32>,
    %c0_344 = arith.constant 0 : index
    %c81 = arith.constant 81 : index
    %474 = vector.load %arg11[%c0_344, %c81] : memref<8x358xf32, #tpu.memory_space<vmem>>, vector<4x256xf32>
    %475 = vector.broadcast %311 : vector<1x256xf32> to vector<4x256xf32>
    %476 = arith.mulf %474, %475 : vector<4x256xf32>
    %c144_345 = arith.constant 144 : index
    %c0_346 = arith.constant 0 : index
    %477 = vector.load %arg12[%c144_345, %c0_346] : memref<200x256xf32, #tpu.memory_space<vmem>>, vector<4x256xf32>
    tpu.vector_store %arg12[%c144_345, %c0_346], %476 {strides = array<i32>} : memref<200x256xf32, #tpu.memory_space<vmem>>, vector<4x256xf32>,
    %c0_347 = arith.constant 0 : index
    %c82 = arith.constant 82 : index
    %478 = vector.load %arg11[%c0_347, %c82] : memref<8x358xf32, #tpu.memory_space<vmem>>, vector<4x256xf32>
    %479 = vector.broadcast %318 : vector<1x256xf32> to vector<4x256xf32>
    %480 = arith.mulf %478, %479 : vector<4x256xf32>
    %c148 = arith.constant 148 : index
    %c0_348 = arith.constant 0 : index
    %481 = vector.load %arg12[%c148, %c0_348] : memref<200x256xf32, #tpu.memory_space<vmem>>, vector<4x256xf32>
    tpu.vector_store %arg12[%c148, %c0_348], %480 {strides = array<i32>} : memref<200x256xf32, #tpu.memory_space<vmem>>, vector<4x256xf32>,
    %c0_349 = arith.constant 0 : index
    %c83 = arith.constant 83 : index
    %482 = vector.load %arg11[%c0_349, %c83] : memref<8x358xf32, #tpu.memory_space<vmem>>, vector<4x256xf32>
    %c152_350 = arith.constant 152 : index
    %c0_351 = arith.constant 0 : index
    %483 = vector.load %arg12[%c152_350, %c0_351] : memref<200x256xf32, #tpu.memory_space<vmem>>, vector<4x256xf32>
    tpu.vector_store %arg12[%c152_350, %c0_351], %482 {strides = array<i32>} : memref<200x256xf32, #tpu.memory_space<vmem>>, vector<4x256xf32>,
    %c0_352 = arith.constant 0 : index
    %c84_353 = arith.constant 84 : index
    %484 = vector.load %arg11[%c0_352, %c84_353] : memref<8x358xf32, #tpu.memory_space<vmem>>, vector<4x256xf32>
    %485 = vector.broadcast %325 : vector<1x256xf32> to vector<4x256xf32>
    %486 = arith.mulf %484, %485 : vector<4x256xf32>
    %c156 = arith.constant 156 : index
    %c0_354 = arith.constant 0 : index
    %487 = vector.load %arg12[%c156, %c0_354] : memref<200x256xf32, #tpu.memory_space<vmem>>, vector<4x256xf32>
    tpu.vector_store %arg12[%c156, %c0_354], %486 {strides = array<i32>} : memref<200x256xf32, #tpu.memory_space<vmem>>, vector<4x256xf32>,
    %c0_355 = arith.constant 0 : index
    %c85 = arith.constant 85 : index
    %488 = vector.load %arg11[%c0_355, %c85] : memref<8x358xf32, #tpu.memory_space<vmem>>, vector<4x256xf32>
    %489 = vector.broadcast %332 : vector<1x256xf32> to vector<4x256xf32>
    %490 = arith.mulf %488, %489 : vector<4x256xf32>
    %c160_356 = arith.constant 160 : index
    %c0_357 = arith.constant 0 : index
    %491 = vector.load %arg12[%c160_356, %c0_357] : memref<200x256xf32, #tpu.memory_space<vmem>>, vector<4x256xf32>
    tpu.vector_store %arg12[%c160_356, %c0_357], %490 {strides = array<i32>} : memref<200x256xf32, #tpu.memory_space<vmem>>, vector<4x256xf32>,
    %c0_358 = arith.constant 0 : index
    %c86 = arith.constant 86 : index
    %492 = vector.load %arg11[%c0_358, %c86] : memref<8x358xf32, #tpu.memory_space<vmem>>, vector<4x256xf32>
    %493 = vector.broadcast %339 : vector<1x256xf32> to vector<4x256xf32>
    %494 = arith.mulf %492, %493 : vector<4x256xf32>
    %c164 = arith.constant 164 : index
    %c0_359 = arith.constant 0 : index
    %495 = vector.load %arg12[%c164, %c0_359] : memref<200x256xf32, #tpu.memory_space<vmem>>, vector<4x256xf32>
    tpu.vector_store %arg12[%c164, %c0_359], %494 {strides = array<i32>} : memref<200x256xf32, #tpu.memory_space<vmem>>, vector<4x256xf32>,
    %c0_360 = arith.constant 0 : index
    %c96_361 = arith.constant 96 : index
    %496 = vector.load %arg11[%c0_360, %c96_361] : memref<8x358xf32, #tpu.memory_space<vmem>>, vector<4x256xf32>
    %497 = vector.broadcast %304 : vector<1x256xf32> to vector<4x256xf32>
    %498 = arith.mulf %496, %497 : vector<4x256xf32>
    %c168_362 = arith.constant 168 : index
    %c0_363 = arith.constant 0 : index
    %499 = vector.load %arg12[%c168_362, %c0_363] : memref<200x256xf32, #tpu.memory_space<vmem>>, vector<4x256xf32>
    tpu.vector_store %arg12[%c168_362, %c0_363], %498 {strides = array<i32>} : memref<200x256xf32, #tpu.memory_space<vmem>>, vector<4x256xf32>,
    %c0_364 = arith.constant 0 : index
    %c97 = arith.constant 97 : index
    %500 = vector.load %arg11[%c0_364, %c97] : memref<8x358xf32, #tpu.memory_space<vmem>>, vector<4x256xf32>
    %501 = vector.broadcast %311 : vector<1x256xf32> to vector<4x256xf32>
    %502 = arith.mulf %500, %501 : vector<4x256xf32>
    %c172 = arith.constant 172 : index
    %c0_365 = arith.constant 0 : index
    %503 = vector.load %arg12[%c172, %c0_365] : memref<200x256xf32, #tpu.memory_space<vmem>>, vector<4x256xf32>
    tpu.vector_store %arg12[%c172, %c0_365], %502 {strides = array<i32>} : memref<200x256xf32, #tpu.memory_space<vmem>>, vector<4x256xf32>,
    %c0_366 = arith.constant 0 : index
    %c98 = arith.constant 98 : index
    %504 = vector.load %arg11[%c0_366, %c98] : memref<8x358xf32, #tpu.memory_space<vmem>>, vector<4x256xf32>
    %505 = vector.broadcast %318 : vector<1x256xf32> to vector<4x256xf32>
    %506 = arith.mulf %504, %505 : vector<4x256xf32>
    %c176_367 = arith.constant 176 : index
    %c0_368 = arith.constant 0 : index
    %507 = vector.load %arg12[%c176_367, %c0_368] : memref<200x256xf32, #tpu.memory_space<vmem>>, vector<4x256xf32>
    tpu.vector_store %arg12[%c176_367, %c0_368], %506 {strides = array<i32>} : memref<200x256xf32, #tpu.memory_space<vmem>>, vector<4x256xf32>,
    %c0_369 = arith.constant 0 : index
    %c99 = arith.constant 99 : index
    %508 = vector.load %arg11[%c0_369, %c99] : memref<8x358xf32, #tpu.memory_space<vmem>>, vector<4x256xf32>
    %c180 = arith.constant 180 : index
    %c0_370 = arith.constant 0 : index
    %509 = vector.load %arg12[%c180, %c0_370] : memref<200x256xf32, #tpu.memory_space<vmem>>, vector<4x256xf32>
    tpu.vector_store %arg12[%c180, %c0_370], %508 {strides = array<i32>} : memref<200x256xf32, #tpu.memory_space<vmem>>, vector<4x256xf32>,
    %c0_371 = arith.constant 0 : index
    %c100_372 = arith.constant 100 : index
    %510 = vector.load %arg11[%c0_371, %c100_372] : memref<8x358xf32, #tpu.memory_space<vmem>>, vector<4x256xf32>
    %511 = vector.broadcast %325 : vector<1x256xf32> to vector<4x256xf32>
    %512 = arith.mulf %510, %511 : vector<4x256xf32>
    %c184_373 = arith.constant 184 : index
    %c0_374 = arith.constant 0 : index
    %513 = vector.load %arg12[%c184_373, %c0_374] : memref<200x256xf32, #tpu.memory_space<vmem>>, vector<4x256xf32>
    tpu.vector_store %arg12[%c184_373, %c0_374], %512 {strides = array<i32>} : memref<200x256xf32, #tpu.memory_space<vmem>>, vector<4x256xf32>,
    %c0_375 = arith.constant 0 : index
    %c101 = arith.constant 101 : index
    %514 = vector.load %arg11[%c0_375, %c101] : memref<8x358xf32, #tpu.memory_space<vmem>>, vector<4x256xf32>
    %515 = vector.broadcast %332 : vector<1x256xf32> to vector<4x256xf32>
    %516 = arith.mulf %514, %515 : vector<4x256xf32>
    %c188 = arith.constant 188 : index
    %c0_376 = arith.constant 0 : index
    %517 = vector.load %arg12[%c188, %c0_376] : memref<200x256xf32, #tpu.memory_space<vmem>>, vector<4x256xf32>
    tpu.vector_store %arg12[%c188, %c0_376], %516 {strides = array<i32>} : memref<200x256xf32, #tpu.memory_space<vmem>>, vector<4x256xf32>,
    %c0_377 = arith.constant 0 : index
    %c102 = arith.constant 102 : index
    %518 = vector.load %arg11[%c0_377, %c102] : memref<8x358xf32, #tpu.memory_space<vmem>>, vector<4x256xf32>
    %519 = vector.broadcast %339 : vector<1x256xf32> to vector<4x256xf32>
    %520 = arith.mulf %518, %519 : vector<4x256xf32>
    %c192_378 = arith.constant 192 : index
    %c0_379 = arith.constant 0 : index
    %521 = vector.load %arg12[%c192_378, %c0_379] : memref<200x256xf32, #tpu.memory_space<vmem>>, vector<4x256xf32>
    tpu.vector_store %arg12[%c192_378, %c0_379], %520 {strides = array<i32>} : memref<200x256xf32, #tpu.memory_space<vmem>>, vector<4x256xf32>,
    %c0_380 = arith.constant 0 : index
    %c0_381 = arith.constant 0 : index
    %522 = vector.load %arg12[%c0_380, %c0_381] : memref<200x256xf32, #tpu.memory_space<vmem>>, vector<196x256xf32>
    %c0_382 = arith.constant 0 : index
    %c0_383 = arith.constant 0 : index
    %523 = vector.load %arg6[%c0_382, %c0_383] : memref<3x196xf32, #tpu.memory_space<vmem>>, vector<3x196xf32>
    %cst_384 = arith.constant dense<0.000000e+00> : vector<3x256xf32>
    %524 = tpu.matmul %523, %522, %cst_384 {dimension_numbers = #tpu.dot_dimension_numbers<[1], [0], [0], [1], [0, 0, 1, 1], [], []>} : vector<3x196xf32>, vector<196x256xf32>, vector<3x256xf32> -> vector<3x256xf32>
    %c0_385 = arith.constant 0 : index
    %c0_386 = arith.constant 0 : index
    %525 = vector.load %arg7[%c0_385, %c0_386] : memref<3x1xf32, #tpu.memory_space<vmem>>, vector<3x1xf32>
    %526 = vector.broadcast %525 : vector<3x1xf32> to vector<3x256xf32>
    %527 = arith.addf %524, %526 : vector<3x256xf32>
    %528 = math.tanh %527 : vector<3x256xf32>
    %c0_387 = arith.constant 0 : index
    %c0_388 = arith.constant 0 : index
    %c0_389 = arith.constant 0 : index
    %529 = vector.load %arg10[%c0_387, %c0_388, %c0_389] : memref<1x3x256xf32, #tpu.memory_space<vmem>>, vector<1x3x256xf32>
    %530 = vector.shape_cast %529 : vector<1x3x256xf32> to vector<3x256xf32>
    %531 = vector.shape_cast %528 : vector<3x256xf32> to vector<1x3x256xf32>
    tpu.vector_store %arg10[%c0_387, %c0_388, %c0_389], %531 {strides = array<i32>} : memref<1x3x256xf32, #tpu.memory_space<vmem>>, vector<1x3x256xf32>,
    return
  }
  func.func @transform_0(%arg0: i32) -> (i32, i32, i32) {
    %c0_i32 = arith.constant 0 : i32
    %c0_i32_0 = arith.constant 0 : i32
    %c0_i32_1 = arith.constant 0 : i32
    return %arg0, %c0_i32, %c0_i32_0 : i32, i32, i32
  }
  func.func @transform_1(%arg0: i32) -> (i32, i32) {
    %c0_i32 = arith.constant 0 : i32
    %c0_i32_0 = arith.constant 0 : i32
    %c0_i32_1 = arith.constant 0 : i32
    return %c0_i32, %c0_i32_0 : i32, i32
  }
  func.func @transform_2(%arg0: i32) -> (i32, i32) {
    %c0_i32 = arith.constant 0 : i32
    %c0_i32_0 = arith.constant 0 : i32
    %c0_i32_1 = arith.constant 0 : i32
    return %c0_i32, %c0_i32_0 : i32, i32
  }
  func.func @transform_3(%arg0: i32) -> (i32, i32) {
    %c0_i32 = arith.constant 0 : i32
    %c0_i32_0 = arith.constant 0 : i32
    %c0_i32_1 = arith.constant 0 : i32
    return %c0_i32, %c0_i32_0 : i32, i32
  }
  func.func @transform_4(%arg0: i32) -> (i32, i32) {
    %c0_i32 = arith.constant 0 : i32
    %c0_i32_0 = arith.constant 0 : i32
    %c0_i32_1 = arith.constant 0 : i32
    return %c0_i32, %c0_i32_0 : i32, i32
  }
  func.func @transform_5(%arg0: i32) -> (i32, i32) {
    %c0_i32 = arith.constant 0 : i32
    %c0_i32_0 = arith.constant 0 : i32
    %c0_i32_1 = arith.constant 0 : i32
    return %c0_i32, %c0_i32_0 : i32, i32
  }
  func.func @transform_6(%arg0: i32) -> (i32, i32) {
    %c0_i32 = arith.constant 0 : i32
    %c0_i32_0 = arith.constant 0 : i32
    %c0_i32_1 = arith.constant 0 : i32
    return %c0_i32, %c0_i32_0 : i32, i32
  }
  func.func @transform_7(%arg0: i32) -> (i32, i32) {
    %c0_i32 = arith.constant 0 : i32
    %c0_i32_0 = arith.constant 0 : i32
    %c0_i32_1 = arith.constant 0 : i32
    return %c0_i32, %c0_i32_0 : i32, i32
  }
  func.func @transform_8(%arg0: i32) -> (i32, i32) {
    %c0_i32 = arith.constant 0 : i32
    %c0_i32_0 = arith.constant 0 : i32
    %c0_i32_1 = arith.constant 0 : i32
    return %c0_i32, %c0_i32_0 : i32, i32
  }
  func.func @transform_9(%arg0: i32) -> (i32, i32, i32) {
    %c0_i32 = arith.constant 0 : i32
    %c0_i32_0 = arith.constant 0 : i32
    %c0_i32_1 = arith.constant 0 : i32
    return %arg0, %c0_i32, %c0_i32_0 : i32, i32, i32
  }
}

</mosaic_0001>

<bundles_post_ra>
// kernel: decoder_forward.1
= control target key start
LH: loop header
LB: loop body
LE: loop exit
PB: predicated region body
PF: predicated region fallthrough
CT: control target
= control target key end

     0   :  { %s4287_s30 = smov 0   ;;  %s5925_s0 = inlined_call_operand.vmem [shape: f32[2,8,64], index: 0, kind: input, shape index: {}]   ;;  %s5926_s1 = inlined_call_operand.vmem [shape: f32[8,72], index: 1, kind: input, shape index: {}]   ;;  %s5927_s2 = inlined_call_operand.vmem [shape: f32[8,72], index: 2, kind: input, shape index: {}]   ;;  %s5928_s3 = inlined_call_operand.vmem [shape: f32[64,256], index: 3, kind: input, shape index: {}]   ;;  %s5929_s4 = inlined_call_operand.vmem [shape: f32[4,200], index: 4, kind: input, shape index: {}]   ;;  %s5930_s5 = inlined_call_operand.vmem [shape: f32[3,196], index: 5, kind: input, shape index: {}]   ;;  %s5931_s6 = inlined_call_operand.vmem [shape: f32[3,1], index: 6, kind: input, shape index: {}]   ;;  %s5932_s7 = inlined_call_operand.vmem [shape: f32[1,64], index: 7, kind: input, shape index: {}]   ;;  %s5933_s8 = inlined_call_operand.vmem [shape: f32[1,256], index: 8, kind: input, shape index: {}]   ;;  %s5934_s9 = inlined_call_operand.vmem [shape: f32[2,3,256], index: 9, kind: output, shape index: {}]  }
   0x1 LB: > { %s3480_s10 = sadd.s32 4294967295, %s4136_s30   ;;  %p3484_p0 = scmp.ge.s32.totalorder %s4136_s30, 1  ;;  %s4136_s30 = sphi %s4287_s30, %s19_s30  }
   0x2   : > { %p286_p1 = scmp.lt.s32.totalorder %s4136_s30, 3 }
   0x4   : > { %p287_p2 = pnand %p3484_p0, %p286_p1 }
   0x6   : > { %290 = sbr.rel (%p287_p2) target bundleno = 3485 (0xd9d), region = 56 }
   0xd   : > { %p321_p3 = scmp.lt.s32.totalorder %s3480_s10, 1  ;;  %v341_v0 = vld [vmem:[%s5932_s7] sm:$0x1]  ;;  %v354_v1 = vlaneseq  ;;  %vm331_vm0 = vcmask 72704   ;;  %v4138_v2 = vmov 0.0   ;;  %s4139_s17 = smov 9  }
   0xe   : > { %vm342_vm1 = vcmp.ge.f32.partialorder %v341_v0, 1.0  ;;  %vm343_vm2 = vcmp.lt.f32.partialorder %v341_v0, 9.0  ;;  %vm347_vm3 = vcmp.ge.f32.partialorder %v341_v0, -1.0  ;;  %vm348_vm4 = vcmp.lt.f32.partialorder %v341_v0, 7.0  ;;  %332 = vst.msk [vmem:[#allocation2] sm:$0xff] %vm331_vm0, %v4138_v2  ;;  %s4140_s18 = smov 8  }
   0xf   : > { %s6219_s10 = smov (!%p321_p3, %s3480_s10), 1  ;;  %vm344_vm5 = vmand %vm342_vm1, %vm343_vm2  ;;  %v4302_v3 = vshrl.u32 %v354_v1, 7  ;;  %s5960_s19 = smov 2   ;;  %vm337_vm7 = vcmask 597064   ;;  %vm339_vm8 = vcmask 671304   ;;  %v4145_v12 = vmov 0.0|0.0  }
  0x10   : > { %v3488_v4 = vsel %vm344_vm5, 1.0, %v4138_v2  ;;  %vm349_vm6 = vmand %vm347_vm3, %vm348_vm4  ;;  %s5935_s13 = sshll.u32 %s6219_s10, 3  ;;  %s4142_s20 = smov 10   ;;  %3574 = vmatprep.subr.bf16.mxu0 %v4145_v12  ;;  %3586 = vmatprep.subr.bf16.mxu1 %v4145_v12  ;;  %vm360_vm9 = vcmask 523264   ;;  %vm4153_vm10 = vmmov 0   ;;  %v444_v45 = vld [vmem:[%s5926_s1] sm:$0xff] }
  0x11   : > { %v4307_v5 = vsub.s32 0, %v4302_v3  ;;  %v3489_v6 = vsel %vm349_vm6, 1.0, %v4138_v2  ;;  %s324_s16 = scalar_lea.vmem %s5925_s0, %s5935_s13  ;;  %s5959_s21 = smov 16   ;;  %3550 = vmatprep.mubr.msk.f32.mxu0 %vm4153_vm10, %v4138_v2  ;;  %3571 = vmatprep.mubr.msk.f32.mxu1 %vm4153_vm10, %v4138_v2  ;;  %vm445_vm11 = vcmask 588800   ;;  %v541_v54 = vld [vmem:[%s5932_s7] sm:$0x1] }
  0x12   : > { %v4315_v7 = vld [vmem:[%s324_s16] sm:$0xff]  ;;  %s5940_s22 = smov 18   ;;  %s5999_s23 = smov 127   ;;  %vm547_vm12 = vcmp.ge.f32.partialorder %v541_v54, -1.0  ;;  %vm548_vm13 = vcmp.lt.f32.partialorder %v541_v54, 7.0  ;;  %vm542_vm15 = vcmp.ge.f32.partialorder %v541_v54, 1.0 }
  0x13   : > { %v357_v8 = vrot.slane %v3488_v4, %v4307_v5  ;;  %334 = vrot.lane.b32.xlu0 %v4315_v7, %s4139_s17  ;;  %v373_v9 = vrot.slane %v3489_v6, %v4307_v5  ;;  %s5948_s24 = smov 126   ;;  %s4148_s25 = smov 120   ;;  %vm549_vm14 = vmand %vm547_vm12, %vm548_vm13 }
  0x14   : > { %s4149_s26 = smov 119   ;;  %s4150_s27 = smov 118   ;;  %v3492_v55 = vsel %vm549_vm14, 1.0, %v4138_v2 }
  0x15   : > { %384 = vrot.lane.b32.xlu1 %v357_v8, %s4140_s18  ;;  %s5997_s28 = smov 112   ;;  %s4152_s29 = smov 111   ;;  %v572_v56 = vrot.slane %v3492_v55, %v4307_v5  ;;  %v738_v55 = vld [vmem:[%s5928_s3 + $0x38] sm:$0xff] }
  0x16   : > { %s5951_s11 = smov 110   ;;  %s4155_s12 = smov 1  }
  0x17   : > { %374 = vrot.lane.b32.xlu0 %v373_v9, %s5960_s19  ;;  %s4156_s14 = smov 3   ;;  %s5950_s15 = smov 4  }
  0x18   : > { %s5936_s16 = smov 17   ;;  %s5954_s13 = smov 49  }
  0x19   : > { %400 = vrot.lane.b32.xlu1 %v373_v9, %s4142_s20 }
  0x1b   : > { %410 = vrot.lane.b32.xlu0 %v357_v8, %s5959_s21 }
  0x1d   : > { %426 = vrot.lane.b32.xlu1 %v373_v9, %s5940_s22 }
  0x85   : > { %v335_v10 = vpop.permute.xlu0 %334 }
  0x86   : > { %338 = vst.msk [vmem:[#allocation2] sm:$0xff] %vm337_vm7, %v335_v10 }
  0x87   : > { %340 = vst.msk [vmem:[#allocation2] sm:$0xff] %vm339_vm8, %v4138_v2  ;;  %v385_v11 = vpop.permute.xlu1 %384 }
  0x89   : > { %v375_v13 = vpop.permute.xlu0 %374 }
  0x8b   : > { %v401_v17 = vpop.permute.xlu1 %400 }
  0x8d   : > { %v411_v19 = vpop.permute.xlu0 %410 }
  0x8e   : > { %v352_v14 = vld [vmem:[#allocation2] sm:$0xff] }
  0x8f   : > { %364 = vrot.lane.b32.xlu0 %v352_v14, %s5999_s23  ;;  %v387_v15 = vmul.f32 %v385_v11, %v352_v14  ;;  %v377_v16 = vmul.f32 %v375_v13, %v352_v14  ;;  %534 = vst.msk [vmem:[#allocation2] sm:$0xff] %vm331_vm0, %v4138_v2  ;;  %v359_v18 = vmul.f32 %v357_v8, %v352_v14  ;;  %v427_v22 = vpop.permute.xlu1 %426  ;;  %vm543_vm0 = vcmp.lt.f32.partialorder %v541_v54, 9.0  ;;  %v736_v54 = vld [vmem:[%s5928_s3 + $0x28] sm:$0xff] }
  0x90   : > { %v403_v20 = vmul.f32 %v401_v17, %v352_v14  ;;  %v413_v21 = vmul.f32 %v411_v19, %v352_v14  ;;  %v429_v23 = vmul.f32 %v427_v22, %v352_v14  ;;  %vm544_vm1 = vmand %vm542_vm15, %vm543_vm0  ;;  %vm821_vm0 = vcmask 277504  }
  0x91   : > { %379 = vrot.lane.b32.xlu1 %v377_v16, %s5948_s24  ;;  %361 = vst.msk [vmem:[#allocation3] sm:$0xff] %vm360_vm9, %v359_v18  ;;  %v3491_v62 = vsel %vm544_vm1, 1.0, %v4138_v2  ;;  %vm833_vm1 = vcmask 1047824  }
  0x92   : > { %v557_v0 = vrot.slane %v3491_v62, %v4307_v5 }
  0x93   : > { %389 = vrot.lane.b32.xlu0 %v387_v15, %s4148_s25 }
  0x95   : > { %395 = vrot.lane.b32.xlu1 %v352_v14, %s4149_s26 }
  0x97   : > { %405 = vrot.lane.b32.xlu0 %v403_v20, %s4150_s27 }
  0x98   : > { %v435_v28 = vld [vmem:[#allocation3] sm:$0xff] }
  0x99   : > { %415 = vrot.lane.b32.xlu1 %v413_v21, %s5997_s28 }
  0x9b   : > { %421 = vrot.lane.b32.xlu0 %v352_v14, %s4152_s29 }
  0x9d   : > { %431 = vrot.lane.b32.xlu1 %v429_v23, %s5951_s11 }
 0x101   : > { %v365_v24 = vpop.permute.xlu0 %364 }
 0x102   : > { %367 = vst.msk [vmem:[#allocation3 + $0x10] sm:$0xff] %vm360_vm9, %v365_v24 }
 0x103   : > { %v380_v25 = vpop.permute.xlu1 %379 }
 0x104   : > { %382 = vst.msk [vmem:[#allocation3 + $0x20] sm:$0xff] %vm360_vm9, %v380_v25 }
 0x105   : > { %v390_v26 = vpop.permute.xlu0 %389 }
 0x106   : > { %392 = vst.msk [vmem:[#allocation3 + $0x30] sm:$0xff] %vm360_vm9, %v390_v26 }
 0x107   : > { %v396_v27 = vpop.permute.xlu1 %395 }
 0x108   : > { %398 = vst.msk [vmem:[#allocation3 + $0x40] sm:$0xff] %vm360_vm9, %v396_v27 }
 0x109   : > { %v406_v29 = vpop.permute.xlu0 %405  ;;  %v436_v30 = vld [vmem:[#allocation3 + $0x10] sm:$0xff] }
 0x10a   : > { %408 = vst.msk [vmem:[#allocation3 + $0x50] sm:$0xff] %vm360_vm9, %v406_v29  ;;  %v3575_v31 = vpack.c.bf16 %v436_v30, %v435_v28 }
 0x10b   : > { %v416_v32 = vpop.permute.xlu1 %415  ;;  %v437_v33 = vld [vmem:[#allocation3 + $0x20] sm:$0xff] }
 0x10c   : > { %3576 = vmatpush3.bf16.msra.mxu0 %v3575_v31  ;;  %418 = vst.msk [vmem:[#allocation3 + $0x60] sm:$0xff] %vm360_vm9, %v416_v32 }
 0x10d   : > { %v422_v34 = vpop.permute.xlu0 %421  ;;  %3577 = vmatprep.subr.bf16.mxu0 %v4145_v12  ;;  %v438_v35 = vld [vmem:[#allocation3 + $0x30] sm:$0xff] }
 0x10e   : > { %424 = vst.msk [vmem:[#allocation3 + $0x70] sm:$0xff] %vm360_vm9, %v422_v34  ;;  %v3578_v36 = vpack.c.bf16 %v438_v35, %v437_v33 }
 0x10f   : > { %v432_v37 = vpop.permute.xlu1 %431  ;;  %v439_v38 = vld [vmem:[#allocation3 + $0x40] sm:$0xff] }
 0x110   : > { %3579 = vmatpush3.bf16.msra.mxu0 %v3578_v36  ;;  %434 = vst.msk [vmem:[#allocation3 + $0x80] sm:$0xff] %vm360_vm9, %v432_v37 }
 0x111   : > { %3580 = vmatprep.subr.bf16.mxu0 %v4145_v12  ;;  %v440_v39 = vld [vmem:[#allocation3 + $0x50] sm:$0xff] }
 0x112   : > { %v3581_v40 = vpack.c.bf16 %v440_v39, %v439_v38 }
 0x113   : > { %v441_v41 = vld [vmem:[#allocation3 + $0x60] sm:$0xff] }
 0x114   : > { %3582 = vmatpush3.bf16.msra.mxu0 %v3581_v40  ;;  %v643_v40 = vld [vmem:[%s5927_s2] sm:$0xff] }
 0x115   : > { %3583 = vmatprep.subr.bf16.mxu0 %v4145_v12  ;;  %v442_v42 = vld [vmem:[#allocation3 + $0x70] sm:$0xff] }
 0x116   : > { %v3584_v43 = vpack.c.bf16 %v442_v42, %v441_v41 }
 0x117   : > { %v443_v44 = vld [vmem:[#allocation3 + $0x80] sm:$0xff] }
 0x118   : > { %3585 = vmatpush3.bf16.msra.mxu0 %v3584_v43 }
 0x119   : > { %3548 = vmatprep.subr.mxu0 %v4138_v2 }
 0x11c   : > { %3549 = vmatpush3.msra.mxu0 %v443_v44 }
 0x11d   : > { %3551 = vmatmul.mubr.msk.f32.vlgmr.msra.gmra.mrb[0].mxu0 %vm445_vm11, %v444_v45 }
 0x11e   : > { %814 = vmatprep.mubr.f32.mxu0 %v4138_v2 }
 0x1f0   : > { %v515_v46 = vpop.f32.mrb[0].mxu0 }
 0x1f1   : > { %v3552_v47 = vpop.f32.mrb[1].mxu0  ;;  %v519_v48 = vsel %vm360_vm9, %v515_v46, 0.0 }
 0x1f2   : > { %520 = vadd.xlane.f32.xlu0 %v519_v48  ;;  %v732_v48 = vld [vmem:[%s5928_s3 + $0x8] sm:$0xff] }
 0x27f   : > { %v521_v49 = vpop.xlane.xlu0 %520 }
 0x280   : > { %v523_v50 = vmul.f32 0.015625, %v521_v49  ;;  %v734_v49 = vld [vmem:[%s5928_s3 + $0x18] sm:$0xff] }
 0x282   : > { %v524_v51 = vsub.f32 %v515_v46, %v523_v50  ;;  %v3598_v50 = vpack.c.bf16 %v734_v49, %v732_v48 }
 0x284   : > { %v525_v52 = vmul.f32 %v524_v51, %v524_v51  ;;  %3599 = vmatprep.subr.bf16.mxu0 %v3598_v50 }
 0x286   : > { %v526_v53 = vsel %vm360_vm9, %v525_v52, 0.0  ;;  %v733_v52 = vld [vmem:[%s5928_s3 + $0x10] sm:$0xff] }
 0x287   : > { %527 = vadd.xlane.f32.xlu1 %v526_v53 }
 0x298   : > { %573 = vrot.lane.b32.xlu1 %v572_v56, %s5960_s19  ;;  %s4188_s19 = smov 77  }
 0x29c   : > { %599 = vrot.lane.b32.xlu1 %v572_v56, %s4142_s20  ;;  %s5937_s20 = smov 32  }
 0x2a0   : > { %625 = vrot.lane.b32.xlu1 %v572_v56, %s5940_s22  ;;  %v3602_v56 = vpack.c.bf16 %v738_v55, %v736_v54  ;;  %s5943_s22 = smov 68  }
 0x314   : > { %v528_v57 = vpop.xlane.xlu1 %527 }
 0x315   : > { %v529_v58 = vmul.f32 0.015625, %v528_v57  ;;  %v735_v57 = vld [vmem:[%s5928_s3 + $0x20] sm:$0xff] }
 0x317   : > { %v530_v59 = vadd.f32 1e-05, %v529_v58  ;;  %v737_v58 = vld [vmem:[%s5928_s3 + $0x30] sm:$0xff] }
 0x318   : > { %v574_v4 = vpop.permute.xlu1 %573 }
 0x319   : > { %4120 = vrsqrt.f32 %v530_v59  ;;  %v3604_v59 = vpack.c.bf16 %v737_v58, %v735_v57 }
 0x31c   : > { %v600_v13 = vpop.permute.xlu1 %599 }
 0x320   : > { %v626_v17 = vpop.permute.xlu1 %625 }
 0x323   : > { %v4121_v60 = vpop.eup %4120 }
 0x324   : > { %v532_v61 = vmul.f32 %v4121_v60, %v524_v51  ;;  %v731_v51 = vld [vmem:[%s5928_s3] sm:$0xff]  ;;  %v740_v60 = vld [vmem:[%s5928_s3 + $0x48] sm:$0xff] }
 0x325   : > { %v3600_v53 = vpack.c.bf16 %v733_v52, %v731_v51 }
 0x326   : > { %v533_v63 = vmax.f32 %v532_v61, 0.0  ;;  %v742_v61 = vld [vmem:[%s5928_s3 + $0x58] sm:$0xff] }
 0x327   : > { %3601 = vmatpush1.bf16.msra.mxu0 %v3600_v53  ;;  %v3606_v62 = vpack.c.bf16 %v742_v61, %v740_v60 }
 0x328   : > { %536 = vrot.lane.b32.xlu0 %v533_v63, %s4139_s17  ;;  %3603 = vmatprep.subr.bf16.mxu0 %v3602_v56  ;;  %v739_v63 = vld [vmem:[%s5928_s3 + $0x40] sm:$0xff]  ;;  %s4159_s17 = smov 19  }
 0x32b   : > { %3605 = vmatpush1.bf16.msra.mxu0 %v3604_v59 }
 0x32c   : > { %583 = vrot.lane.b32.xlu0 %v557_v0, %s4140_s18  ;;  %3607 = vmatprep.subr.bf16.mxu0 %v3606_v62  ;;  %s5958_s18 = smov 20  }
 0x330   : > { %609 = vrot.lane.b32.xlu0 %v557_v0, %s5959_s21 }
 0x39a   : > { %v537_v1 = vpop.permute.xlu0 %536 }
 0x39b   : > { %539 = vst.msk [vmem:[#allocation2] sm:$0xff] %vm337_vm7, %v537_v1 }
 0x39c   : > { %540 = vst.msk [vmem:[#allocation2] sm:$0xff] %vm339_vm8, %v4138_v2 }
 0x39e   : > { %v584_v6 = vpop.permute.xlu0 %583 }
 0x3a2   : > { %v610_v14 = vpop.permute.xlu0 %609 }
 0x3a3   : > { %v552_v8 = vld [vmem:[#allocation2] sm:$0xff] }
 0x3a4   : > { %v559_v9 = vmul.f32 %v557_v0, %v552_v8  ;;  %563 = vrot.lane.b32.xlu0 %v552_v8, %s5999_s23  ;;  %v586_v10 = vmul.f32 %v584_v6, %v552_v8  ;;  %v576_v11 = vmul.f32 %v574_v4, %v552_v8  ;;  %v602_v15 = vmul.f32 %v600_v13, %v552_v8  ;;  %v741_v0 = vld [vmem:[%s5928_s3 + $0x50] sm:$0xff]  ;;  %v744_v4 = vld [vmem:[%s5928_s3 + $0x68] sm:$0xff]  ;;  %v746_v6 = vld [vmem:[%s5928_s3 + $0x78] sm:$0xff] }
 0x3a5   : > { %v612_v16 = vmul.f32 %v610_v14, %v552_v8  ;;  %v628_v18 = vmul.f32 %v626_v17, %v552_v8  ;;  %v3608_v1 = vpack.c.bf16 %v741_v0, %v739_v63  ;;  %v839_v13 = vld [vmem:[%s5933_s8] sm:$0x3]  ;;  %v4462_v14 = vsub.s32 1, %v4302_v3  ;;  %822 = vst.msk [vmem:[#allocation2] sm:$0xff] %vm821_vm0, %v4138_v2 }
 0x3a6   : > { %560 = vst.msk [vmem:[#allocation3] sm:$0xff] %vm360_vm9, %v559_v9  ;;  %578 = vrot.lane.b32.xlu1 %v576_v11, %s5948_s24  ;;  %v743_v9 = vld [vmem:[%s5928_s3 + $0x60] sm:$0xff]  ;;  %vm845_vm2 = vcmp.ge.f32.partialorder %v839_v13, 1.0  ;;  %vm846_vm3 = vcmp.lt.f32.partialorder %v839_v13, 17.0  ;;  %vm855_vm4 = vcmp.ge.f32.partialorder %v839_v13, -2.0  ;;  %vm856_vm5 = vcmp.lt.f32.partialorder %v839_v13, 14.0 }
 0x3a7   : > { %3609 = vmatpush1.bf16.msra.mxu0 %v3608_v1  ;;  %vm847_vm6 = vmand %vm845_vm2, %vm846_vm3  ;;  %vm850_vm7 = vcmp.ge.f32.partialorder %v839_v13, -1.0  ;;  %vm851_vm8 = vcmp.lt.f32.partialorder %v839_v13, 15.0  ;;  %vm840_vm10 = vcmp.ge.f32.partialorder %v839_v13, 2.0  ;;  %vm841_vm12 = vcmp.lt.f32.partialorder %v839_v13, 18.0 }
 0x3a8   : > { %588 = vrot.lane.b32.xlu0 %v586_v10, %s4148_s25  ;;  %v745_v10 = vld [vmem:[%s5928_s3 + $0x70] sm:$0xff]  ;;  %vm857_vm13 = vmand %vm855_vm4, %vm856_vm5  ;;  %s5939_s25 = smov 33   ;;  %vm837_vm2 = vcmask 556304   ;;  %vm5978_vm3 = vcmask 7168   ;;  %vm952_vm4 = vcmask 23552   ;;  %vm1736_vm5 = vcmask 412672  }
 0x3a9   : > { %v3612_v11 = vpack.c.bf16 %v745_v10, %v743_v9  ;;  %vm852_vm14 = vmand %vm850_vm7, %vm851_vm8  ;;  %vm5977_vm7 = vcmask 130048   ;;  %vm1054_vm8 = vcmask 138240  }
 0x3aa   : > { %594 = vrot.lane.b32.xlu1 %v552_v8, %s4149_s26  ;;  %vm842_vm15 = vmand %vm840_vm10, %vm841_vm12  ;;  %s4163_s26 = smov 35   ;;  %vm1104_vm10 = vcmask 154624   ;;  %vm5976_vm12 = vcmask 162816  }
 0x3ac   : > { %604 = vrot.lane.b32.xlu0 %v602_v15, %s4150_s27  ;;  %v3496_v15 = vsel %vm847_vm6, 1.0, %v4138_v2  ;;  %s5955_s27 = smov 36   ;;  %vm992_vm6 = vcmask 31744  }
 0x3ad   : > { %v634_v23 = vld [vmem:[#allocation3] sm:$0xff]  ;;  %v888_v17 = vrot.slane %v3496_v15, %v4462_v14 }
 0x3ae   : > { %614 = vrot.lane.b32.xlu1 %v612_v16, %s5997_s28  ;;  %v884_v16 = vrot.slane %v3496_v15, %v4307_v5 }
 0x3b0   : > { %620 = vrot.lane.b32.xlu0 %v552_v8, %s4152_s29  ;;  %v3610_v8 = vpack.c.bf16 %v746_v6, %v744_v4 }
 0x3b2   : > { %630 = vrot.lane.b32.xlu1 %v628_v18, %s5951_s11  ;;  %3611 = vmatprep.subr.bf16.mxu0 %v3610_v8  ;;  %v3498_v18 = vsel %vm857_vm13, 1.0, %v4138_v2  ;;  %vm1166_vm13 = vcmask 261120  }
 0x3b3   : > { %3613 = vmatpush1.bf16.msra.mxu0 %v3612_v11  ;;  %v983_v3 = vrot.slane %v3498_v18, %v4307_v5 }
 0x416   : > { %v564_v19 = vpop.permute.xlu0 %563 }
 0x417   : > { %566 = vst.msk [vmem:[#allocation3 + $0x10] sm:$0xff] %vm360_vm9, %v564_v19  ;;  %v987_v19 = vrot.slane %v3498_v18, %v4462_v14 }
 0x418   : > { %v579_v20 = vpop.permute.xlu1 %578 }
 0x419   : > { %581 = vst.msk [vmem:[#allocation3 + $0x20] sm:$0xff] %vm360_vm9, %v579_v20  ;;  %v3497_v20 = vsel %vm852_vm14, 1.0, %v4138_v2  ;;  %vm5965_vm14 = vcmask 269312  }
 0x41a   : > { %v589_v21 = vpop.permute.xlu0 %588 }
 0x41b   : > { %591 = vst.msk [vmem:[#allocation3 + $0x30] sm:$0xff] %vm360_vm9, %v589_v21  ;;  %v3817_v21 = vpack.i.bf16 %v888_v17, %v884_v16 }
 0x41c   : > { %v595_v22 = vpop.permute.xlu1 %594 }
 0x41d   : > { %597 = vst.msk [vmem:[#allocation3 + $0x40] sm:$0xff] %vm360_vm9, %v595_v22  ;;  %v943_v22 = vrot.slane %v3497_v20, %v4307_v5 }
 0x41e   : > { %v605_v24 = vpop.permute.xlu0 %604  ;;  %v635_v25 = vld [vmem:[#allocation3 + $0x10] sm:$0xff] }
 0x41f   : > { %607 = vst.msk [vmem:[#allocation3 + $0x50] sm:$0xff] %vm360_vm9, %v605_v24  ;;  %v3587_v26 = vpack.c.bf16 %v635_v25, %v634_v23  ;;  %v947_v23 = vrot.slane %v3497_v20, %v4462_v14  ;;  %v3495_v24 = vsel %vm842_vm15, 1.0, %v4138_v2  ;;  %v3827_v25 = vpack.i.bf16 %v987_v19, %v983_v3 }
 0x420   : > { %v615_v27 = vpop.permute.xlu1 %614  ;;  %v636_v28 = vld [vmem:[#allocation3 + $0x20] sm:$0xff]  ;;  %vm1247_vm15 = vcmask 285696  }
 0x421   : > { %3588 = vmatpush3.bf16.msra.mxu1 %v3587_v26  ;;  %617 = vst.msk [vmem:[#allocation3 + $0x60] sm:$0xff] %vm360_vm9, %v615_v27  ;;  %v3822_v26 = vpack.i.bf16 %v947_v23, %v943_v22  ;;  %v4476_v27 = vrot.slane %v3495_v24, %v4307_v5 }
 0x422   : > { %v621_v29 = vpop.permute.xlu0 %620  ;;  %3589 = vmatprep.subr.bf16.mxu1 %v4145_v12  ;;  %v637_v30 = vld [vmem:[#allocation3 + $0x30] sm:$0xff] }
 0x423   : > { %623 = vst.msk [vmem:[#allocation3 + $0x70] sm:$0xff] %vm360_vm9, %v621_v29  ;;  %v3590_v31 = vpack.c.bf16 %v637_v30, %v636_v28  ;;  %v4479_v28 = vrot.slane %v3495_v24, %v4462_v14 }
 0x424   : > { %v631_v32 = vpop.permute.xlu1 %630  ;;  %v638_v33 = vld [vmem:[#allocation3 + $0x40] sm:$0xff] }
 0x425   : > { %3591 = vmatpush3.bf16.msra.mxu1 %v3590_v31  ;;  %633 = vst.msk [vmem:[#allocation3 + $0x80] sm:$0xff] %vm360_vm9, %v631_v32  ;;  %v3832_v29 = vpack.i.bf16 %v4479_v28, %v4476_v27 }
 0x426   : > { %3592 = vmatprep.subr.bf16.mxu1 %v4145_v12  ;;  %v639_v34 = vld [vmem:[#allocation3 + $0x50] sm:$0xff] }
 0x427   : > { %v3593_v35 = vpack.c.bf16 %v639_v34, %v638_v33 }
 0x428   : > { %v640_v36 = vld [vmem:[#allocation3 + $0x60] sm:$0xff] }
 0x429   : > { %3594 = vmatpush3.bf16.msra.mxu1 %v3593_v35 }
 0x42a   : > { %3595 = vmatprep.subr.bf16.mxu1 %v4145_v12  ;;  %v641_v37 = vld [vmem:[#allocation3 + $0x70] sm:$0xff] }
 0x42b   : > { %v3596_v38 = vpack.c.bf16 %v641_v37, %v640_v36 }
 0x42c   : > { %v642_v39 = vld [vmem:[#allocation3 + $0x80] sm:$0xff] }
 0x42d   : > { %3597 = vmatpush3.bf16.msra.mxu1 %v3596_v38 }
 0x42e   : > { %3569 = vmatprep.subr.mxu1 %v4138_v2 }
 0x431   : > { %3570 = vmatpush3.msra.mxu1 %v642_v39 }
 0x432   : > { %3572 = vmatmul.mubr.msk.f32.vlgmr.msra.gmra.mrb[0].mxu1 %vm445_vm11, %v643_v40 }
 0x505   : > { %v713_v41 = vpop.f32.mrb[0].mxu1 }
 0x506   : > { %v3573_v42 = vpop.f32.mrb[1].mxu1  ;;  %v717_v43 = vsel %vm360_vm9, %v713_v41, 0.0 }
 0x507   : > { %718 = vadd.xlane.f32.xlu0 %v717_v43 }
 0x51d   : > { %3818 = vrot.lane.b32.xlu0 %v3817_v21, %s4155_s12 }
 0x521   : > { %3828 = vrot.lane.b32.xlu0 %v3827_v25, %s5950_s15  ;;  %s4180_s15 = smov 109  }
 0x525   : > { %3838 = vrot.lane.b32.xlu0 %v3817_v21, %s5936_s16  ;;  %s5944_s16 = smov 52  }
 0x529   : > { %3848 = vrot.lane.b32.xlu0 %v3827_v25, %s5958_s18  ;;  %s6005_s18 = smov 79  }
 0x52d   : > { %3858 = vrot.lane.b32.xlu0 %v3817_v21, %s5939_s25  ;;  %s5953_s25 = smov 65  }
 0x531   : > { %3868 = vrot.lane.b32.xlu0 %v3827_v25, %s5955_s27  ;;  %s6024_s27 = smov 92  }
 0x535   : > { %3878 = vrot.lane.b32.xlu0 %v3817_v21, %s5954_s13  ;;  %s6036_s13 = smov 93  }
 0x539   : > { %3888 = vrot.lane.b32.xlu0 %v3827_v25, %s5944_s16  ;;  %s6003_s16 = smov 62  }
 0x53d   : > { %3898 = vrot.lane.b32.xlu0 %v3817_v21, %s5953_s25  ;;  %s4182_s25 = smov 96  }
 0x541   : > { %3908 = vrot.lane.b32.xlu0 %v3827_v25, %s5943_s22  ;;  %s5961_s22 = smov 78  }
 0x594   : > { %v719_v44 = vpop.xlane.xlu0 %718 }
 0x595   : > { %v720_v12 = vmul.f32 0.015625, %v719_v44 }
 0x597   : > { %v4405_v45 = vsub.f32 %v713_v41, %v720_v12 }
 0x598   : > { %v4504_v38 = vpop.permute.xlu0 %3818 }
 0x599   : > { %v722_v46 = vmul.f32 %v4405_v45, %v4405_v45  ;;  %v3820_v60 = vunpack.i.l.bf16 %v4504_v38 }
 0x59b   : > { %v723_v47 = vsel %vm360_vm9, %v722_v46, 0.0 }
 0x59c   : > { %724 = vadd.xlane.f32.xlu1 %v723_v47  ;;  %v4506_v39 = vpop.permute.xlu0 %3828 }
 0x59d   : > { %v3830_v0 = vunpack.i.l.bf16 %v4506_v39 }
 0x5ad   : > { %3823 = vrot.lane.b32.xlu1 %v3822_v26, %s4156_s14  ;;  %s5945_s14 = smov 48  }
 0x5b1   : > { %3833 = vrot.lane.b32.xlu1 %v3832_v29, %s5959_s21  ;;  %s5966_s21 = smov 76  }
 0x5b5   : > { %3843 = vrot.lane.b32.xlu1 %v3822_v26, %s4159_s17  ;;  %s5941_s17 = smov 51  }
 0x5b9   : > { %3853 = vrot.lane.b32.xlu1 %v3832_v29, %s5937_s20  ;;  %s6029_s20 = smov 64  }
 0x5bd   : > { %3863 = vrot.lane.b32.xlu1 %v3822_v26, %s4163_s26  ;;  %s4171_s26 = smov 67  }
 0x5c1   : > { %3873 = vrot.lane.b32.xlu1 %v3832_v29, %s5945_s14  ;;  %s4177_s14 = smov 125  }
 0x5c5   : > { %3883 = vrot.lane.b32.xlu1 %v3822_v26, %s5941_s17  ;;  %s5956_s17 = smov 94  }
 0x5c9   : > { %3893 = vrot.lane.b32.xlu1 %v3832_v29, %s6029_s20 }
 0x5cd   : > { %3903 = vrot.lane.b32.xlu1 %v3822_v26, %s4171_s26  ;;  %s5947_s26 = smov 34  }
 0x629   : > { %v725_v30 = vpop.xlane.xlu1 %724 }
 0x62a   : > { %v726_v31 = vmul.f32 0.015625, %v725_v30 }
 0x62c   : > { %v727_v32 = vadd.f32 1e-05, %v726_v31 }
 0x62d   : > { %v4508_v40 = vpop.permute.xlu1 %3823 }
 0x62e   : > { %4122 = vrsqrt.f32 %v727_v32  ;;  %v3825_v1 = vunpack.i.l.bf16 %v4508_v40 }
 0x631   : > { %v4512_v41 = vpop.permute.xlu1 %3833 }
 0x632   : > { %v3835_v8 = vunpack.i.l.bf16 %v4512_v41 }
 0x635   : > { %v4516_v43 = vpop.permute.xlu1 %3843 }
 0x636   : > { %v3845_v15 = vunpack.i.l.bf16 %v4516_v43 }
 0x638   : > { %v4123_v33 = vpop.eup %4122 }
 0x639   : > { %v729_v34 = vmul.f32 %v4123_v33, %v4405_v45  ;;  %v4520_v12 = vpop.permute.xlu1 %3853 }
 0x63a   : > { %v3855_v3 = vunpack.i.l.bf16 %v4520_v12 }
 0x63b   : > { %v730_v35 = vadd.f32 %v729_v34, %v4315_v7  ;;  %v4510_v7 = vpop.permute.xlu0 %3838 }
 0x63c   : > { %v3840_v10 = vunpack.i.l.bf16 %v4510_v7 }
 0x63d   : > { %3494 = vmatmul.mubr.msk.f32.vlgmr.msra.gmra.mrb[2].mxu0 %vm360_vm9, %v730_v35  ;;  %v4524_v46 = vpop.permute.xlu1 %3863 }
 0x63e   : > { %v3865_v22 = vunpack.i.l.bf16 %v4524_v46 }
 0x63f   : > { %v4514_v42 = vpop.permute.xlu0 %3848 }
 0x640   : > { %v3850_v13 = vunpack.i.l.bf16 %v4514_v42 }
 0x641   : > { %v4528_v48 = vpop.permute.xlu1 %3873 }
 0x642   : > { %v3875_v25 = vunpack.i.l.bf16 %v4528_v48 }
 0x643   : > { %v4518_v44 = vpop.permute.xlu0 %3858 }
 0x644   : > { %v3860_v18 = vunpack.i.l.bf16 %v4518_v44 }
 0x645   : > { %v4532_v50 = vpop.permute.xlu1 %3883 }
 0x646   : > { %v3885_v30 = vunpack.i.l.bf16 %v4532_v50 }
 0x647   : > { %v4522_v45 = vpop.permute.xlu0 %3868 }
 0x648   : > { %v3870_v21 = vunpack.i.l.bf16 %v4522_v45 }
 0x649   : > { %v4536_v52 = vpop.permute.xlu1 %3893 }
 0x64a   : > { %v3895_v34 = vunpack.i.l.bf16 %v4536_v52 }
 0x64b   : > { %v4526_v47 = vpop.permute.xlu0 %3878 }
 0x64d   : > { %v4540_v54 = vpop.permute.xlu1 %3903 }
 0x64f   : > { %v4530_v49 = vpop.permute.xlu0 %3888 }
 0x650   : > { %v3890_v29 = vunpack.i.l.bf16 %v4530_v49 }
 0x653   : > { %v4534_v51 = vpop.permute.xlu0 %3898 }
 0x654   : > { %v3900_v33 = vunpack.i.l.bf16 %v4534_v51 }
 0x657   : > { %v4538_v53 = vpop.permute.xlu0 %3908 }
 0x710   : > { %v816_v36 = vpop.f32.mrb[2].mxu0 }
 0x711   : > { %825 = vrot.lane.b32.xlu0 %v816_v36, %s5947_s26  ;;  %v818_v37 = vpop.f32.mrb[3].mxu0 }
 0x712   : > { %827 = vrot.lane.b32.xlu1 %v818_v37, %s5947_s26  ;;  %s4178_s26 = smov 124   ;;  %v3821_v37 = vunpack.i.h.bf16 %v4504_v38 }
 0x783   : > { %v826_v55 = vpop.permute.xlu0 %825 }
 0x784   : > { %834 = vst.msk [vmem:[#allocation2] sm:$0xff] %vm833_vm1, %v826_v55  ;;  %v828_v56 = vpop.permute.xlu1 %827  ;;  %vm5980_vm1 = vcmask 293888  }
 0x785   : > { %v4543_v57 = vsel %vm821_vm0, %v826_v55, %v828_v56  ;;  %836 = vst.msk [vmem:[#allocation2 + $0x10] sm:$0xff] %vm821_vm0, %v828_v56  ;;  %v3826_v55 = vunpack.i.h.bf16 %v4508_v40  ;;  %v894_v56 = vsel %vm5978_vm3, %v3820_v60, %v3821_v37 }
 0x786   : > { %835 = vst [vmem:[#allocation2 + $0x8] sm:$0xff] %v4543_v57  ;;  %838 = vst.msk [vmem:[#allocation2 + $0x10] sm:$0xff] %vm837_vm2, %v4138_v2  ;;  %v4552_v59 = vmul.f32 %v4479_v28, %v4543_v57  ;;  %vm5963_vm2 = vcmask 392192  }
 0x788   : > { %876 = vst [vmem:[#allocation3 + $0x8] sm:$0xff] %v4552_v59 }
 0x78b   : > { %v4548_v58 = vld [vmem:[#allocation2] sm:$0xff] }
 0x78c   : > { %923 = vrot.lane.b32.xlu0 %v4548_v58, %s5948_s24  ;;  %1084 = vrot.lane.b32.xlu1 %v4548_v58, %s5951_s11  ;;  %v898_v61 = vmul.f32 %v3820_v60, %v4548_v58  ;;  %v4572_v62 = vmul.f32 %v4548_v58, %v4476_v27  ;;  %v957_v4 = vmul.f32 %v3825_v1, %v4548_v58  ;;  %v3880_v27 = vunpack.i.l.bf16 %v4526_v47 }
 0x78d   : > { %v4574_v63 = vld [vmem:[#allocation2 + $0x10] sm:$0xff]  ;;  %v997_v6 = vmul.f32 %v3830_v0, %v4548_v58  ;;  %v1028_v9 = vmul.f32 %v3835_v8, %v4548_v58  ;;  %v1059_v11 = vmul.f32 %v3840_v10, %v4548_v58  ;;  %v1140_v16 = vmul.f32 %v3850_v13, %v4548_v58  ;;  %1737 = vst.msk [vmem:[#allocation2] sm:$0xf] %vm1736_vm5, %v4138_v2 }
 0x78e   : > { %875 = vst [vmem:[#allocation3] sm:$0xff] %v4572_v62  ;;  %v1109_v17 = vmul.f32 %v3845_v15, %v4548_v58  ;;  %v1202_v19 = vmul.f32 %v3860_v18, %v4548_v58  ;;  %v1171_v20 = vmul.f32 %v3855_v3, %v4548_v58  ;;  %v1252_v23 = vmul.f32 %v3865_v22, %v4548_v58 }
 0x78f   : > { %v1283_v24 = vmul.f32 %v3870_v21, %v4548_v58  ;;  %v1314_v26 = vmul.f32 %v3875_v25, %v4548_v58  ;;  %v1345_v28 = vmul.f32 %v3880_v27, %v4548_v58  ;;  %v1426_v31 = vmul.f32 %v3890_v29, %v4548_v58 }
 0x790   : > { %1227 = vrot.lane.b32.xlu0 %v4548_v58, %s5956_s17  ;;  %1370 = vrot.lane.b32.xlu1 %v4548_v58, %s5961_s22  ;;  %v1395_v32 = vmul.f32 %v3885_v30, %v4548_v58  ;;  %v1486_v35 = vmul.f32 %v3900_v33, %v4548_v58  ;;  %v1456_v36 = vmul.f32 %v3895_v34, %v4548_v58 }
 0x791   : > { %v959_v60 = vmul.f32 %v3826_v55, %v4574_v63 }
 0x794   : > { %1511 = vrot.lane.b32.xlu0 %v4548_v58, %s6003_s16  ;;  %904 = vrot.lane.b32.xlu1 %v898_v61, %s5999_s23  ;;  %v900_v61 = vmul.f32 %v3821_v37, %v4574_v63  ;;  %v3866_v37 = vunpack.i.h.bf16 %v4524_v46 }
 0x798   : > { %927 = vrot.lane.b32.xlu1 %v4574_v63, %s5948_s24  ;;  %925 = vrot.lane.b32.xlu0 %v4543_v57, %s5948_s24  ;;  %s5970_s24 = smov 108  }
 0x79c   : > { %963 = vrot.lane.b32.xlu1 %v957_v4, %s4177_s14  ;;  %1003 = vrot.lane.b32.xlu0 %v997_v6, %s4178_s26  ;;  %v899_v4 = vmul.f32 %v894_v56, %v4543_v57  ;;  %v3831_v6 = vunpack.i.h.bf16 %v4506_v39  ;;  %v1248_v56 = vsel %vm1247_vm15, %v3865_v22, %v3866_v37  ;;  %v3881_v22 = vunpack.i.h.bf16 %v4526_v47 }
 0x79d   : > { %vm5964_vm15 = vcmask 424960  }
 0x7a0   : > { %1034 = vrot.lane.b32.xlu1 %v1028_v9, %s5997_s28  ;;  %1086 = vrot.lane.b32.xlu0 %v4543_v57, %s5951_s11  ;;  %v953_v9 = vsel %vm952_vm4, %v3825_v1, %v3826_v55  ;;  %v999_v1 = vmul.f32 %v3831_v6, %v4574_v63  ;;  %v3871_v55 = vunpack.i.h.bf16 %v4522_v45  ;;  %vm5979_vm4 = vcmask 400384  }
 0x7a1   : > { %v958_v38 = vmul.f32 %v953_v9, %v4543_v57 }
 0x7a2   : > { %v1285_v46 = vmul.f32 %v3871_v55, %v4574_v63 }
 0x7a4   : > { %1088 = vrot.lane.b32.xlu1 %v4574_v63, %s5951_s11  ;;  %1065 = vrot.lane.b32.xlu0 %v1059_v11, %s4152_s29  ;;  %s5968_s11 = smov 95   ;;  %v3836_v11 = vunpack.i.h.bf16 %v4512_v41 }
 0x7a6   : > { %v1030_v39 = vmul.f32 %v3836_v11, %v4574_v63 }
 0x7a8   : > { %1146 = vrot.lane.b32.xlu1 %v1140_v16, %s5970_s24  ;;  %1115 = vrot.lane.b32.xlu0 %v1109_v17, %s4180_s15  ;;  %v993_v16 = vsel %vm992_vm6, %v3830_v0, %v3831_v6  ;;  %v3841_v17 = vunpack.i.h.bf16 %v4510_v7  ;;  %v3846_v0 = vunpack.i.h.bf16 %v4516_v43 }
 0x7a9   : > { %v998_v40 = vmul.f32 %v993_v16, %v4543_v57  ;;  %v3891_v16 = vunpack.i.h.bf16 %v4530_v49  ;;  %v3901_v49 = vunpack.i.h.bf16 %v4534_v51  ;;  %v4835_v51 = vld [vmem:[%s5933_s8] sm:$0x3] }
 0x7aa   : > { %v1061_v41 = vmul.f32 %v3841_v17, %v4574_v63  ;;  %v1111_v7 = vmul.f32 %v3846_v0, %v4574_v63 }
 0x7ac   : > { %1208 = vrot.lane.b32.xlu1 %v1202_v19, %s5968_s11  ;;  %1177 = vrot.lane.b32.xlu0 %v1171_v20, %s4182_s25  ;;  %v1024_v19 = vsel %vm5977_vm7, %v3835_v8, %v3836_v11  ;;  %v3851_v8 = vunpack.i.h.bf16 %v4514_v42  ;;  %vm5982_vm7 = vcmask 900096  }
 0x7ad   : > { %v1029_v20 = vmul.f32 %v1024_v19, %v4543_v57 }
 0x7ae   : > { %v1142_v43 = vmul.f32 %v3851_v8, %v4574_v63 }
 0x7b0   : > { %1231 = vrot.lane.b32.xlu1 %v4574_v63, %s5956_s17  ;;  %1229 = vrot.lane.b32.xlu0 %v4543_v57, %s5956_s17  ;;  %s5995_s17 = smov 80  }
 0x7b4   : > { %1258 = vrot.lane.b32.xlu1 %v1252_v23, %s6036_s13  ;;  %1289 = vrot.lane.b32.xlu0 %v1283_v24, %s6024_s27  ;;  %v1055_v23 = vsel %vm1054_vm8, %v3840_v10, %v3841_v17  ;;  %v1136_v10 = vsel %vm5976_vm12, %v3850_v13, %v3851_v8  ;;  %v3896_v17 = vunpack.i.h.bf16 %v4536_v52  ;;  %v3906_v8 = vunpack.i.h.bf16 %v4540_v54 }
 0x7b5   : > { %v1060_v24 = vmul.f32 %v1055_v23, %v4543_v57  ;;  %v3905_v52 = vunpack.i.l.bf16 %v4540_v54  ;;  %vm1765_vm12 = vcmp.ge.f32.partialorder %v4835_v51, 1.0 }
 0x7b8   : > { %1320 = vrot.lane.b32.xlu1 %v1314_v26, %s5995_s17  ;;  %1372 = vrot.lane.b32.xlu0 %v4543_v57, %s5961_s22  ;;  %v1105_v26 = vsel %vm1104_vm10, %v3845_v15, %v3846_v0  ;;  %v3861_v15 = vunpack.i.h.bf16 %v4518_v44  ;;  %v1253_v44 = vmul.f32 %v1248_v56, %v4543_v57  ;;  %vm1390_vm10 = vcmask 416768  }
 0x7b9   : > { %v1452_v0 = vsel %vm360_vm9, %v3895_v34, %v3896_v17 }
 0x7bc   : > { %1374 = vrot.lane.b32.xlu1 %v4574_v63, %s5961_s22  ;;  %1351 = vrot.lane.b32.xlu0 %v1345_v28, %s6005_s18  ;;  %s5972_s22 = smov 63   ;;  %v1110_v28 = vmul.f32 %v1105_v26, %v4543_v57 }
 0x7c0   : > { %1432 = vrot.lane.b32.xlu1 %v1426_v31, %s5966_s21  ;;  %1401 = vrot.lane.b32.xlu0 %v1395_v32, %s4188_s19  ;;  %v3856_v31 = vunpack.i.h.bf16 %v4520_v12  ;;  %v1141_v32 = vmul.f32 %v1136_v10, %v4543_v57  ;;  %v1488_v10 = vmul.f32 %v3901_v49, %v4574_v63 }
 0x7c2   : > { %v1173_v13 = vmul.f32 %v3856_v31, %v4574_v63 }
 0x7c4   : > { %1492 = vrot.lane.b32.xlu1 %v1486_v35, %s5972_s22  ;;  %1462 = vrot.lane.b32.xlu0 %v1456_v36, %s6029_s20  ;;  %v1167_v35 = vsel %vm1166_vm13, %v3855_v3, %v3856_v31  ;;  %v1198_v36 = vsel %vm5965_vm14, %v3860_v18, %v3861_v15  ;;  %v1204_v3 = vmul.f32 %v3861_v15, %v4574_v63  ;;  %vm5975_vm14 = vcmask 1031168  }
 0x7c5   : > { %v1172_v42 = vmul.f32 %v1167_v35, %v4543_v57  ;;  %v1203_v12 = vmul.f32 %v1198_v36, %v4543_v57  ;;  %v1254_v18 = vmul.f32 %v3866_v37, %v4574_v63  ;;  %v4848_v36 = vld [vmem:[%s5929_s4] sm:$0xff] }
 0x7c6   : > { %v1638_v37 = vcombine.high %v4848_v36, %v4848_v36 }
 0x7c8   : > { %1515 = vrot.lane.b32.xlu1 %v4574_v63, %s6003_s16  ;;  %1513 = vrot.lane.b32.xlu0 %v4543_v57, %s6003_s16  ;;  %s6075_s16 = smov 34  }
 0x7c9   : > { %3499 = vmatprep.mubr.msk.f32.mxu1 %vm445_vm11, %v1638_v37 }
 0x7cc   : > { %908 = vrot.lane.b32.xlu0 %v900_v61, %s5999_s23  ;;  %906 = vrot.lane.b32.xlu1 %v899_v4, %s5999_s23  ;;  %v1279_v61 = vsel %vm5980_vm1, %v3870_v21, %v3871_v55  ;;  %v3876_v4 = vunpack.i.h.bf16 %v4528_v48  ;;  %s6073_s23 = smov 33  }
 0x7cd   : > { %v1284_v6 = vmul.f32 %v1279_v61, %v4543_v57 }
 0x7ce   : > { %v1310_v9 = vsel %vm5963_vm2, %v3875_v25, %v3876_v4  ;;  %v1316_v21 = vmul.f32 %v3876_v4, %v4574_v63  ;;  %v1347_v25 = vmul.f32 %v3881_v22, %v4574_v63  ;;  %vm5974_vm2 = vcmask 531456  }
 0x7cf   : > { %v1315_v45 = vmul.f32 %v1310_v9, %v4543_v57  ;;  %v1482_v34 = vsel %vm5974_vm2, %v3900_v33, %v3901_v49  ;;  %v3911_v33 = vunpack.i.h.bf16 %v4538_v53  ;;  %vm1760_vm2 = vcmp.ge.f32.partialorder %v4835_v51, 2.0 }
 0x7d0   : > { %965 = vrot.lane.b32.xlu0 %v958_v38, %s4177_s14  ;;  %967 = vrot.lane.b32.xlu1 %v959_v60, %s4177_s14  ;;  %v3886_v38 = vunpack.i.h.bf16 %v4532_v50  ;;  %v1341_v60 = vsel %vm5979_vm4, %v3880_v27, %v3881_v22  ;;  %v1422_v50 = vsel %vm5964_vm15, %v3890_v29, %v3891_v16  ;;  %vm1531_vm15 = vcmask 547840  }
 0x7d1   : > { %v1346_v48 = vmul.f32 %v1341_v60, %v4543_v57  ;;  %v1532_v31 = vsel %vm1531_vm15, %v3905_v52, %v3906_v8  ;;  %vm1562_vm15 = vcmask 556032   ;;  %vm1766_vm4 = vcmp.lt.f32.partialorder %v4835_v51, 17.0 }
 0x7d2   : > { %v1391_v11 = vsel %vm1390_vm10, %v3885_v30, %v3886_v38  ;;  %v1397_v27 = vmul.f32 %v3886_v38, %v4574_v63  ;;  %vm1767_vm1 = vmand %vm1765_vm12, %vm1766_vm4  ;;  %v1569_v9 = vmul.f32 %v3911_v33, %v4574_v63  ;;  %vm1771_vm12 = vcmp.lt.f32.partialorder %v4835_v51, 15.0 }
 0x7d3   : > { %v1396_v47 = vmul.f32 %v1391_v11, %v4543_v57  ;;  %v3502_v4 = vsel %vm1767_vm1, 1.0, %v4138_v2  ;;  %vm1780_vm4 = vcmp.ge.f32.partialorder %v4835_v51, -3.0 }
 0x7d4   : > { %1005 = vrot.lane.b32.xlu0 %v998_v40, %s4178_s26  ;;  %1007 = vrot.lane.b32.xlu1 %v999_v1, %s4178_s26 }
 0x7d8   : > { %1036 = vrot.lane.b32.xlu0 %v1029_v20, %s5997_s28  ;;  %1038 = vrot.lane.b32.xlu1 %v1030_v39, %s5997_s28  ;;  %v1427_v20 = vmul.f32 %v1422_v50, %v4543_v57  ;;  %v1428_v39 = vmul.f32 %v3891_v16, %v4574_v63  ;;  %s6072_s28 = smov 17  }
 0x7dc   : > { %1067 = vrot.lane.b32.xlu0 %v1060_v24, %s4152_s29  ;;  %1069 = vrot.lane.b32.xlu1 %v1061_v41, %s4152_s29  ;;  %v1457_v24 = vmul.f32 %v1452_v0, %v4543_v57  ;;  %v1458_v41 = vmul.f32 %v3896_v17, %v4574_v63 }
 0x7e0   : > { %1117 = vrot.lane.b32.xlu0 %v1110_v28, %s4180_s15  ;;  %1119 = vrot.lane.b32.xlu1 %v1111_v7, %s4180_s15  ;;  %v1487_v7 = vmul.f32 %v1482_v34, %v4543_v57 }
 0x7e4   : > { %1148 = vrot.lane.b32.xlu0 %v1141_v32, %s5970_s24  ;;  %1150 = vrot.lane.b32.xlu1 %v1142_v43, %s5970_s24  ;;  %v3910_v43 = vunpack.i.l.bf16 %v4538_v53  ;;  %s6064_s24 = smov 2  }
 0x7e6   : > { %v1563_v53 = vsel %vm1562_vm15, %v3910_v43, %v3911_v33  ;;  %v1567_v22 = vmul.f32 %v3910_v43, %v4548_v58 }
 0x7e7   : > { %v1568_v56 = vmul.f32 %v1563_v53, %v4543_v57 }
 0x7e8   : > { %1179 = vrot.lane.b32.xlu0 %v1172_v42, %s4182_s25  ;;  %1181 = vrot.lane.b32.xlu1 %v1173_v13, %s4182_s25  ;;  %v1537_v42 = vmul.f32 %v1532_v31, %v4543_v57  ;;  %v1538_v13 = vmul.f32 %v3906_v8, %v4574_v63  ;;  %v1854_v63 = vrot.slane %v3502_v4, %v4462_v14 }
 0x7ec   : > { %1210 = vrot.lane.b32.xlu0 %v1203_v12, %s5968_s11  ;;  %1212 = vrot.lane.b32.xlu1 %v1204_v3, %s5968_s11  ;;  %s6065_s11 = smov 16  }
 0x7f0   : > { %1260 = vrot.lane.b32.xlu0 %v1253_v44, %s6036_s13  ;;  %1262 = vrot.lane.b32.xlu1 %v1254_v18, %s6036_s13  ;;  %v1536_v44 = vmul.f32 %v3905_v52, %v4548_v58  ;;  %v1850_v58 = vrot.slane %v3502_v4, %v4307_v5 }
 0x7f2   : > { %v4908_v16 = vpack.i.bf16 %v1854_v63, %v1850_v58 }
 0x7f4   : > { %1291 = vrot.lane.b32.xlu0 %v1284_v6, %s6024_s27  ;;  %1293 = vrot.lane.b32.xlu1 %v1285_v46, %s6024_s27 }
 0x7f8   : > { %1322 = vrot.lane.b32.xlu0 %v1315_v45, %s5995_s17  ;;  %1324 = vrot.lane.b32.xlu1 %v1316_v21, %s5995_s17 }
 0x7fc   : > { %1353 = vrot.lane.b32.xlu0 %v1346_v48, %s6005_s18  ;;  %1355 = vrot.lane.b32.xlu1 %v1347_v25, %s6005_s18  ;;  %s4210_s18 = smov 81  }
 0x7fe   : > { %v924_v40 = vpop.permute.xlu0 %923  ;;  %v4785_v1 = vpop.permute.xlu1 %1084 }
 0x800   : > { %1403 = vrot.lane.b32.xlu0 %v1396_v47, %s4188_s19  ;;  %1405 = vrot.lane.b32.xlu1 %v1397_v27, %s4188_s19 }
 0x802   : > { %v4795_v30 = vpop.permute.xlu0 %1227  ;;  %v4797_v19 = vpop.permute.xlu1 %1370 }
 0x804   : > { %1434 = vrot.lane.b32.xlu0 %v1427_v20, %s5966_s21  ;;  %1436 = vrot.lane.b32.xlu1 %v1428_v39, %s5966_s21  ;;  %s6034_s21 = smov 61  }
 0x806   : > { %v4807_v29 = vpop.permute.xlu0 %1511  ;;  %v4809_v23 = vpop.permute.xlu1 %904 }
 0x808   : > { %1464 = vrot.lane.b32.xlu0 %v1457_v24, %s6029_s20  ;;  %1466 = vrot.lane.b32.xlu1 %v1458_v41, %s6029_s20 }
 0x80a   : > { %v926_v26 = vpop.permute.xlu0 %925  ;;  %v928_v28 = vpop.permute.xlu1 %927 }
 0x80b   : > { %v4823_v32 = vsel %vm5975_vm14, %v924_v40, %v926_v26  ;;  %v4826_v54 = vsel %vm5975_vm14, %v926_v26, %v928_v28  ;;  %vm1761_vm14 = vcmp.lt.f32.partialorder %v4835_v51, 18.0 }
 0x80c   : > { %934 = vst [vmem:[#allocation3 + $0x20] sm:$0xff] %v4823_v32  ;;  %935 = vst [vmem:[#allocation3 + $0x28] sm:$0xff] %v4826_v54  ;;  %1494 = vrot.lane.b32.xlu0 %v1487_v7, %s5972_s22  ;;  %1496 = vrot.lane.b32.xlu1 %v1488_v10, %s5972_s22  ;;  %s6001_s22 = smov 60  }
 0x80d   : > { %vm1762_vm3 = vmand %vm1760_vm2, %vm1761_vm14  ;;  %vm1755_vm14 = vcmp.ge.f32.partialorder %v4835_v51, 3.0  ;;  %vm1756_vm2 = vcmp.lt.f32.partialorder %v4835_v51, 19.0 }
 0x80e   : > { %v4839_v15 = vpop.permute.xlu0 %1003  ;;  %v4841_v35 = vpop.permute.xlu1 %963  ;;  %v3501_v12 = vsel %vm1762_vm3, 1.0, %v4138_v2  ;;  %vm1757_vm11 = vmand %vm1755_vm14, %vm1756_vm2  ;;  %vm1770_vm3 = vcmp.ge.f32.partialorder %v4835_v51, -1.0  ;;  %vm1781_vm14 = vcmp.lt.f32.partialorder %v4835_v51, 13.0 }
 0x80f   : > { %v1809_v57 = vrot.slane %v3501_v12, %v4307_v5  ;;  %v1813_v61 = vrot.slane %v3501_v12, %v4462_v14  ;;  %v3500_v38 = vsel %vm1757_vm11, 1.0, %v4138_v2  ;;  %vm1772_vm1 = vmand %vm1770_vm3, %vm1771_vm12  ;;  %vm1775_vm11 = vcmp.ge.f32.partialorder %v4835_v51, -2.0 }
 0x810   : > { %1544 = vrot.lane.b32.xlu0 %v1537_v42, %s6034_s21  ;;  %1546 = vrot.lane.b32.xlu1 %v1538_v13, %s6034_s21  ;;  %v4901_v25 = vrot.slane %v3500_v38, %v4462_v14  ;;  %v4904_v11 = vrot.slane %v3500_v38, %v4307_v5  ;;  %v3503_v40 = vsel %vm1772_vm1, 1.0, %v4138_v2  ;;  %vm1782_vm2 = vmand %vm1780_vm4, %vm1781_vm14  ;;  %vm1776_vm3 = vcmp.lt.f32.partialorder %v4835_v51, 14.0 }
 0x811   : > { %v4889_v21 = vpack.i.bf16 %v1813_v61, %v1809_v57  ;;  %vm5989_vm12 = vcmask 769024   ;;  %v1910_v17 = vrot.slane %v3503_v40, %v4307_v5  ;;  %v1914_v50 = vrot.slane %v3503_v40, %v4462_v14  ;;  %vm1777_vm1 = vmand %vm1775_vm11, %vm1776_vm3 }
 0x812   : > { %v1087_v3 = vpop.permute.xlu0 %1086  ;;  %v4861_v55 = vpop.permute.xlu1 %1034  ;;  %v4921_v27 = vpack.i.bf16 %v4901_v25, %v4904_v11  ;;  %v3505_v20 = vsel %vm1782_vm2, 1.0, %v4138_v2  ;;  %v3504_v34 = vsel %vm1777_vm1, 1.0, %v4138_v2  ;;  %vm5981_vm4 = vcmask 637952  }
 0x813   : > { %v4867_v18 = vsel %vm5982_vm7, %v4785_v1, %v1087_v3  ;;  %v4937_v41 = vpack.i.bf16 %v1914_v50, %v1910_v17  ;;  %v1991_v8 = vrot.slane %v3505_v20, %v4307_v5  ;;  %v1995_v52 = vrot.slane %v3505_v20, %v4462_v14 }
 0x814   : > { %1095 = vst [vmem:[#allocation3 + $0x70] sm:$0xff] %v4867_v18  ;;  %1575 = vrot.lane.b32.xlu0 %v1568_v56, %s6001_s22  ;;  %1542 = vrot.lane.b32.xlu1 %v1536_v44, %s6034_s21  ;;  %v1948_v7 = vrot.slane %v3504_v34, %v4307_v5  ;;  %v1952_v10 = vrot.slane %v3504_v34, %v4462_v14  ;;  %vm5986_vm14 = vcmask 506880   ;;  %vm5984_vm2 = vcmask 1039360  }
 0x815   : > { %v4948_v28 = vpack.i.bf16 %v1995_v52, %v1991_v8  ;;  %vm969_vm11 = vcmask 1022976   ;;  %vm1009_vm3 = vcmask 1014784   ;;  %vm5983_vm1 = vcmask 916480  }
 0x816   : > { %v4877_v6 = vpop.permute.xlu0 %1065  ;;  %v1089_v46 = vpop.permute.xlu1 %1088  ;;  %v4960_v43 = vpack.i.bf16 %v1952_v10, %v1948_v7 }
 0x817   : > { %v4882_v45 = vsel %vm5982_vm7, %v1087_v3, %v1089_v46  ;;  %vm1121_vm7 = vcmask 891904  }
 0x818   : > { %1096 = vst [vmem:[#allocation3 + $0x78] sm:$0xff] %v4882_v45  ;;  %1573 = vrot.lane.b32.xlu0 %v1567_v22, %s6001_s22  ;;  %1577 = vrot.lane.b32.xlu1 %v1569_v9, %s6001_s22  ;;  %s6074_s22 = smov 32  }
 0x81a   : > { %v4894_v60 = vpop.permute.xlu0 %1115  ;;  %v4896_v48 = vpop.permute.xlu1 %1146 }
 0x81c   : > { %3913 = vrot.lane.b32.xlu1 %v4889_v21, %s4155_s12  ;;  %s6066_s12 = smov 20  }
 0x81e   : > { %v4911_v1 = vpop.permute.xlu0 %1177  ;;  %v4913_v47 = vpop.permute.xlu1 %1208 }
 0x820   : > { %3918 = vrot.lane.b32.xlu1 %v4908_v16, %s6064_s24  ;;  %s4192_s24 = smov 22  }
 0x822   : > { %v1230_v39 = vpop.permute.xlu0 %1229  ;;  %v1232_v0 = vpop.permute.xlu1 %1231 }
 0x823   : > { %v4928_v49 = vsel %vm5989_vm12, %v4795_v30, %v1230_v39  ;;  %v4931_v24 = vsel %vm5989_vm12, %v1230_v39, %v1232_v0  ;;  %vm5991_vm12 = vcmask 646144  }
 0x824   : > { %1238 = vst [vmem:[#allocation3 + $0xc0] sm:$0xff] %v4928_v49  ;;  %1239 = vst [vmem:[#allocation3 + $0xc8] sm:$0xff] %v4931_v24  ;;  %3938 = vrot.lane.b32.xlu1 %v4921_v27, %s6065_s11  ;;  %s4193_s11 = smov 21  }
 0x826   : > { %v4942_v30 = vpop.permute.xlu0 %1289  ;;  %v4944_v26 = vpop.permute.xlu1 %1258 }
 0x828   : > { %3948 = vrot.lane.b32.xlu1 %v4937_v41, %s6066_s12  ;;  %s4194_s12 = smov 37  }
 0x82a   : > { %v1373_v31 = vpop.permute.xlu0 %1372  ;;  %v4952_v51 = vpop.permute.xlu1 %1320 }
 0x82b   : > { %v4956_v33 = vsel %vm5981_vm4, %v4797_v19, %v1373_v31 }
 0x82c   : > { %1381 = vst [vmem:[#allocation3 + $0x110] sm:$0xff] %v4956_v33  ;;  %3958 = vrot.lane.b32.xlu1 %v4948_v28, %s4192_s24  ;;  %s6067_s24 = smov 36  }
 0x82e   : > { %v4962_v42 = vpop.permute.xlu0 %1351  ;;  %v1375_v13 = vpop.permute.xlu1 %1374 }
 0x82f   : > { %v4965_v5 = vsel %vm5981_vm4, %v1373_v31, %v1375_v13  ;;  %vm1071_vm4 = vcmask 908288  }
 0x830   : > { %1382 = vst [vmem:[#allocation3 + $0x118] sm:$0xff] %v4965_v5  ;;  %3968 = vrot.lane.b32.xlu1 %v4960_v43, %s4193_s11  ;;  %s4195_s11 = smov 50  }
 0x832   : > { %v4969_v14 = vpop.permute.xlu0 %1401  ;;  %v4971_v19 = vpop.permute.xlu1 %1432 }
 0x834   : > { %3978 = vrot.lane.b32.xlu1 %v4960_v43, %s4194_s12  ;;  %s6068_s12 = smov 49  }
 0x836   : > { %v4974_v37 = vpop.permute.xlu0 %1462  ;;  %v4976_v53 = vpop.permute.xlu1 %1492 }
 0x838   : > { %3988 = vrot.lane.b32.xlu1 %v4937_v41, %s6067_s24  ;;  %s4196_s24 = smov 54  }
 0x83a   : > { %v1514_v12 = vpop.permute.xlu0 %1513  ;;  %v1516_v3 = vpop.permute.xlu1 %1515 }
 0x83b   : > { %v4982_v56 = vsel %vm5986_vm14, %v4807_v29, %v1514_v12  ;;  %v4985_v44 = vsel %vm5986_vm14, %v1514_v12, %v1516_v3  ;;  %vm5988_vm14 = vcmask 760832  }
 0x83c   : > { %1522 = vst [vmem:[#allocation3 + $0x160] sm:$0xff] %v4982_v56  ;;  %1523 = vst [vmem:[#allocation3 + $0x168] sm:$0xff] %v4985_v44  ;;  %3998 = vrot.lane.b32.xlu1 %v4908_v16, %s4195_s11  ;;  %s6069_s11 = smov 65  }
 0x83e   : > { %v909_v57 = vpop.permute.xlu0 %908  ;;  %v907_v61 = vpop.permute.xlu1 %906 }
 0x83f   : > { %v911_v4 = vsel %vm5984_vm2, %v4809_v23, %v907_v61  ;;  %v912_v46 = vsel %vm5984_vm2, %v907_v61, %v909_v57  ;;  %vm1183_vm2 = vcmask 785408  }
 0x840   : > { %915 = vst [vmem:[#allocation3 + $0x10] sm:$0xff] %v911_v4  ;;  %916 = vst [vmem:[#allocation3 + $0x18] sm:$0xff] %v912_v46  ;;  %v3614_v29 = vpack.c.bf16 %v912_v46, %v4552_v59  ;;  %v3616_v22 = vpack.c.bf16 %v911_v4, %v4572_v62  ;;  %4008 = vrot.lane.b32.xlu1 %v4889_v21, %s6068_s12  ;;  %s4197_s12 = smov 66  }
 0x842   : > { %v966_v9 = vpop.permute.xlu0 %965  ;;  %v968_v58 = vpop.permute.xlu1 %967  ;;  %3615 = vmatprep.subr.bf16.mxu1 %v3614_v29 }
 0x843   : > { %v970_v63 = vsel %vm969_vm11, %v4841_v35, %v966_v9  ;;  %v971_v23 = vsel %vm969_vm11, %v966_v9, %v968_v58  ;;  %3617 = vmatpush1.bf16.msra.mxu1 %v3616_v22 }
 0x844   : > { %974 = vst [vmem:[#allocation3 + $0x30] sm:$0xff] %v970_v63  ;;  %975 = vst [vmem:[#allocation3 + $0x38] sm:$0xff] %v971_v23  ;;  %v3618_v38 = vpack.c.bf16 %v971_v23, %v4826_v54  ;;  %v3620_v59 = vpack.c.bf16 %v970_v63, %v4823_v32  ;;  %4018 = vrot.lane.b32.xlu1 %v4948_v28, %s4196_s24  ;;  %s4198_s24 = smov 70  }
 0x846   : > { %v1006_v62 = vpop.permute.xlu0 %1005  ;;  %v1008_v40 = vpop.permute.xlu1 %1007  ;;  %3619 = vmatprep.subr.bf16.mxu1 %v3618_v38 }
 0x847   : > { %v1010_v17 = vsel %vm1009_vm3, %v4839_v15, %v1006_v62  ;;  %v1011_v35 = vsel %vm1009_vm3, %v1006_v62, %v1008_v40  ;;  %3621 = vmatpush1.bf16.msra.mxu1 %v3620_v59 }
 0x848   : > { %1014 = vst [vmem:[#allocation3 + $0x40] sm:$0xff] %v1010_v17  ;;  %1015 = vst [vmem:[#allocation3 + $0x48] sm:$0xff] %v1011_v35  ;;  %4028 = vrot.lane.b32.xlu1 %v4889_v21, %s6069_s11  ;;  %s4199_s11 = smov 84  }
 0x84a   : > { %v1037_v54 = vpop.permute.xlu0 %1036  ;;  %v1039_v32 = vpop.permute.xlu1 %1038 }
 0x84b   : > { %v1041_v50 = vsel %vm5983_vm1, %v4861_v55, %v1037_v54  ;;  %v1042_v20 = vsel %vm5983_vm1, %v1037_v54, %v1039_v32  ;;  %vm5985_vm1 = vcmask 883712  }
 0x84c   : > { %1045 = vst [vmem:[#allocation3 + $0x50] sm:$0xff] %v1041_v50  ;;  %1046 = vst [vmem:[#allocation3 + $0x58] sm:$0xff] %v1042_v20  ;;  %v3622_v15 = vpack.c.bf16 %v1042_v20, %v1011_v35  ;;  %v3624_v39 = vpack.c.bf16 %v1041_v50, %v1010_v17  ;;  %4038 = vrot.lane.b32.xlu1 %v4908_v16, %s4197_s12  ;;  %s4200_s12 = smov 86  }
 0x84e   : > { %v1068_v0 = vpop.permute.xlu0 %1067  ;;  %v1070_v8 = vpop.permute.xlu1 %1069  ;;  %3623 = vmatprep.subr.bf16.mxu1 %v3622_v15 }
 0x84f   : > { %v1072_v52 = vsel %vm1071_vm4, %v4877_v6, %v1068_v0  ;;  %v1073_v34 = vsel %vm1071_vm4, %v1068_v0, %v1070_v8  ;;  %3625 = vmatpush1.bf16.msra.mxu1 %v3624_v39 }
 0x850   : > { %1076 = vst [vmem:[#allocation3 + $0x60] sm:$0xff] %v1072_v52  ;;  %1077 = vst [vmem:[#allocation3 + $0x68] sm:$0xff] %v1073_v34  ;;  %v3626_v55 = vpack.c.bf16 %v4882_v45, %v1073_v34  ;;  %v3628_v7 = vpack.c.bf16 %v4867_v18, %v1072_v52  ;;  %4048 = vrot.lane.b32.xlu1 %v4921_v27, %s5995_s17  ;;  %s6071_s17 = smov 18  }
 0x852   : > { %v1118_v10 = vpop.permute.xlu0 %1117  ;;  %v1120_v31 = vpop.permute.xlu1 %1119  ;;  %3627 = vmatprep.subr.bf16.mxu1 %v3626_v55 }
 0x853   : > { %v1122_v13 = vsel %vm1121_vm7, %v4894_v60, %v1118_v10  ;;  %v1123_v6 = vsel %vm1121_vm7, %v1118_v10, %v1120_v31  ;;  %3629 = vmatpush1.bf16.msra.mxu1 %v3628_v7 }
 0x854   : > { %1126 = vst [vmem:[#allocation3 + $0x80] sm:$0xff] %v1122_v13  ;;  %1127 = vst [vmem:[#allocation3 + $0x88] sm:$0xff] %v1123_v6  ;;  %4058 = vrot.lane.b32.xlu1 %v4948_v28, %s4198_s24  ;;  %s4201_s24 = smov 85  }
 0x856   : > { %v1149_v45 = vpop.permute.xlu0 %1148  ;;  %v1151_v18 = vpop.permute.xlu1 %1150 }
 0x857   : > { %v1153_v12 = vsel %vm5985_vm1, %v4896_v48, %v1149_v45  ;;  %v1154_v3 = vsel %vm5985_vm1, %v1149_v45, %v1151_v18  ;;  %vm5987_vm1 = vcmask 777216  }
 0x858   : > { %1157 = vst [vmem:[#allocation3 + $0x90] sm:$0xff] %v1153_v12  ;;  %1158 = vst [vmem:[#allocation3 + $0x98] sm:$0xff] %v1154_v3  ;;  %v3630_v60 = vpack.c.bf16 %v1154_v3, %v1123_v6  ;;  %v3632_v57 = vpack.c.bf16 %v1153_v12, %v1122_v13  ;;  %4068 = vrot.lane.b32.xlu1 %v4937_v41, %s4199_s11  ;;  %s4202_s11 = smov 101  }
 0x85a   : > { %v1180_v61 = vpop.permute.xlu0 %1179  ;;  %v1182_v4 = vpop.permute.xlu1 %1181  ;;  %3631 = vmatprep.subr.bf16.mxu1 %v3630_v60 }
 0x85b   : > { %v1184_v46 = vsel %vm1183_vm2, %v4911_v1, %v1180_v61  ;;  %v1185_v29 = vsel %vm1183_vm2, %v1180_v61, %v1182_v4  ;;  %3633 = vmatpush1.bf16.msra.mxu1 %v3632_v57 }
 0x85c   : > { %1188 = vst [vmem:[#allocation3 + $0xa0] sm:$0xff] %v1184_v46  ;;  %1189 = vst [vmem:[#allocation3 + $0xa8] sm:$0xff] %v1185_v29  ;;  %4078 = vrot.lane.b32.xlu1 %v4948_v28, %s4200_s12  ;;  %s4203_s12 = smov 100  }
 0x85e   : > { %v1211_v48 = vpop.permute.xlu0 %1210  ;;  %v1213_v22 = vpop.permute.xlu1 %1212 }
 0x85f   : > { %v1215_v9 = vsel %vm5987_vm1, %v4913_v47, %v1211_v48  ;;  %v1216_v58 = vsel %vm5987_vm1, %v1211_v48, %v1213_v22  ;;  %vm5990_vm1 = vcmask 752640  }
 0x860   : > { %1219 = vst [vmem:[#allocation3 + $0xb0] sm:$0xff] %v1215_v9  ;;  %1220 = vst [vmem:[#allocation3 + $0xb8] sm:$0xff] %v1216_v58  ;;  %v3634_v1 = vpack.c.bf16 %v1216_v58, %v1185_v29  ;;  %v3636_v63 = vpack.c.bf16 %v1215_v9, %v1184_v46  ;;  %4088 = vrot.lane.b32.xlu1 %v4960_v43, %s4201_s24  ;;  %s6070_s24 = smov 4  }
 0x861   : > { %3923 = vrot.lane.b32.xlu0 %v4937_v41, %s6070_s24  ;;  %s6076_s24 = smov 48  }
 0x862   : > { %v1261_v23 = vpop.permute.xlu0 %1260  ;;  %v1263_v38 = vpop.permute.xlu1 %1262  ;;  %3635 = vmatprep.subr.bf16.mxu1 %v3634_v1 }
 0x863   : > { %v1265_v59 = vsel %vm5988_vm14, %v4944_v26, %v1261_v23  ;;  %v1266_v62 = vsel %vm5988_vm14, %v1261_v23, %v1263_v38  ;;  %3637 = vmatpush1.bf16.msra.mxu1 %v3636_v63  ;;  %vm5992_vm14 = vcmask 654336  }
 0x864   : > { %1269 = vst [vmem:[#allocation3 + $0xd0] sm:$0xff] %v1265_v59  ;;  %1270 = vst [vmem:[#allocation3 + $0xd8] sm:$0xff] %v1266_v62  ;;  %v3638_v47 = vpack.c.bf16 %v1266_v62, %v4931_v24  ;;  %v3640_v40 = vpack.c.bf16 %v1265_v59, %v4928_v49  ;;  %4098 = vrot.lane.b32.xlu1 %v4960_v43, %s4202_s11  ;;  %s4204_s11 = smov 5  }
 0x865   : > { %3928 = vrot.lane.b32.xlu0 %v4960_v43, %s4204_s11  ;;  %s4206_s11 = smov 38  }
 0x866   : > { %v1292_v17 = vpop.permute.xlu0 %1291  ;;  %v1294_v35 = vpop.permute.xlu1 %1293  ;;  %3639 = vmatprep.subr.bf16.mxu1 %v3638_v47 }
 0x867   : > { %v1296_v54 = vsel %vm5990_vm1, %v4942_v30, %v1292_v17  ;;  %v1297_v26 = vsel %vm5990_vm1, %v1292_v17, %v1294_v35  ;;  %3641 = vmatpush1.bf16.msra.mxu1 %v3640_v40  ;;  %vm1407_vm1 = vcmask 629760  }
 0x868   : > { %1300 = vst [vmem:[#allocation3 + $0xe0] sm:$0xff] %v1296_v54  ;;  %1301 = vst [vmem:[#allocation3 + $0xe8] sm:$0xff] %v1297_v26  ;;  %4108 = vrot.lane.b32.xlu1 %v4937_v41, %s4203_s12  ;;  %s4205_s12 = smov 6  }
 0x869   : > { %3933 = vrot.lane.b32.xlu0 %v4948_v28, %s4205_s12  ;;  %s6077_s12 = smov 52  }
 0x86a   : > { %v1323_v24 = vpop.permute.xlu0 %1322  ;;  %v1325_v49 = vpop.permute.xlu1 %1324 }
 0x86b   : > { %v1327_v32 = vsel %vm5992_vm14, %v4952_v51, %v1323_v24  ;;  %v1328_v50 = vsel %vm5992_vm14, %v1323_v24, %v1325_v49  ;;  %vm5994_vm14 = vcmask 515072  }
 0x86c   : > { %1331 = vst [vmem:[#allocation3 + $0xf0] sm:$0xff] %v1327_v32  ;;  %1332 = vst [vmem:[#allocation3 + $0xf8] sm:$0xff] %v1328_v50  ;;  %v3642_v30 = vpack.c.bf16 %v1328_v50, %v1297_v26  ;;  %v3644_v20 = vpack.c.bf16 %v1327_v32, %v1296_v54 }
 0x86d   : > { %3943 = vrot.lane.b32.xlu0 %v4908_v16, %s6071_s17  ;;  %s4207_s17 = smov 53  }
 0x86e   : > { %v1354_v15 = vpop.permute.xlu0 %1353  ;;  %v1356_v39 = vpop.permute.xlu1 %1355  ;;  %3643 = vmatprep.subr.bf16.mxu1 %v3642_v30 }
 0x86f   : > { %v1358_v0 = vsel %vm5991_vm12, %v4962_v42, %v1354_v15  ;;  %v1359_v8 = vsel %vm5991_vm12, %v1354_v15, %v1356_v39  ;;  %3645 = vmatpush1.bf16.msra.mxu1 %v3644_v20  ;;  %vm5993_vm12 = vcmask 621568  }
 0x870   : > { %1362 = vst [vmem:[#allocation3 + $0x100] sm:$0xff] %v1358_v0  ;;  %1363 = vst [vmem:[#allocation3 + $0x108] sm:$0xff] %v1359_v8  ;;  %v3646_v51 = vpack.c.bf16 %v4965_v5, %v1359_v8  ;;  %v3648_v52 = vpack.c.bf16 %v4956_v33, %v1358_v0 }
 0x871   : > { %3953 = vrot.lane.b32.xlu0 %v4889_v21, %s6072_s28  ;;  %s6078_s28 = smov 68  }
 0x872   : > { %v1404_v34 = vpop.permute.xlu0 %1403  ;;  %v1406_v55 = vpop.permute.xlu1 %1405  ;;  %3647 = vmatprep.subr.bf16.mxu1 %v3646_v51 }
 0x873   : > { %v1408_v7 = vsel %vm1407_vm1, %v4969_v14, %v1404_v34  ;;  %v1409_v10 = vsel %vm1407_vm1, %v1404_v34, %v1406_v55  ;;  %3649 = vmatpush1.bf16.msra.mxu1 %v3648_v52 }
 0x874   : > { %1412 = vst [vmem:[#allocation3 + $0x120] sm:$0xff] %v1408_v7  ;;  %1413 = vst [vmem:[#allocation3 + $0x128] sm:$0xff] %v1409_v10 }
 0x875   : > { %3963 = vrot.lane.b32.xlu0 %v4889_v21, %s6073_s23  ;;  %s4208_s23 = smov 69  }
 0x876   : > { %v1435_v42 = vpop.permute.xlu0 %1434  ;;  %v1437_v31 = vpop.permute.xlu1 %1436 }
 0x877   : > { %v1439_v13 = vsel %vm5993_vm12, %v4971_v19, %v1435_v42  ;;  %v1440_v5 = vsel %vm5993_vm12, %v1435_v42, %v1437_v31  ;;  %vm6009_vm12 = vcmask 498688  }
 0x878   : > { %1443 = vst [vmem:[#allocation3 + $0x130] sm:$0xff] %v1439_v13  ;;  %1444 = vst [vmem:[#allocation3 + $0x138] sm:$0xff] %v1440_v5  ;;  %v3650_v33 = vpack.c.bf16 %v1440_v5, %v1409_v10  ;;  %v3652_v6 = vpack.c.bf16 %v1439_v13, %v1408_v7 }
 0x879   : > { %3973 = vrot.lane.b32.xlu0 %v4921_v27, %s6074_s22 }
 0x87a   : > { %v1465_v45 = vpop.permute.xlu0 %1464  ;;  %v1467_v18 = vpop.permute.xlu1 %1466  ;;  %3651 = vmatprep.subr.bf16.mxu1 %v3650_v33 }
 0x87b   : > { %v1468_v14 = vsel %vm360_vm9, %v4974_v37, %v1465_v45  ;;  %v1469_v12 = vsel %vm360_vm9, %v1465_v45, %v1467_v18  ;;  %3653 = vmatpush1.bf16.msra.mxu1 %v3652_v6 }
 0x87c   : > { %1472 = vst [vmem:[#allocation3 + $0x140] sm:$0xff] %v1468_v14  ;;  %1473 = vst [vmem:[#allocation3 + $0x148] sm:$0xff] %v1469_v12 }
 0x87d   : > { %3983 = vrot.lane.b32.xlu0 %v4908_v16, %s6075_s16  ;;  %s4209_s16 = smov 82  }
 0x87e   : > { %v1495_v3 = vpop.permute.xlu0 %1494  ;;  %v1497_v19 = vpop.permute.xlu1 %1496 }
 0x87f   : > { %v1499_v60 = vsel %vm5994_vm14, %v4976_v53, %v1495_v3  ;;  %v1500_v57 = vsel %vm5994_vm14, %v1495_v3, %v1497_v19  ;;  %vm6007_vm14 = vcmask 490496  }
 0x880   : > { %1503 = vst [vmem:[#allocation3 + $0x150] sm:$0xff] %v1499_v60  ;;  %1504 = vst [vmem:[#allocation3 + $0x158] sm:$0xff] %v1500_v57  ;;  %v3654_v61 = vpack.c.bf16 %v1500_v57, %v1469_v12  ;;  %v3656_v4 = vpack.c.bf16 %v1499_v60, %v1468_v14 }
 0x881   : > { %3993 = vrot.lane.b32.xlu0 %v4921_v27, %s6076_s24 }
 0x882   : > { %v1545_v46 = vpop.permute.xlu0 %1544  ;;  %v1547_v37 = vpop.permute.xlu1 %1546  ;;  %3655 = vmatprep.subr.bf16.mxu1 %v3654_v61 }
 0x883   : > { %v1550_v29 = vsel %vm6009_vm12, %v1545_v46, %v1547_v37  ;;  %3657 = vmatpush1.bf16.msra.mxu1 %v3656_v4 }
 0x884   : > { %1554 = vst [vmem:[#allocation3 + $0x178] sm:$0xff] %v1550_v29  ;;  %v3658_v48 = vpack.c.bf16 %v1550_v29, %v4985_v44 }
 0x885   : > { %4003 = vrot.lane.b32.xlu0 %v4948_v28, %s4206_s11  ;;  %s4211_s11 = smov 97  }
 0x886   : > { %v1576_v22 = vpop.permute.xlu0 %1575  ;;  %v1543_v9 = vpop.permute.xlu1 %1542  ;;  %3659 = vmatprep.subr.bf16.mxu1 %v3658_v48 }
 0x887   : > { %v1549_v53 = vsel %vm6009_vm12, %v1543_v9, %v1545_v46  ;;  %vm1752_vm12 = vcmask 830872  }
 0x888   : > { %1553 = vst [vmem:[#allocation3 + $0x170] sm:$0xff] %v1549_v53  ;;  %v3660_v58 = vpack.c.bf16 %v1549_v53, %v4982_v56 }
 0x889   : > { %4013 = vrot.lane.b32.xlu0 %v4937_v41, %s6077_s12  ;;  %s4212_s12 = smov 98  }
 0x88a   : > { %v1574_v1 = vpop.permute.xlu0 %1573  ;;  %v1578_v63 = vpop.permute.xlu1 %1577  ;;  %3661 = vmatpush1.bf16.msra.mxu1 %v3660_v58 }
 0x88b   : > { %v1580_v23 = vsel %vm6007_vm14, %v1574_v1, %v1576_v22  ;;  %v1581_v38 = vsel %vm6007_vm14, %v1576_v22, %v1578_v63  ;;  %vm6008_vm14 = vcmask 1043456  }
 0x88c   : > { %1584 = vst [vmem:[#allocation3 + $0x180] sm:$0xff] %v1580_v23  ;;  %1585 = vst [vmem:[#allocation3 + $0x188] sm:$0xff] %v1581_v38  ;;  %1689 = vmatprep.subr.mxu1 %v1581_v38 }
 0x88d   : > { %4023 = vrot.lane.b32.xlu0 %v4960_v43, %s4207_s17  ;;  %s4213_s17 = smov 102  }
 0x88e   : > { %1690 = vmatpush1.msra.mxu1 %v1580_v23  ;;  %v5106_v59 = vpop.permute.xlu1 %3913 }
 0x88f   : > { %1706 = vmatmul.mubr.f32.vlgmr.msra.gmra.mrb[2].mxu1 %v4848_v36 }
 0x891   : > { %4033 = vrot.lane.b32.xlu0 %v4921_v27, %s6029_s20 }
 0x895   : > { %4043 = vrot.lane.b32.xlu0 %v4960_v43, %s4208_s23  ;;  %s4214_s23 = smov 45  }
 0x899   : > { %4053 = vrot.lane.b32.xlu0 %v4937_v41, %s6078_s28  ;;  %s6081_s28 = smov 126  }
 0x89d   : > { %4063 = vrot.lane.b32.xlu0 %v4908_v16, %s4209_s16  ;;  %s4217_s16 = smov 107  }
 0x8a1   : > { %4073 = vrot.lane.b32.xlu0 %v4889_v21, %s4210_s18  ;;  %s6080_s18 = smov 51  }
 0x8a5   : > { %4083 = vrot.lane.b32.xlu0 %v4889_v21, %s4211_s11  ;;  %v5108_v21 = vpop.permute.xlu1 %3918  ;;  %s6082_s11 = smov 94  }
 0x8a9   : > { %4093 = vrot.lane.b32.xlu0 %v4921_v27, %s4182_s25  ;;  %v5110_v27 = vpop.permute.xlu1 %3938 }
 0x8ad   : > { %4103 = vrot.lane.b32.xlu0 %v4908_v16, %s4212_s12  ;;  %v5112_v62 = vpop.permute.xlu1 %3948  ;;  %s6021_s12 = smov 90  }
 0x8b1   : > { %4113 = vrot.lane.b32.xlu0 %v4948_v28, %s4213_s17  ;;  %v5114_v16 = vpop.permute.xlu1 %3958  ;;  %s6083_s17 = smov 79  }
 0x8b5   : > { %v5116_v28 = vpop.permute.xlu1 %3968 }
 0x8b9   : > { %v5118_v47 = vpop.permute.xlu1 %3978 }
 0x8bd   : > { %v5120_v40 = vpop.permute.xlu1 %3988 }
 0x8c1   : > { %v5122_v17 = vpop.permute.xlu1 %3998 }
 0x8c5   : > { %v5124_v35 = vpop.permute.xlu1 %4008 }
 0x8c9   : > { %v5126_v54 = vpop.permute.xlu1 %4018 }
 0x8cd   : > { %v5128_v26 = vpop.permute.xlu1 %4028 }
 0x8d1   : > { %v5130_v24 = vpop.permute.xlu1 %4038 }
 0x8d3   : > { %v5148_v31 = vpop.permute.xlu0 %3923 }
 0x8d5   : > { %v5132_v49 = vpop.permute.xlu1 %4048 }
 0x8d7   : > { %v5150_v13 = vpop.permute.xlu0 %3928 }
 0x8d9   : > { %v5134_v32 = vpop.permute.xlu1 %4058 }
 0x8db   : > { %v5152_v5 = vpop.permute.xlu0 %3933 }
 0x8dd   : > { %v5136_v50 = vpop.permute.xlu1 %4068 }
 0x8df   : > { %v5154_v33 = vpop.permute.xlu0 %3943 }
 0x8e1   : > { %v5138_v30 = vpop.permute.xlu1 %4078 }
 0x8e3   : > { %v5156_v6 = vpop.permute.xlu0 %3953 }
 0x8e5   : > { %v5140_v20 = vpop.permute.xlu1 %4088 }
 0x8e7   : > { %v5158_v45 = vpop.permute.xlu0 %3963 }
 0x8e9   : > { %v5142_v15 = vpop.permute.xlu1 %4098 }
 0x8eb   : > { %v5160_v18 = vpop.permute.xlu0 %3973 }
 0x8ed   : > { %v5144_v39 = vpop.permute.xlu1 %4108 }
 0x8ef   : > { %v5162_v14 = vpop.permute.xlu0 %3983 }
 0x8f3   : > { %v5164_v12 = vpop.permute.xlu0 %3993 }
 0x8f7   : > { %v5166_v3 = vpop.permute.xlu0 %4003 }
 0x8fb   : > { %v5168_v19 = vpop.permute.xlu0 %4013 }
 0x8ff   : > { %v5170_v60 = vpop.permute.xlu0 %4023 }
 0x903   : > { %v5172_v57 = vpop.permute.xlu0 %4033 }
 0x907   : > { %v5174_v61 = vpop.permute.xlu0 %4043 }
 0x90b   : > { %v5176_v4 = vpop.permute.xlu0 %4053 }
 0x90f   : > { %v5178_v46 = vpop.permute.xlu0 %4063 }
 0x913   : > { %v5180_v37 = vpop.permute.xlu0 %4073 }
 0x917   : > { %v5182_v29 = vpop.permute.xlu0 %4083 }
 0x91b   : > { %v5184_v48 = vpop.permute.xlu0 %4093 }
 0x91f   : > { %v5186_v22 = vpop.permute.xlu0 %4103 }
 0x923   : > { %v5188_v9 = vpop.permute.xlu0 %4113 }
 0x924   : > { %6079 = vst [vmem:[#allocation4_spill] sm:$0xff] %v5188_v9 }
 0x962   : > { %v1707_v36 = vpop.f32.mrb[2].mxu1 }
 0x963   : > { %v1713_v41 = vsel %vm6008_vm14, %v1707_v36, 0.0  ;;  %v1709_v43 = vpop.f32.mrb[3].mxu1 }
 0x964   : > { %v1714_v56 = vsel %vm6008_vm14, %v1709_v43, 0.0 }
 0x965   : > { %v1715_v44 = vadd.f32 %v1714_v56, %v1713_v41 }
 0x967   : > { %1716 = vadd.xlane.f32.xlu1 %v1715_v44 }
 0x9f4   : > { %v1717_v0 = vpop.xlane.xlu1 %1716 }
 0x9f5   : > { %v1719_v8 = vmul.f32 0.00390625, %v1717_v0 }
 0x9f7   : > { %v1720_v51 = vsub.f32 %v1707_v36, %v1719_v8  ;;  %v1721_v52 = vsub.f32 %v1709_v43, %v1719_v8 }
 0x9f9   : > { %v1722_v34 = vmul.f32 %v1720_v51, %v1720_v51  ;;  %v1723_v55 = vmul.f32 %v1721_v52, %v1721_v52 }
 0x9fb   : > { %v1724_v7 = vsel %vm6008_vm14, %v1722_v34, 0.0  ;;  %v1725_v10 = vsel %vm6008_vm14, %v1723_v55, 0.0  ;;  %vm1748_vm14 = vcmask 1043864  }
 0x9fc   : > { %v1726_v42 = vadd.f32 %v1725_v10, %v1724_v7 }
 0x9fe   : > { %1727 = vadd.xlane.f32.xlu0 %v1726_v42 }
 0xa8b   : > { %v1728_v53 = vpop.xlane.xlu0 %1727 }
 0xa8c   : > { %v1729_v58 = vmul.f32 0.00390625, %v1728_v53 }
 0xa8e   : > { %v1730_v1 = vadd.f32 1e-05, %v1729_v58 }
 0xa90   : > { %4124 = vrsqrt.f32 %v1730_v1 }
 0xa9a   : > { %v4125_v63 = vpop.eup %4124 }
 0xa9b   : > { %v1733_v23 = vmul.f32 %v4125_v63, %v1721_v52  ;;  %v1732_v38 = vmul.f32 %v4125_v63, %v1720_v51 }
 0xa9d   : > { %v1735_v36 = vmax.f32 %v1733_v23, 0.0  ;;  %v1734_v41 = vmax.f32 %v1732_v38, 0.0 }
 0xa9f   : > { %1742 = vrot.lane.b32.xlu1 %v1735_v36, %s6080_s18  ;;  %1740 = vrot.lane.b32.xlu0 %v1734_v41, %s6080_s18  ;;  %s6026_s18 = smov 75  }
 0xb11   : > { %v1743_v43 = vpop.permute.xlu1 %1742  ;;  %v1741_v56 = vpop.permute.xlu0 %1740 }
 0xb12   : > { %1751 = vst.msk [vmem:[#allocation2 + $0x10] sm:$0xf] %vm1736_vm5, %v1743_v43  ;;  %v1744_v44 = vsel %vm1390_vm10, %v1741_v56, %v1743_v43  ;;  %vm1859_vm5 = vcmask 15360   ;;  %vm2175_vm10 = vcmask 171008  }
 0xb13   : > { %1749 = vst.msk [vmem:[#allocation2] sm:$0xf] %vm1748_vm14, %v1741_v56  ;;  %1750 = vst [vmem:[#allocation2 + $0x8] sm:$0xf] %v1744_v44  ;;  %vm2589_vm14 = vcmask 433152  }
 0xb14   : > { %1753 = vst.msk [vmem:[#allocation2 + $0x10] sm:$0xf] %vm1752_vm12, %v4138_v2  ;;  %vm6105_vm12 = vcmask 400384  }
 0xb1a   : > { %v2118_v0 = vld [vmem:[#allocation2] sm:$0xf]  ;;  %v1786_v51 = vld [vmem:[#allocation2 + $0x8] sm:$0xf] }
 0xb1b   : > { %v1785_v8 = vld [vmem:[#allocation2] sm:$0xf]  ;;  %2124 = vrot.lane.b32.xlu1 %v2118_v0, %s4180_s15  ;;  %v1799_v34 = vmul.f32 %v4901_v25, %v1786_v51  ;;  %v2120_v55 = vld [vmem:[#allocation2 + $0x10] sm:$0xf]  ;;  %v2119_v58 = vld [vmem:[#allocation2 + $0x8] sm:$0xf]  ;;  %v3925_v51 = vunpack.i.l.bf16 %v5148_v31 }
 0xb1c   : > { %v1798_v52 = vmul.f32 %v4904_v11, %v1785_v8  ;;  %2128 = vrot.lane.b32.xlu0 %v2120_v55, %s4180_s15  ;;  %v2532_v7 = vld [vmem:[#allocation2] sm:$0xf]  ;;  %v2534_v10 = vld [vmem:[#allocation2 + $0x10] sm:$0xf]  ;;  %v3920_v11 = vunpack.i.l.bf16 %v5108_v21  ;;  %v2533_v63 = vld [vmem:[#allocation2 + $0x8] sm:$0xf] }
 0xb1d   : > { %1801 = vst [vmem:[#allocation3 + $0x8] sm:$0xf] %v1799_v34  ;;  %v2952_v2 = vld [vmem:[#allocation2 + $0x10] sm:$0xf]  ;;  %v2950_v42 = vld [vmem:[#allocation2] sm:$0xf]  ;;  %v3921_v34 = vunpack.i.h.bf16 %v5108_v21 }
 0xb1e   : > { %1800 = vst [vmem:[#allocation3] sm:$0xf] %v1798_v52  ;;  %v1843_v53 = vld [vmem:[#allocation2] sm:$0xf]  ;;  %v2951_v36 = vld [vmem:[#allocation2 + $0x8] sm:$0xf] }
 0xb1f   : > { %2538 = vrot.lane.b32.xlu1 %v2532_v7, %s4188_s19  ;;  %v1864_v25 = vmul.f32 %v3920_v11, %v1843_v53  ;;  %v2323_v1 = vld [vmem:[#allocation2] sm:$0xf]  ;;  %v1845_v52 = vld [vmem:[#allocation2 + $0x10] sm:$0xf]  ;;  %v3926_v53 = vunpack.i.h.bf16 %v5148_v31  ;;  %v2057_v31 = vld [vmem:[#allocation2 + $0x8] sm:$0xf] }
 0xb20   : > { %2542 = vrot.lane.b32.xlu0 %v2534_v10, %s4188_s19  ;;  %v2329_v23 = vrot.slane %v2323_v1, 4  ;;  %v2738_v38 = vld [vmem:[#allocation2] sm:$0xf]  ;;  %v1866_v10 = vmul.f32 %v3921_v34, %v1845_v52 }
 0xb21   : > { %v2744_v41 = vrot.slane %v2738_v38, 4  ;;  %v1882_v43 = vld [vmem:[#allocation2] sm:$0xf]  ;;  %v1919_v38 = vsel %vm992_vm6, %v3925_v51, %v3926_v53  ;;  %vm2000_vm6 = vcmask 48128  }
 0xb22   : > { %v3162_v56 = vld [vmem:[#allocation2] sm:$0xf]  ;;  %v1888_v44 = vrot.slane %v1882_v43, 4 }
 0xb23   : > { %2956 = vrot.lane.b32.xlu1 %v2950_v42, %s4214_s23  ;;  %v1903_v0 = vld [vmem:[#allocation2] sm:$0xf]  ;;  %v3168_v8 = vrot.slane %v3162_v56, 4  ;;  %v1883_v42 = vld [vmem:[#allocation2 + $0x8] sm:$0xf]  ;;  %v3970_v56 = vunpack.i.l.bf16 %v5116_v28 }
 0xb24   : > { %2960 = vrot.lane.b32.xlu0 %v2952_v2, %s4214_s23  ;;  %v1923_v55 = vmul.f32 %v3925_v51, %v1903_v0  ;;  %v1984_v7 = vld [vmem:[#allocation2] sm:$0xf]  ;;  %v3935_v2 = vunpack.i.l.bf16 %v5152_v5  ;;  %v1889_v1 = vrot.slane %v1883_v42, 4  ;;  %v3936_v0 = vunpack.i.h.bf16 %v5152_v5 }
 0xb25   : > { %v2233_v52 = vld [vmem:[#allocation2] sm:$0xf] }
 0xb27   : > { %2126 = vrot.lane.b32.xlu1 %v2119_v58, %s4180_s15  ;;  %v2056_v58 = vld [vmem:[#allocation2] sm:$0xf]  ;;  %s4216_s15 = smov 122  }
 0xb28   : > { %1870 = vrot.lane.b32.xlu0 %v1864_v25, %s6081_s28  ;;  %v2005_v25 = vmul.f32 %v3935_v2, %v1984_v7  ;;  %v2058_v7 = vld [vmem:[#allocation2 + $0x10] sm:$0xf] }
 0xb2b   : > { %2540 = vrot.lane.b32.xlu1 %v2533_v63, %s4188_s19  ;;  %s4215_s19 = smov 29   ;;  %v3955_v63 = vunpack.i.l.bf16 %v5156_v6 }
 0xb2c   : > { %2332 = vrot.lane.b32.xlu0 %v2329_v23, %s6036_s13  ;;  %v1904_v23 = vld [vmem:[#allocation2 + $0x8] sm:$0xf] }
 0xb2d   : > { %v1924_v43 = vmul.f32 %v1919_v38, %v1904_v23  ;;  %v2170_v23 = vld [vmem:[#allocation2 + $0x10] sm:$0xf]  ;;  %v3971_v38 = vunpack.i.h.bf16 %v5116_v28  ;;  %v6086_v28 = vunpack.i.l.bf16 %v5160_v18 }
 0xb2f   : > { %2958 = vrot.lane.b32.xlu1 %v2951_v36, %s4214_s23  ;;  %v2067_v36 = vmul.f32 %v3955_v63, %v2056_v58  ;;  %s6084_s23 = smov 62  }
 0xb30   : > { %2747 = vrot.lane.b32.xlu0 %v2744_v41, %s6034_s21  ;;  %v2168_v41 = vld [vmem:[#allocation2] sm:$0xf] }
 0xb33   : > { %1891 = vrot.lane.b32.xlu1 %v1888_v44, %s4177_s14  ;;  %v1986_v44 = vld [vmem:[#allocation2 + $0x10] sm:$0xf] }
 0xb34   : > { %3171 = vrot.lane.b32.xlu0 %v3168_v8, %s4215_s19  ;;  %v2180_v8 = vmul.f32 %v3970_v56, %v2168_v41  ;;  %v2007_v51 = vmul.f32 %v3936_v0, %v1986_v44  ;;  %v2344_v41 = vld [vmem:[#allocation2] sm:$0xf]  ;;  %v6011_v44 = vunpack.i.l.bf16 %v5120_v40 }
 0xb37   : > { %1929 = vrot.lane.b32.xlu1 %v1923_v55, %s4178_s26  ;;  %v6012_v55 = vunpack.i.l.bf16 %v5160_v18 }
 0xb38   : > { %1874 = vrot.lane.b32.xlu0 %v1866_v10, %s6081_s28  ;;  %v3956_v10 = vunpack.i.h.bf16 %v5156_v6  ;;  %v6040_v6 = vunpack.i.l.bf16 %v5110_v27 }
 0xb39   : > { %v2244_v42 = vmul.f32 %v6012_v55, %v2233_v52  ;;  %v3976_v52 = vunpack.i.h.bf16 %v5160_v18  ;;  %v6015_v55 = vunpack.i.l.bf16 %v5170_v60  ;;  %v6055_v18 = vunpack.i.l.bf16 %v5112_v62 }
 0xb3a   : > { %v2069_v58 = vmul.f32 %v3956_v10, %v2058_v7  ;;  %v2407_v7 = vld [vmem:[#allocation2] sm:$0xf]  ;;  %v2063_v5 = vsel %vm1054_vm8, %v3955_v63, %v3956_v10  ;;  %v2176_v63 = vsel %vm2175_vm10, %v3970_v56, %v3971_v38  ;;  %vm2414_vm8 = vcmask 310272  }
 0xb3b   : > { %2011 = vrot.lane.b32.xlu1 %v2005_v25, %s4216_s15  ;;  %v2294_v25 = vld [vmem:[#allocation2] sm:$0xf]  ;;  %v2240_v56 = vsel %vm1166_vm13, %v6086_v28, %v3976_v52  ;;  %vm3010_vm10 = vcmask 695296  }
 0xb3c   : > { %1893 = vrot.lane.b32.xlu0 %v1889_v1, %s4177_s14  ;;  %v6010_v1 = vunpack.i.l.bf16 %v5162_v14 }
 0xb3f   : > { %2073 = vrot.lane.b32.xlu1 %v2067_v36, %s4152_s29  ;;  %v2305_v36 = vmul.f32 %v6010_v1, %v2294_v25  ;;  %v6013_v25 = vunpack.i.l.bf16 %v5166_v3  ;;  %v2470_v1 = vld [vmem:[#allocation2] sm:$0xf] }
 0xb40   : > { %1931 = vrot.lane.b32.xlu0 %v1924_v43, %s4178_s26  ;;  %v2182_v43 = vmul.f32 %v3971_v38, %v2170_v23  ;;  %v6018_v23 = vunpack.i.h.bf16 %v5162_v14 }
 0xb43   : > { %2186 = vrot.lane.b32.xlu1 %v2180_v8, %s4217_s16  ;;  %v2235_v8 = vld [vmem:[#allocation2 + $0x10] sm:$0xf] }
 0xb44   : > { %2015 = vrot.lane.b32.xlu0 %v2007_v51, %s4216_s15  ;;  %v2355_v51 = vmul.f32 %v6011_v44, %v2344_v41  ;;  %v6014_v44 = vunpack.i.l.bf16 %v5124_v35 }
 0xb47   : > { %2250 = vrot.lane.b32.xlu1 %v2244_v42, %s4182_s25  ;;  %v2246_v42 = vmul.f32 %v3976_v52, %v2235_v8  ;;  %v6088_v52 = vunpack.i.h.bf16 %v5162_v14 }
 0xb48   : > { %2077 = vrot.lane.b32.xlu0 %v2069_v58, %s4152_s29  ;;  %v2296_v58 = vld [vmem:[#allocation2 + $0x10] sm:$0xf] }
 0xb49   : > { %v2307_v41 = vmul.f32 %v6018_v23, %v2296_v58  ;;  %v2584_v23 = vld [vmem:[#allocation2 + $0x10] sm:$0xf] }
 0xb4b   : > { %2311 = vrot.lane.b32.xlu1 %v2305_v36, %s6082_s11  ;;  %v2419_v36 = vmul.f32 %v6013_v25, %v2407_v7  ;;  %v2346_v7 = vld [vmem:[#allocation2 + $0x10] sm:$0xf]  ;;  %v6016_v25 = vunpack.i.h.bf16 %v5120_v40 }
 0xb4c   : > { %2190 = vrot.lane.b32.xlu0 %v2182_v43, %s4217_s16  ;;  %v2325_v43 = vld [vmem:[#allocation2 + $0x10] sm:$0xf] }
 0xb4d   : > { %v2331_v8 = vrot.slane %v2325_v43, 4  ;;  %v2357_v43 = vmul.f32 %v6016_v25, %v2346_v7  ;;  %v2472_v7 = vld [vmem:[#allocation2 + $0x10] sm:$0xf]  ;;  %v6023_v25 = vunpack.i.h.bf16 %v5124_v35 }
 0xb4f   : > { %2361 = vrot.lane.b32.xlu1 %v2355_v51, %s6024_s27  ;;  %v2481_v51 = vmul.f32 %v6014_v44, %v2470_v1  ;;  %v2409_v1 = vld [vmem:[#allocation2 + $0x10] sm:$0xf]  ;;  %v6020_v44 = vunpack.i.h.bf16 %v5166_v3 }
 0xb50   : > { %2254 = vrot.lane.b32.xlu0 %v2246_v42, %s4182_s25  ;;  %v2582_v42 = vld [vmem:[#allocation2] sm:$0xf] }
 0xb51   : > { %v2594_v58 = vmul.f32 %v6015_v55, %v2582_v42  ;;  %v2421_v42 = vmul.f32 %v6020_v44, %v2409_v1  ;;  %v6019_v55 = vunpack.i.l.bf16 %v5130_v24  ;;  %v6025_v1 = vunpack.i.h.bf16 %v5170_v60  ;;  %v2649_v44 = vld [vmem:[#allocation2 + $0x10] sm:$0xf] }
 0xb53   : > { %2425 = vrot.lane.b32.xlu1 %v2419_v36, %s6021_s12  ;;  %v2647_v36 = vld [vmem:[#allocation2] sm:$0xf] }
 0xb54   : > { %2315 = vrot.lane.b32.xlu0 %v2307_v41, %s6082_s11  ;;  %v6017_v41 = vunpack.i.l.bf16 %v5172_v57 }
 0xb57   : > { %2487 = vrot.lane.b32.xlu1 %v2481_v51, %s6083_s17  ;;  %v2708_v51 = vld [vmem:[#allocation2] sm:$0xf] }
 0xb58   : > { %2336 = vrot.lane.b32.xlu0 %v2331_v8, %s6036_s13  ;;  %v2658_v8 = vmul.f32 %v6017_v41, %v2647_v36  ;;  %v2483_v36 = vmul.f32 %v6023_v25, %v2472_v7  ;;  %v6022_v41 = vunpack.i.l.bf16 %v5176_v4  ;;  %v6028_v7 = vunpack.i.h.bf16 %v5172_v57  ;;  %v2710_v25 = vld [vmem:[#allocation2 + $0x10] sm:$0xf]  ;;  %s4224_s13 = smov 28  }
 0xb5b   : > { %2600 = vrot.lane.b32.xlu1 %v2594_v58, %s6026_s18  ;;  %v2720_v58 = vmul.f32 %v6019_v55, %v2708_v51  ;;  %v2596_v51 = vmul.f32 %v6025_v1, %v2584_v23  ;;  %v6027_v55 = vunpack.i.l.bf16 %v5134_v32  ;;  %v6033_v23 = vunpack.i.h.bf16 %v5130_v24  ;;  %v3003_v1 = vld [vmem:[#allocation2] sm:$0xf] }
 0xb5c   : > { %2365 = vrot.lane.b32.xlu0 %v2357_v43, %s6024_s27  ;;  %v2759_v43 = vld [vmem:[#allocation2] sm:$0xf]  ;;  %s4220_s27 = smov 58  }
 0xb5f   : > { %2664 = vrot.lane.b32.xlu1 %v2658_v8, %s6029_s20  ;;  %v2770_v8 = vmul.f32 %v6022_v41, %v2759_v43  ;;  %v2660_v43 = vmul.f32 %v6028_v7, %v2649_v44  ;;  %v6030_v41 = vunpack.i.l.bf16 %v5180_v37  ;;  %v6031_v44 = vunpack.i.l.bf16 %v5140_v20 }
 0xb60   : > { %2429 = vrot.lane.b32.xlu0 %v2421_v42, %s6021_s12  ;;  %v2822_v42 = vld [vmem:[#allocation2] sm:$0xf]  ;;  %s6085_s12 = smov 60   ;;  %v6032_v7 = vunpack.i.l.bf16 %v5184_v48 }
 0xb63   : > { %2726 = vrot.lane.b32.xlu1 %v2720_v58, %s6084_s23  ;;  %v2834_v58 = vmul.f32 %v6027_v55, %v2822_v42  ;;  %v2722_v42 = vmul.f32 %v6033_v23, %v2710_v25  ;;  %v3015_v55 = vmul.f32 %v6031_v44, %v3003_v1  ;;  %v4056_v25 = vunpack.i.h.bf16 %v5176_v4  ;;  %v2887_v23 = vld [vmem:[#allocation2 + $0x10] sm:$0xf] }
 0xb64   : > { %2491 = vrot.lane.b32.xlu0 %v2483_v36, %s6083_s17  ;;  %v2885_v36 = vld [vmem:[#allocation2] sm:$0xf]  ;;  %v6035_v1 = vunpack.i.l.bf16 %v5186_v22  ;;  %v6037_v44 = vunpack.i.h.bf16 %v5134_v32 }
 0xb67   : > { %2776 = vrot.lane.b32.xlu1 %v2770_v8, %s6085_s12  ;;  %v2897_v8 = vmul.f32 %v6030_v41, %v2885_v36  ;;  %v2761_v36 = vld [vmem:[#allocation2 + $0x10] sm:$0xf]  ;;  %v3131_v41 = vld [vmem:[#allocation2] sm:$0xf] }
 0xb68   : > { %2604 = vrot.lane.b32.xlu0 %v2596_v51, %s6026_s18  ;;  %v2740_v51 = vld [vmem:[#allocation2 + $0x10] sm:$0xf]  ;;  %s4221_s18 = smov 47  }
 0xb6b   : > { %2840 = vrot.lane.b32.xlu1 %v2834_v58, %s4220_s27  ;;  %v2746_v58 = vrot.slane %v2740_v51, 4  ;;  %v2772_v51 = vmul.f32 %v4056_v25, %v2761_v36  ;;  %v6039_v36 = vunpack.i.h.bf16 %v5180_v37 }
 0xb6c   : > { %2668 = vrot.lane.b32.xlu0 %v2660_v43, %s6029_s20  ;;  %v3068_v43 = vld [vmem:[#allocation2] sm:$0xf]  ;;  %s4222_s20 = smov 43  }
 0xb6f   : > { %2903 = vrot.lane.b32.xlu1 %v2897_v8, %s4221_s18  ;;  %v3079_v8 = vmul.f32 %v6032_v7, %v3068_v43  ;;  %v6038_v7 = vunpack.i.l.bf16 %v5144_v39 }
 0xb70   : > { %2730 = vrot.lane.b32.xlu0 %v2722_v42, %s6084_s23  ;;  %v2824_v42 = vld [vmem:[#allocation2 + $0x10] sm:$0xf] }
 0xb71   : > { %v2836_v43 = vmul.f32 %v6037_v44, %v2824_v42  ;;  %v1860_v42 = vsel %vm1859_vm5, %v3920_v11, %v3921_v34  ;;  %v3133_v11 = vld [vmem:[#allocation2 + $0x10] sm:$0xf]  ;;  %v4106_v34 = vunpack.i.h.bf16 %v5186_v22  ;;  %vm2829_vm5 = vcmask 572416  }
 0xb73   : > { %3021 = vrot.lane.b32.xlu1 %v3015_v55, %s4222_s20  ;;  %v3143_v55 = vmul.f32 %v6035_v1, %v3131_v41  ;;  %v2899_v41 = vmul.f32 %v6039_v36, %v2887_v23  ;;  %v3005_v1 = vld [vmem:[#allocation2 + $0x10] sm:$0xf] }
 0xb74   : > { %2751 = vrot.lane.b32.xlu0 %v2746_v58, %s6034_s21  ;;  %v3184_v58 = vld [vmem:[#allocation2] sm:$0xf]  ;;  %s4223_s21 = smov 30   ;;  %v3070_v23 = vld [vmem:[#allocation2 + $0x10] sm:$0xf] }
 0xb75   : > { %v1905_v36 = vld [vmem:[#allocation2 + $0x10] sm:$0xf] }
 0xb77   : > { %3085 = vrot.lane.b32.xlu1 %v3079_v8, %s6074_s22  ;;  %v3196_v8 = vmul.f32 %v6038_v7, %v3184_v58 }
 0xb78   : > { %2780 = vrot.lane.b32.xlu0 %v2772_v51, %s6085_s12  ;;  %v1844_v51 = vld [vmem:[#allocation2 + $0x8] sm:$0xf] }
 0xb79   : > { %v1865_v44 = vmul.f32 %v1860_v42, %v1844_v51  ;;  %v1985_v51 = vld [vmem:[#allocation2 + $0x8] sm:$0xf] }
 0xb7b   : > { %3149 = vrot.lane.b32.xlu1 %v3143_v55, %s4223_s21  ;;  %v4091_v55 = vunpack.i.h.bf16 %v5140_v20 }
 0xb7c   : > { %2844 = vrot.lane.b32.xlu0 %v2836_v43, %s4220_s27  ;;  %v1884_v43 = vld [vmem:[#allocation2 + $0x10] sm:$0xf] }
 0xb7d   : > { %v3017_v58 = vmul.f32 %v4091_v55, %v3005_v1  ;;  %v1890_v7 = vrot.slane %v1884_v43, 4  ;;  %v3164_v1 = vld [vmem:[#allocation2 + $0x10] sm:$0xf] }
 0xb7f   : > { %3202 = vrot.lane.b32.xlu1 %v3196_v8, %s4224_s13  ;;  %v4096_v8 = vunpack.i.h.bf16 %v5184_v48 }
 0xb80   : > { %2907 = vrot.lane.b32.xlu0 %v2899_v41, %s4221_s18  ;;  %v3145_v41 = vmul.f32 %v4106_v34, %v3133_v11  ;;  %v6059_v11 = vunpack.i.h.bf16 %v5144_v39 }
 0xb81   : > { %v3081_v21 = vmul.f32 %v4096_v8, %v3070_v23 }
 0xb83   : > { %1872 = vrot.lane.b32.xlu1 %v1865_v44, %s6081_s28  ;;  %v1925_v44 = vmul.f32 %v3926_v53, %v1905_v36  ;;  %v1802_v53 = vld [vmem:[#allocation2] sm:$0xf]  ;;  %v3186_v36 = vld [vmem:[#allocation2 + $0x10] sm:$0xf]  ;;  %s6097_s28 = smov 108  }
 0xb84   : > { %3025 = vrot.lane.b32.xlu0 %v3017_v58, %s4222_s20  ;;  %v3170_v58 = vrot.slane %v3164_v1, 4  ;;  %v3198_v1 = vmul.f32 %v6059_v11, %v3186_v36  ;;  %v2234_v36 = vld [vmem:[#allocation2 + $0x8] sm:$0xf]  ;;  %v6060_v11 = vunpack.i.l.bf16 %v5138_v30 }
 0xb87   : > { %1895 = vrot.lane.b32.xlu1 %v1890_v7, %s4177_s14  ;;  %v2001_v7 = vsel %vm2000_vm6, %v3935_v2, %v3936_v0  ;;  %v2068_v0 = vmul.f32 %v2063_v5, %v2057_v31  ;;  %v2085_v5 = vld [vmem:[#allocation2] sm:$0xf]  ;;  %s6090_s14 = smov 112   ;;  %vm2892_vm6 = vcmask 662528  }
 0xb88   : > { %3089 = vrot.lane.b32.xlu0 %v3081_v21, %s6074_s22  ;;  %v2006_v23 = vmul.f32 %v2001_v7, %v1985_v51  ;;  %v6041_v21 = vunpack.i.l.bf16 %v5106_v59  ;;  %v2169_v51 = vld [vmem:[#allocation2 + $0x8] sm:$0xf]  ;;  %v2024_v7 = vld [vmem:[#allocation2] sm:$0xf] }
 0xb8b   : > { %1933 = vrot.lane.b32.xlu1 %v1925_v44, %s4178_s26  ;;  %v1822_v44 = vmul.f32 %v6041_v21, %v1802_v53  ;;  %v2136_v21 = vld [vmem:[#allocation2] sm:$0xf]  ;;  %s6093_s26 = smov 93  }
 0xb8c   : > { %3153 = vrot.lane.b32.xlu0 %v3145_v41, %s4223_s21 }
 0xb8d   : > { %v2125_v42 = vpop.permute.xlu1 %2124  ;;  %v1828_v31 = vrot.slane %v1822_v44, 4 }
 0xb8e   : > { %v2129_v43 = vpop.permute.xlu0 %2128 }
 0xb8f   : > { %2013 = vrot.lane.b32.xlu1 %v2006_v23, %s4216_s15  ;;  %v2035_v23 = vmul.f32 %v6040_v6, %v2024_v7  ;;  %v2295_v6 = vld [vmem:[#allocation2 + $0x8] sm:$0xf]  ;;  %s6099_s15 = smov 92  }
 0xb90   : > { %3175 = vrot.lane.b32.xlu0 %v3170_v58, %s4215_s19  ;;  %v2181_v58 = vmul.f32 %v2176_v63, %v2169_v51 }
 0xb91   : > { %v2539_v2 = vpop.permute.xlu1 %2538  ;;  %v2041_v51 = vrot.slane %v2035_v23, 4 }
 0xb92   : > { %v2543_v41 = vpop.permute.xlu0 %2542 }
 0xb93   : > { %2075 = vrot.lane.b32.xlu1 %v2068_v0, %s4152_s29  ;;  %v6056_v0 = vunpack.i.l.bf16 %v5154_v33  ;;  %s6087_s29 = smov 127  }
 0xb94   : > { %3206 = vrot.lane.b32.xlu0 %v3198_v1, %s4224_s13  ;;  %v2245_v1 = vmul.f32 %v2240_v56, %v2234_v36  ;;  %v2147_v36 = vmul.f32 %v6055_v18, %v2136_v21  ;;  %v2916_v18 = vld [vmem:[#allocation2] sm:$0xf] }
 0xb95   : > { %v2957_v10 = vpop.permute.xlu1 %2956  ;;  %v2097_v44 = vmul.f32 %v6056_v0, %v2085_v5  ;;  %v6058_v0 = vunpack.i.l.bf16 %v5178_v46 }
 0xb96   : > { %v2961_v53 = vpop.permute.xlu0 %2960 }
 0xb97   : > { %2188 = vrot.lane.b32.xlu1 %v2181_v58, %s4217_s16  ;;  %v2103_v5 = vrot.slane %v2097_v44, 4  ;;  %v2153_v44 = vrot.slane %v2147_v36, 4  ;;  %s6049_s16 = smov 106  }
 0xb98   : > { %1831 = vrot.lane.b32.xlu0 %v1828_v31, %s6087_s29  ;;  %v6089_v31 = vunpack.i.l.bf16 %v5162_v14  ;;  %v6053_v14 = vunpack.i.l.bf16 %v5114_v16 }
 0xb99   : > { %v2127_v38 = vpop.permute.xlu1 %2126 }
 0xb9a   : > { %v2130_v7 = vsel %vm1121_vm7, %v2125_v42, %v2127_v38  ;;  %v2131_v63 = vsel %vm1121_vm7, %v2127_v38, %v2129_v43  ;;  %v5412_v58 = vpop.permute.xlu0 %1870  ;;  %v2301_v23 = vsel %vm821_vm0, %v6089_v31, %v6088_v52  ;;  %vm2962_vm0 = vcmask 367616   ;;  %v2345_v52 = vld [vmem:[#allocation2 + $0x8] sm:$0xf]  ;;  %v2262_v31 = vld [vmem:[#allocation2] sm:$0xf] }
 0xb9b   : > { %2134 = vst [vmem:[#allocation3 + $0x50] sm:$0xf] %v2130_v7  ;;  %2135 = vst [vmem:[#allocation3 + $0x58] sm:$0xf] %v2131_v63  ;;  %2252 = vrot.lane.b32.xlu1 %v2245_v1, %s4182_s25  ;;  %v2306_v43 = vmul.f32 %v2301_v23, %v2295_v6  ;;  %v2324_v1 = vld [vmem:[#allocation2 + $0x8] sm:$0xf]  ;;  %v6094_v23 = vunpack.i.h.bf16 %v5120_v40 }
 0xb9c   : > { %2044 = vrot.lane.b32.xlu0 %v2041_v51, %s6090_s14  ;;  %v2199_v7 = vld [vmem:[#allocation2] sm:$0xf]  ;;  %s6091_s25 = smov 110   ;;  %v2330_v21 = vrot.slane %v2324_v1, 4  ;;  %vm6096_vm7 = vcmask 293888  }
 0xb9d   : > { %v2541_v42 = vpop.permute.xlu1 %2540  ;;  %v2408_v1 = vld [vmem:[#allocation2 + $0x8] sm:$0xf] }
 0xb9e   : > { %v2544_v28 = vsel %vm1407_vm1, %v2539_v2, %v2541_v42  ;;  %v2545_v56 = vsel %vm1407_vm1, %v2541_v42, %v2543_v41  ;;  %v5426_v38 = vpop.permute.xlu0 %2332  ;;  %v2211_v2 = vmul.f32 %v6053_v14, %v2199_v7  ;;  %v6095_v42 = vunpack.i.l.bf16 %v5120_v40  ;;  %v2373_v7 = vld [vmem:[#allocation2] sm:$0xf] }
 0xb9f   : > { %2548 = vst [vmem:[#allocation3 + $0xc0] sm:$0xf] %v2544_v28  ;;  %2549 = vst [vmem:[#allocation3 + $0xc8] sm:$0xf] %v2545_v56  ;;  %2313 = vrot.lane.b32.xlu1 %v2306_v43, %s6082_s11  ;;  %v6043_v40 = vunpack.i.l.bf16 %v5118_v47  ;;  %s6102_s11 = smov 90   ;;  %vm2715_vm1 = vcmask 539648  }
 0xba0   : > { %2106 = vrot.lane.b32.xlu0 %v2103_v5, %s6091_s25  ;;  %v2351_v43 = vsel %vm6096_vm7, %v6095_v42, %v6094_v23  ;;  %v6044_v5 = vunpack.i.l.bf16 %v5158_v45  ;;  %v2217_v28 = vrot.slane %v2211_v2, 4  ;;  %v2471_v23 = vld [vmem:[#allocation2 + $0x8] sm:$0xf]  ;;  %v2438_v42 = vld [vmem:[#allocation2] sm:$0xf]  ;;  %vm3191_vm7 = vcmask 818176  }
 0xba1   : > { %v2959_v6 = vpop.permute.xlu1 %2958  ;;  %v2385_v2 = vmul.f32 %v6043_v40, %v2373_v7  ;;  %v2550_v40 = vld [vmem:[#allocation2] sm:$0xf] }
 0xba2   : > { %v2963_v41 = vsel %vm2962_vm0, %v2957_v10, %v2959_v6  ;;  %v2964_v51 = vsel %vm2962_vm0, %v2959_v6, %v2961_v53  ;;  %v5433_v63 = vpop.permute.xlu0 %2747  ;;  %v2356_v53 = vmul.f32 %v2351_v43, %v2345_v52  ;;  %v2273_v36 = vmul.f32 %v6044_v5, %v2262_v31  ;;  %v2853_v14 = vld [vmem:[#allocation2] sm:$0xf] }
 0xba3   : > { %6092 = vst [vmem:[#allocation5_spill] sm:$0xff] %v5433_v63  ;;  %2967 = vst [vmem:[#allocation3 + $0x130] sm:$0xf] %v2963_v41  ;;  %2334 = vrot.lane.b32.xlu1 %v2330_v21, %s6093_s26  ;;  %v6100_v6 = vunpack.i.h.bf16 %v5166_v3  ;;  %v6101_v21 = vunpack.i.l.bf16 %v5166_v3  ;;  %v6103_v43 = vunpack.i.h.bf16 %v5124_v35  ;;  %v6104_v3 = vunpack.i.l.bf16 %v5124_v35  ;;  %s6106_s26 = smov 95  }
 0xba4   : > { %2968 = vst [vmem:[#allocation3 + $0x138] sm:$0xf] %v2964_v51  ;;  %2156 = vrot.lane.b32.xlu0 %v2153_v44, %s6097_s28  ;;  %v2279_v52 = vrot.slane %v2273_v36, 4  ;;  %vm3138_vm0 = vcmask 801792  }
 0xba5   : > { %v1892_v10 = vpop.permute.xlu1 %1891  ;;  %v2415_v44 = vsel %vm2414_vm8, %v6101_v21, %v6100_v6  ;;  %v2391_v6 = vrot.slane %v2385_v2, 4  ;;  %vm1957_vm8 = vcmask 39936  }
 0xba6   : > { %v5445_v56 = vpop.permute.xlu0 %3171  ;;  %v2420_v51 = vmul.f32 %v2415_v44, %v2408_v1  ;;  %v2583_v44 = vld [vmem:[#allocation2 + $0x8] sm:$0xf] }
 0xba7   : > { %6098 = vst [vmem:[#allocation6_spill] sm:$0xff] %v5445_v56  ;;  %2363 = vrot.lane.b32.xlu1 %v2356_v53, %s6099_s15  ;;  %v2477_v53 = vsel %vm6105_vm12, %v6104_v3, %v6103_v43  ;;  %v6048_v43 = vunpack.i.l.bf16 %v5122_v17  ;;  %v6108_v3 = vunpack.i.l.bf16 %v5170_v60  ;;  %s6045_s15 = smov 91   ;;  %v6133_v56 = vunpack.i.l.bf16 %v5144_v39 }
 0xba8   : > { %2220 = vrot.lane.b32.xlu0 %v2217_v28, %s6049_s16  ;;  %v6042_v28 = vunpack.i.l.bf16 %v5164_v12  ;;  %v2482_v36 = vmul.f32 %v2477_v53, %v2471_v23  ;;  %s6118_s16 = smov 61   ;;  %vm6136_vm12 = vcmask 7168  }
 0xba9   : > { %v1930_v41 = vpop.permute.xlu1 %1929 }
 0xbaa   : > { %v5456_v31 = vpop.permute.xlu0 %1874  ;;  %v2449_v7 = vmul.f32 %v6042_v28, %v2438_v42 }
 0xbab   : > { %2427 = vrot.lane.b32.xlu1 %v2420_v51, %s6102_s11  ;;  %v2499_v51 = vld [vmem:[#allocation2] sm:$0xf]  ;;  %s6112_s11 = smov 80  }
 0xbac   : > { %2282 = vrot.lane.b32.xlu0 %v2279_v52, %s6106_s26  ;;  %v6107_v52 = vunpack.i.h.bf16 %v5170_v60  ;;  %v2511_v53 = vmul.f32 %v6048_v43, %v2499_v51  ;;  %v6047_v60 = vunpack.i.l.bf16 %v5168_v19  ;;  %v6051_v43 = vunpack.i.l.bf16 %v5128_v26 }
 0xbad   : > { %v5466_v1 = vpop.permute.xlu1 %2011 }
 0xbae   : > { %v5470_v21 = vpop.permute.xlu0 %1893  ;;  %v2590_v23 = vsel %vm2589_vm14, %v6108_v3, %v6107_v52  ;;  %v2517_v52 = vrot.slane %v2511_v53, 4  ;;  %vm6140_vm14 = vcmask 130048  }
 0xbaf   : > { %v1897_v35 = vsel %vm969_vm11, %v1892_v10, %v5470_v21  ;;  %2489 = vrot.lane.b32.xlu1 %v2482_v36, %s6083_s17  ;;  %v2595_v42 = vmul.f32 %v2590_v23, %v2583_v44  ;;  %v2455_v10 = vrot.slane %v2449_v7, 4  ;;  %v2648_v36 = vld [vmem:[#allocation2 + $0x8] sm:$0xf]  ;;  %s6109_s17 = smov 75  }
 0xbb0   : > { %1901 = vst [vmem:[#allocation3 + $0x10] sm:$0xf0] %v1897_v35  ;;  %2394 = vrot.lane.b32.xlu0 %v2391_v6, %s6045_s15  ;;  %v6110_v6 = vunpack.i.h.bf16 %v5172_v57  ;;  %v6111_v35 = vunpack.i.l.bf16 %v5172_v57  ;;  %v2709_v23 = vld [vmem:[#allocation2 + $0x8] sm:$0xf]  ;;  %v6052_v57 = vunpack.i.l.bf16 %v5126_v54  ;;  %s6116_s15 = smov 78  }
 0xbb1   : > { %v5481_v2 = vpop.permute.xlu1 %2073 }
 0xbb2   : > { %v5485_v28 = vpop.permute.xlu0 %1931  ;;  %v2654_v44 = vsel %vm360_vm9, %v6111_v35, %v6110_v6 }
 0xbb3   : > { %v1935_v5 = vsel %vm1009_vm3, %v1930_v41, %v5485_v28  ;;  %2602 = vrot.lane.b32.xlu1 %v2595_v42, %s6109_s17  ;;  %v2659_v51 = vmul.f32 %v2654_v44, %v2648_v36  ;;  %v2561_v41 = vmul.f32 %v6047_v60, %v2550_v40  ;;  %v2613_v42 = vld [vmem:[#allocation2] sm:$0xf]  ;;  %s6113_s17 = smov 64   ;;  %v2739_v60 = vld [vmem:[#allocation2 + $0x8] sm:$0xf] }
 0xbb4   : > { %1939 = vst [vmem:[#allocation3 + $0x20] sm:$0xf] %v1935_v5  ;;  %2458 = vrot.lane.b32.xlu0 %v2455_v10, %s6112_s11  ;;  %v6114_v5 = vunpack.i.h.bf16 %v5130_v24  ;;  %v6115_v10 = vunpack.i.l.bf16 %v5130_v24  ;;  %v2625_v40 = vmul.f32 %v6052_v57, %v2613_v42  ;;  %v2788_v42 = vld [vmem:[#allocation2] sm:$0xf]  ;;  %v2823_v57 = vld [vmem:[#allocation2 + $0x8] sm:$0xf] }
 0xbb5   : > { %v5497_v7 = vpop.permute.xlu1 %2186  ;;  %v2567_v53 = vrot.slane %v2561_v41, 4  ;;  %v2760_v41 = vld [vmem:[#allocation2 + $0x8] sm:$0xf] }
 0xbb6   : > { %v5501_v3 = vpop.permute.xlu0 %2015  ;;  %v2716_v6 = vsel %vm2715_vm1, %v6115_v10, %v6114_v5  ;;  %v2631_v5 = vrot.slane %v2625_v40, 4  ;;  %vm2092_vm1 = vcmask 146432  }
 0xbb7   : > { %2666 = vrot.lane.b32.xlu1 %v2659_v51, %s6113_s17  ;;  %v2721_v35 = vmul.f32 %v2716_v6, %v2709_v23  ;;  %v2676_v51 = vld [vmem:[#allocation2] sm:$0xf]  ;;  %s6117_s17 = smov 76   ;;  %v6054_v6 = vunpack.i.l.bf16 %v5174_v61 }
 0xbb8   : > { %2520 = vrot.lane.b32.xlu0 %v2517_v52, %s6116_s15  ;;  %v2745_v52 = vrot.slane %v2739_v60, 4  ;;  %v2687_v23 = vmul.f32 %v6051_v43, %v2676_v51 }
 0xbb9   : > { %v5510_v36 = vpop.permute.xlu1 %2250  ;;  %v2800_v51 = vmul.f32 %v6054_v6, %v2788_v42 }
 0xbba   : > { %v5514_v44 = vpop.permute.xlu0 %2077  ;;  %v2693_v43 = vrot.slane %v2687_v23, 4 }
 0xbbb   : > { %2728 = vrot.lane.b32.xlu1 %v2721_v35, %s6084_s23  ;;  %v6119_v35 = vunpack.i.l.bf16 %v5176_v4  ;;  %s4227_s23 = smov 74   ;;  %v6057_v4 = vunpack.i.l.bf16 %v5132_v49 }
 0xbbc   : > { %2570 = vrot.lane.b32.xlu0 %v2567_v53, %s6117_s17 }
 0xbbd   : > { %v5519_v24 = vpop.permute.xlu1 %2311  ;;  %v2766_v53 = vsel %vm1562_vm15, %v6119_v35, %v4056_v25  ;;  %v6120_v25 = vunpack.i.h.bf16 %v5134_v32  ;;  %v2864_v23 = vmul.f32 %v6057_v4, %v2853_v14  ;;  %v2969_v4 = vld [vmem:[#allocation2] sm:$0xf] }
 0xbbe   : > { %v5523_v10 = vpop.permute.xlu0 %2190  ;;  %v2771_v40 = vmul.f32 %v2766_v53, %v2760_v41  ;;  %v2806_v53 = vrot.slane %v2800_v51, 4  ;;  %v2928_v51 = vmul.f32 %v6058_v0, %v2916_v18  ;;  %v3069_v0 = vld [vmem:[#allocation2 + $0x8] sm:$0xf] }
 0xbbf   : > { %2749 = vrot.lane.b32.xlu1 %v2745_v52, %s6118_s16  ;;  %s6122_s16 = smov 63  }
 0xbc0   : > { %2634 = vrot.lane.b32.xlu0 %v2631_v5, %s4227_s23  ;;  %v6121_v5 = vunpack.i.l.bf16 %v5134_v32  ;;  %v6123_v32 = vunpack.i.h.bf16 %v5180_v37 }
 0xbc1   : > { %v5533_v60 = vpop.permute.xlu1 %2361 }
 0xbc2   : > { %v5537_v52 = vpop.permute.xlu0 %2254  ;;  %v2830_v35 = vsel %vm2829_vm5, %v6121_v5, %v6120_v25  ;;  %v2870_v5 = vrot.slane %v2864_v23, 4  ;;  %v2934_v23 = vrot.slane %v2928_v51, 4  ;;  %vm6144_vm5 = vcmask 162816  }
 0xbc3   : > { %2778 = vrot.lane.b32.xlu1 %v2771_v40, %s6085_s12  ;;  %v2835_v42 = vmul.f32 %v2830_v35, %v2823_v57  ;;  %v2886_v40 = vld [vmem:[#allocation2 + $0x8] sm:$0xf]  ;;  %s4228_s12 = smov 59  }
 0xbc4   : > { %2696 = vrot.lane.b32.xlu0 %v2693_v43, %s6122_s16  ;;  %v6124_v43 = vunpack.i.l.bf16 %v5180_v37  ;;  %v6061_v37 = vunpack.i.l.bf16 %v5136_v50 }
 0xbc5   : > { %v5546_v41 = vpop.permute.xlu1 %2425 }
 0xbc6   : > { %v5550_v6 = vpop.permute.xlu0 %2315  ;;  %v2893_v25 = vsel %vm2892_vm6, %v6124_v43, %v6123_v32  ;;  %v2981_v18 = vmul.f32 %v6061_v37, %v2969_v4  ;;  %v3916_v37 = vunpack.i.h.bf16 %v5106_v59  ;;  %vm2206_vm6 = vcmask 179200  }
 0xbc7   : > { %2842 = vrot.lane.b32.xlu1 %v2835_v42, %s4220_s27  ;;  %v2898_v14 = vmul.f32 %v2893_v25, %v2886_v40  ;;  %v3004_v42 = vld [vmem:[#allocation2 + $0x8] sm:$0xf]  ;;  %s4229_s27 = smov 46  }
 0xbc8   : > { %2809 = vrot.lane.b32.xlu0 %v2806_v53, %s4228_s12  ;;  %v6125_v53 = vunpack.i.l.bf16 %v5140_v20  ;;  %v6126_v20 = vunpack.i.l.bf16 %v5184_v48  ;;  %v6062_v48 = vunpack.i.l.bf16 %v5182_v29 }
 0xbc9   : > { %v5559_v57 = vpop.permute.xlu1 %2487 }
 0xbca   : > { %v5563_v35 = vpop.permute.xlu0 %2336  ;;  %v3011_v32 = vsel %vm3010_vm10, %v6125_v53, %v4091_v55  ;;  %v3075_v55 = vsel %vm1183_vm2, %v6126_v20, %v4096_v8  ;;  %v6128_v8 = vunpack.i.l.bf16 %v5186_v22  ;;  %v3931_v22 = vunpack.i.h.bf16 %v5150_v13 }
 0xbcb   : > { %2905 = vrot.lane.b32.xlu1 %v2898_v14, %s4221_s18  ;;  %v3016_v43 = vmul.f32 %v3011_v32, %v3004_v42  ;;  %v3034_v14 = vld [vmem:[#allocation2] sm:$0xf]  ;;  %v3080_v51 = vmul.f32 %v3075_v55, %v3069_v0  ;;  %v2987_v42 = vrot.slane %v2981_v18, 4  ;;  %v3132_v32 = vld [vmem:[#allocation2 + $0x8] sm:$0xf]  ;;  %vm6148_vm10 = vcmask 1031168  }
 0xbcc   : > { %2873 = vrot.lane.b32.xlu0 %v2870_v5, %s6076_s24  ;;  %v3046_v5 = vmul.f32 %v6060_v11, %v3034_v14  ;;  %v1804_v11 = vld [vmem:[#allocation2 + $0x10] sm:$0xf]  ;;  %s6153_s18 = smov 91  }
 0xbcd   : > { %v5572_v40 = vpop.permute.xlu1 %2600 }
 0xbce   : > { %v5576_v25 = vpop.permute.xlu0 %2365  ;;  %v3052_v20 = vrot.slane %v3046_v5, 4  ;;  %v1941_v5 = vld [vmem:[#allocation2] sm:$0xf] }
 0xbcf   : > { %3023 = vrot.lane.b32.xlu1 %v3016_v43, %s4222_s20  ;;  %v3097_v43 = vld [vmem:[#allocation2] sm:$0xf]  ;;  %s4230_s20 = smov 44  }
 0xbd0   : > { %2937 = vrot.lane.b32.xlu0 %v2934_v23, %s4229_s27  ;;  %v3139_v23 = vsel %vm3138_vm0, %v6128_v8, %v4106_v34  ;;  %v3109_v18 = vmul.f32 %v6062_v48, %v3097_v43  ;;  %v3930_v34 = vunpack.i.l.bf16 %v5150_v13  ;;  %v1824_v43 = vmul.f32 %v3916_v37, %v1804_v11  ;;  %v1942_v48 = vld [vmem:[#allocation2 + $0x8] sm:$0xf]  ;;  %vm6149_vm0 = vmmov %vm6148_vm10 }
 0xbd1   : > { %v5586_v4 = vpop.permute.xlu1 %2664  ;;  %v3144_v14 = vmul.f32 %v3139_v23, %v3132_v32 }
 0xbd2   : > { %6127 = vst [vmem:[#allocation7_spill] sm:$0xff] %v5586_v4  ;;  %v5590_v53 = vpop.permute.xlu0 %2429  ;;  %v3115_v8 = vrot.slane %v3109_v18, 4  ;;  %v1958_v13 = vsel %vm1957_vm8, %v3930_v34, %v3931_v22  ;;  %v1830_v18 = vrot.slane %v1824_v43, 4  ;;  %v1803_v4 = vld [vmem:[#allocation2 + $0x8] sm:$0xf]  ;;  %vm2380_vm8 = vcmask 302080  }
 0xbd3   : > { %3087 = vrot.lane.b32.xlu1 %v3080_v51, %s6074_s22  ;;  %v3163_v51 = vld [vmem:[#allocation2 + $0x8] sm:$0xf]  ;;  %s4231_s22 = smov 42   ;;  %v1943_v43 = vld [vmem:[#allocation2 + $0x10] sm:$0xf] }
 0xbd4   : > { %2990 = vrot.lane.b32.xlu0 %v2987_v42, %s4230_s20  ;;  %v3169_v32 = vrot.slane %v3163_v51, 4  ;;  %v1962_v51 = vmul.f32 %v3930_v34, %v1941_v5 }
 0xbd5   : > { %v5599_v0 = vpop.permute.xlu1 %2726 }
 0xbd6   : > { %6129 = vst [vmem:[#allocation8_spill] sm:$0xff] %v5599_v0  ;;  %v5603_v55 = vpop.permute.xlu0 %2491  ;;  %v1963_v0 = vmul.f32 %v1958_v13, %v1942_v48  ;;  %v1968_v34 = vrot.slane %v1962_v51, 4 }
 0xbd7   : > { %3151 = vrot.lane.b32.xlu1 %v3144_v14, %s4223_s21  ;;  %v3185_v14 = vld [vmem:[#allocation2 + $0x8] sm:$0xf]  ;;  %s4232_s21 = smov 31  }
 0xbd8   : > { %3055 = vrot.lane.b32.xlu0 %v3052_v20, %s4231_s22  ;;  %v6132_v20 = vunpack.i.h.bf16 %v5144_v39  ;;  %v1969_v48 = vrot.slane %v1963_v0, 4  ;;  %v6139_v0 = vunpack.i.l.bf16 %v5110_v27 }
 0xbd9   : > { %v5610_v42 = vpop.permute.xlu1 %2776 }
 0xbda   : > { %6130 = vst [vmem:[#allocation9_spill] sm:$0xff] %v5610_v42  ;;  %v5612_v23 = vpop.permute.xlu0 %2604  ;;  %v3192_v63 = vsel %vm3191_vm7, %v6133_v56, %v6132_v20  ;;  %v3941_v56 = vunpack.i.h.bf16 %v5110_v27  ;;  %v2087_v20 = vld [vmem:[#allocation2 + $0x10] sm:$0xf]  ;;  %v3961_v27 = vunpack.i.h.bf16 %v5114_v16  ;;  %vm6151_vm7 = vcmask 269312  }
 0xbdb   : > { %6131 = vst [vmem:[#allocation10_spill] sm:$0xff] %v5612_v23  ;;  %3173 = vrot.lane.b32.xlu1 %v3169_v32, %s4215_s19  ;;  %v3197_v11 = vmul.f32 %v3192_v63, %v3185_v14  ;;  %v2026_v32 = vld [vmem:[#allocation2 + $0x10] sm:$0xf]  ;;  %v6135_v23 = vunpack.i.l.bf16 %v5106_v59  ;;  %s4233_s19 = smov 123   ;;  %v3946_v59 = vunpack.i.h.bf16 %v5154_v33 }
 0xbdc   : > { %3118 = vrot.lane.b32.xlu0 %v3115_v8, %s4232_s21  ;;  %v2037_v8 = vmul.f32 %v3941_v56, %v2026_v32  ;;  %v2031_v32 = vsel %vm6140_vm14, %v6139_v0, %v3941_v56  ;;  %v6142_v56 = vunpack.i.l.bf16 %v5154_v33  ;;  %v3966_v33 = vunpack.i.h.bf16 %v5158_v45 }
 0xbdd   : > { %v5620_v42 = vpop.permute.xlu1 %2840  ;;  %v1818_v39 = vsel %vm6136_vm12, %v6135_v23, %v3916_v37  ;;  %v1964_v37 = vmul.f32 %v3931_v22, %v1943_v43  ;;  %vm6155_vm12 = vcmask 392192   ;;  %vm2506_vm14 = vcmask 408576  }
 0xbde   : > { %6134 = vst [vmem:[#allocation11_spill] sm:$0xff] %v5620_v42  ;;  %v5622_v9 = vpop.permute.xlu0 %2668  ;;  %v1823_v63 = vmul.f32 %v1818_v39, %v1803_v4  ;;  %v2043_v51 = vrot.slane %v2037_v8, 4  ;;  %v2025_v4 = vld [vmem:[#allocation2 + $0x8] sm:$0xf]  ;;  %v2138_v39 = vld [vmem:[#allocation2 + $0x10] sm:$0xf] }
 0xbdf   : > { %3204 = vrot.lane.b32.xlu1 %v3197_v11, %s4224_s13  ;;  %v2099_v11 = vmul.f32 %v3946_v59, %v2087_v20  ;;  %v1970_v22 = vrot.slane %v1964_v37, 4  ;;  %s6147_s13 = smov 106  }
 0xbe0   : > { %1835 = vrot.lane.b32.xlu0 %v1830_v18, %s6087_s29  ;;  %v1829_v13 = vrot.slane %v1823_v63, 4  ;;  %v2036_v63 = vmul.f32 %v2031_v32, %v2025_v4  ;;  %v2264_v32 = vld [vmem:[#allocation2 + $0x10] sm:$0xf] }
 0xbe1   : > { %v5630_v5 = vpop.permute.xlu1 %2903 }
 0xbe2   : > { %6137 = vst [vmem:[#allocation12_spill] sm:$0xff] %v5630_v5  ;;  %v5632_v14 = vpop.permute.xlu0 %2730  ;;  %v2201_v5 = vld [vmem:[#allocation2 + $0x10] sm:$0xf]  ;;  %v2042_v37 = vrot.slane %v2036_v63, 4  ;;  %v2275_v63 = vmul.f32 %v3966_v33, %v2264_v32 }
 0xbe3   : > { %1971 = vrot.lane.b32.xlu1 %v1968_v34, %s4233_s19  ;;  %v3951_v34 = vunpack.i.h.bf16 %v5112_v62 }
 0xbe4   : > { %1973 = vrot.lane.b32.xlu0 %v1969_v48, %s4233_s19  ;;  %v2105_v48 = vrot.slane %v2099_v11, 4  ;;  %v2137_v11 = vld [vmem:[#allocation2 + $0x8] sm:$0xf] }
 0xbe5   : > { %v5635_v23 = vpop.permute.xlu1 %3021  ;;  %v2149_v8 = vmul.f32 %v3951_v34, %v2138_v39 }
 0xbe6   : > { %6138 = vst [vmem:[#allocation13_spill] sm:$0xff] %v5635_v23  ;;  %v5637_v18 = vpop.permute.xlu0 %2751  ;;  %v2086_v23 = vld [vmem:[#allocation2 + $0x8] sm:$0xf] }
 0xbe7   : > { %1833 = vrot.lane.b32.xlu1 %v1829_v13, %s6087_s29  ;;  %v2093_v13 = vsel %vm2092_vm1, %v6142_v56, %v3946_v59  ;;  %v2155_v4 = vrot.slane %v2149_v8, 4  ;;  %v2200_v56 = vld [vmem:[#allocation2 + $0x8] sm:$0xf]  ;;  %vm6158_vm1 = vcmask 424960   ;;  %s4235_s29 = smov 26  }
 0xbe8   : > { %2048 = vrot.lane.b32.xlu0 %v2043_v51, %s6090_s14  ;;  %v2098_v0 = vmul.f32 %v2093_v13, %v2086_v23  ;;  %v2375_v13 = vld [vmem:[#allocation2 + $0x10] sm:$0xf] }
 0xbe9   : > { %v5645_v43 = vpop.permute.xlu1 %3085 }
 0xbea   : > { %6141 = vst [vmem:[#allocation14_spill] sm:$0xff] %v5645_v43  ;;  %v5647_v20 = vpop.permute.xlu0 %2780  ;;  %v2213_v43 = vmul.f32 %v3961_v27, %v2201_v5  ;;  %v2104_v23 = vrot.slane %v2098_v0, 4 }
 0xbeb   : > { %1975 = vrot.lane.b32.xlu1 %v1970_v22, %s4233_s19  ;;  %v6143_v22 = vunpack.i.l.bf16 %v5112_v62  ;;  %v6146_v62 = vunpack.i.l.bf16 %v5114_v16  ;;  %v2440_v16 = vld [vmem:[#allocation2 + $0x10] sm:$0xf] }
 0xbec   : > { %2110 = vrot.lane.b32.xlu0 %v2105_v48, %s6091_s25  ;;  %v2219_v8 = vrot.slane %v2213_v43, 4 }
 0xbed   : > { %v5653_v51 = vpop.permute.xlu1 %3149  ;;  %v2143_v42 = vsel %vm6144_vm5, %v6143_v22, %v3951_v34  ;;  %v2207_v34 = vsel %vm2206_vm6, %v6146_v62, %v3961_v27  ;;  %v6150_v27 = vunpack.i.l.bf16 %v5158_v45  ;;  %v6152_v45 = vunpack.i.l.bf16 %v5118_v47 }
 0xbee   : > { %v5655_v39 = vpop.permute.xlu0 %2844  ;;  %v2148_v5 = vmul.f32 %v2143_v42, %v2137_v11  ;;  %v2281_v42 = vrot.slane %v2275_v63, 4  ;;  %v3996_v63 = vunpack.i.h.bf16 %v5164_v12  ;;  %vm2620_vm5 = vcmask 441344  }
 0xbef   : > { %2046 = vrot.lane.b32.xlu1 %v2042_v37, %s6090_s14  ;;  %v3981_v37 = vunpack.i.h.bf16 %v5118_v47  ;;  %v6154_v47 = vunpack.i.l.bf16 %v5164_v12  ;;  %v2615_v12 = vld [vmem:[#allocation2 + $0x10] sm:$0xf]  ;;  %vm2795_vm6 = vcmask 564224  }
 0xbf0   : > { %2160 = vrot.lane.b32.xlu0 %v2155_v4, %s6097_s28  ;;  %v2154_v22 = vrot.slane %v2148_v5, 4  ;;  %v2269_v5 = vsel %vm6151_vm7, %v6150_v27, %v3966_v33  ;;  %v2439_v27 = vld [vmem:[#allocation2 + $0x8] sm:$0xf] }
 0xbf1   : > { %v5663_v59 = vpop.permute.xlu1 %3202  ;;  %v2387_v0 = vmul.f32 %v3981_v37, %v2375_v13  ;;  %v2381_v33 = vsel %vm2380_vm8, %v6152_v45, %v3981_v37  ;;  %v2445_v37 = vsel %vm6155_vm12, %v6154_v47, %v3996_v63  ;;  %v2500_v45 = vld [vmem:[#allocation2 + $0x8] sm:$0xf]  ;;  %v6157_v47 = vunpack.i.l.bf16 %v5168_v19 }
 0xbf2   : > { %6145 = vst [vmem:[#allocation15_spill] sm:$0xff] %v5663_v59  ;;  %v5665_v48 = vpop.permute.xlu0 %2907  ;;  %v2212_v59 = vmul.f32 %v2207_v34, %v2200_v56  ;;  %v2451_v56 = vmul.f32 %v3996_v63, %v2440_v16  ;;  %v6156_v63 = vunpack.i.l.bf16 %v5122_v17  ;;  %vm6168_vm8 = vcmask 654336  }
 0xbf3   : > { %2108 = vrot.lane.b32.xlu1 %v2104_v23, %s6091_s25  ;;  %v2263_v23 = vld [vmem:[#allocation2 + $0x8] sm:$0xf]  ;;  %v2393_v13 = vrot.slane %v2387_v0, 4  ;;  %vm6169_vm12 = vcmask 752640  }
 0xbf4   : > { %2224 = vrot.lane.b32.xlu0 %v2219_v8, %s6147_s13  ;;  %v2218_v8 = vrot.slane %v2212_v59, 4 }
 0xbf5   : > { %v1873_v4 = vpop.permute.xlu1 %1872 }
 0xbf6   : > { %v1876_v43 = vsel %vm6148_vm10, %v5412_v58, %v1873_v4  ;;  %v1877_v11 = vsel %vm6149_vm0, %v1873_v4, %v5456_v31  ;;  %v5676_v32 = vpop.permute.xlu0 %3025  ;;  %v2274_v31 = vmul.f32 %v2269_v5, %v2263_v23  ;;  %v2374_v4 = vld [vmem:[#allocation2 + $0x8] sm:$0xf]  ;;  %v2457_v23 = vrot.slane %v2451_v56, 4  ;;  %v2552_v5 = vld [vmem:[#allocation2 + $0x10] sm:$0xf] }
 0xbf7   : > { %1880 = vst [vmem:[#allocation3 + $0x10] sm:$0xf] %v1876_v43  ;;  %1881 = vst [vmem:[#allocation3 + $0x18] sm:$0xf] %v1877_v11  ;;  %2158 = vrot.lane.b32.xlu1 %v2154_v22, %s6097_s28  ;;  %v2501_v22 = vld [vmem:[#allocation2 + $0x10] sm:$0xf]  ;;  %v2386_v0 = vmul.f32 %v2381_v33, %v2374_v4 }
 0xbf8   : > { %2286 = vrot.lane.b32.xlu0 %v2281_v42, %s6106_s26  ;;  %v4001_v42 = vunpack.i.h.bf16 %v5122_v17  ;;  %v2280_v43 = vrot.slane %v2274_v31, 4  ;;  %v2678_v17 = vld [vmem:[#allocation2 + $0x10] sm:$0xf]  ;;  %vm6165_vm0 = vcmask 760832  }
 0xbf9   : > { %v1896_v58 = vpop.permute.xlu1 %1895  ;;  %v2392_v31 = vrot.slane %v2386_v0, 4  ;;  %vm6166_vm7 = vmmov %vm6165_vm0 }
 0xbfa   : > { %v1898_v62 = vsel %vm969_vm11, %v5470_v21, %v1896_v58  ;;  %v5686_v34 = vpop.permute.xlu0 %3089  ;;  %v2513_v11 = vmul.f32 %v4001_v42, %v2501_v22  ;;  %vm2017_vm11 = vcmask 998400   ;;  %v4016_v58 = vunpack.i.h.bf16 %v5168_v19 }
 0xbfb   : > { %1902 = vst [vmem:[#allocation3 + $0x18] sm:$0xf0] %v1898_v62  ;;  %2222 = vrot.lane.b32.xlu1 %v2218_v8, %s6147_s13  ;;  %v2507_v33 = vsel %vm2506_vm14, %v6156_v63, %v4001_v42  ;;  %v4031_v42 = vunpack.i.h.bf16 %v5128_v26  ;;  %v6159_v19 = vunpack.i.l.bf16 %v5126_v54  ;;  %vm6170_vm14 = vmmov %vm6169_vm12 }
 0xbfc   : > { %2398 = vrot.lane.b32.xlu0 %v2393_v13, %s6153_s18  ;;  %v2563_v56 = vmul.f32 %v4016_v58, %v2552_v5  ;;  %v2519_v13 = vrot.slane %v2513_v11, 4  ;;  %v2551_v5 = vld [vmem:[#allocation2 + $0x8] sm:$0xf] }
 0xbfd   : > { %v1934_v59 = vpop.permute.xlu1 %1933 }
 0xbfe   : > { %v1936_v21 = vsel %vm1009_vm3, %v5485_v28, %v1934_v59  ;;  %v5695_v16 = vpop.permute.xlu0 %3153  ;;  %v2450_v28 = vmul.f32 %v2445_v37, %v2439_v27  ;;  %v4021_v59 = vunpack.i.h.bf16 %v5126_v54  ;;  %vm2192_vm3 = vcmask 875520   ;;  %v2855_v54 = vld [vmem:[#allocation2 + $0x10] sm:$0xf] }
 0xbff   : > { %1940 = vst [vmem:[#allocation3 + $0x28] sm:$0xf] %v1936_v21  ;;  %2284 = vrot.lane.b32.xlu1 %v2280_v43, %s6106_s26  ;;  %v2557_v37 = vsel %vm6158_vm1, %v6157_v47, %v4016_v58  ;;  %vm2976_vm1 = vcmask 687104  }
 0xc00   : > { %2462 = vrot.lane.b32.xlu0 %v2457_v23, %s6112_s11  ;;  %v2456_v0 = vrot.slane %v2450_v28, 4  ;;  %v2627_v11 = vmul.f32 %v4021_v59, %v2615_v12  ;;  %v2621_v58 = vsel %vm2620_vm5, %v6159_v19, %v4021_v59  ;;  %v4046_v12 = vunpack.i.h.bf16 %v5174_v61 }
 0xc01   : > { %v2014_v8 = vpop.permute.xlu1 %2013  ;;  %v6160_v59 = vunpack.i.l.bf16 %v5128_v26  ;;  %v2789_v26 = vld [vmem:[#allocation2 + $0x8] sm:$0xf]  ;;  %vm3041_vm5 = vcmask 703488  }
 0xc02   : > { %v2018_v62 = vsel %vm2017_vm11, %v5466_v1, %v2014_v8  ;;  %v2019_v4 = vsel %vm2017_vm11, %v2014_v8, %v5501_v3  ;;  %v5705_v22 = vpop.permute.xlu0 %3175  ;;  %v2512_v1 = vmul.f32 %v2507_v33, %v2500_v45  ;;  %v2569_v3 = vrot.slane %v2563_v56, 4  ;;  %v2790_v45 = vld [vmem:[#allocation2 + $0x10] sm:$0xf] }
 0xc03   : > { %2022 = vst [vmem:[#allocation3 + $0x30] sm:$0xf] %v2018_v62  ;;  %2023 = vst [vmem:[#allocation3 + $0x38] sm:$0xf] %v2019_v4  ;;  %2396 = vrot.lane.b32.xlu1 %v2392_v31, %s6153_s18  ;;  %v2562_v8 = vmul.f32 %v2557_v37, %v2551_v5  ;;  %v2689_v31 = vmul.f32 %v4031_v42, %v2678_v17  ;;  %v2633_v28 = vrot.slane %v2627_v11, 4  ;;  %vm2923_vm11 = vcmask 670720  }
 0xc04   : > { %2524 = vrot.lane.b32.xlu0 %v2519_v13, %s6116_s15  ;;  %v2614_v4 = vld [vmem:[#allocation2 + $0x8] sm:$0xf] }
 0xc05   : > { %v2076_v43 = vpop.permute.xlu1 %2075  ;;  %v2568_v33 = vrot.slane %v2562_v8, 4  ;;  %v6164_v8 = vunpack.i.l.bf16 %v5174_v61  ;;  %v2971_v61 = vld [vmem:[#allocation2 + $0x10] sm:$0xf] }
 0xc06   : > { %v2079_v23 = vsel %vm1071_vm4, %v5481_v2, %v2076_v43  ;;  %v2080_v21 = vsel %vm1071_vm4, %v2076_v43, %v5514_v44  ;;  %v5716_v27 = vpop.permute.xlu0 %3206  ;;  %v2518_v44 = vrot.slane %v2512_v1, 4  ;;  %v2802_v43 = vmul.f32 %v4046_v12, %v2790_v45 }
 0xc07   : > { %2083 = vst [vmem:[#allocation3 + $0x40] sm:$0xf] %v2079_v23  ;;  %2084 = vst [vmem:[#allocation3 + $0x48] sm:$0xf] %v2080_v21  ;;  %2460 = vrot.lane.b32.xlu1 %v2456_v0, %s6112_s11  ;;  %vm6161_vm4 = vcmask 531456   ;;  %v4051_v21 = vunpack.i.h.bf16 %v5132_v49 }
 0xc08   : > { %2574 = vrot.lane.b32.xlu0 %v2569_v3, %s6117_s17  ;;  %v2677_v3 = vld [vmem:[#allocation2 + $0x8] sm:$0xf]  ;;  %v2683_v23 = vsel %vm6161_vm4, %v6160_v59, %v4031_v42  ;;  %v2808_v47 = vrot.slane %v2802_v43, 4  ;;  %v2918_v42 = vld [vmem:[#allocation2 + $0x10] sm:$0xf]  ;;  %vm6173_vm4 = vcmask 646144  }
 0xc09   : > { %v2189_v2 = vpop.permute.xlu1 %2188  ;;  %v2866_v17 = vmul.f32 %v4051_v21, %v2855_v54  ;;  %v3036_v59 = vld [vmem:[#allocation2 + $0x10] sm:$0xf] }
 0xc0a   : > { %v2193_v56 = vsel %vm2192_vm3, %v5497_v7, %v2189_v2  ;;  %v2194_v13 = vsel %vm2192_vm3, %v2189_v2, %v5523_v10  ;;  %v5726_v62 = vpop.permute.xlu0 %1831  ;;  %v2626_v7 = vmul.f32 %v2621_v58, %v2614_v4  ;;  %v2695_v10 = vrot.slane %v2689_v31, 4 }
 0xc0b   : > { %2197 = vst [vmem:[#allocation3 + $0x60] sm:$0xf] %v2193_v56  ;;  %2198 = vst [vmem:[#allocation3 + $0x68] sm:$0xf] %v2194_v13  ;;  %2522 = vrot.lane.b32.xlu1 %v2518_v44, %s6116_s15  ;;  %v2796_v31 = vsel %vm2795_vm6, %v6164_v8, %v4046_v12  ;;  %v6167_v12 = vunpack.i.l.bf16 %v5132_v49  ;;  %v2917_v49 = vld [vmem:[#allocation2 + $0x8] sm:$0xf] }
 0xc0c   : > { %2638 = vrot.lane.b32.xlu0 %v2633_v28, %s4227_s23  ;;  %v2632_v5 = vrot.slane %v2626_v7, 4  ;;  %v4066_v28 = vunpack.i.h.bf16 %v5178_v46  ;;  %v2801_v13 = vmul.f32 %v2796_v31, %v2789_v26  ;;  %v4071_v7 = vunpack.i.h.bf16 %v5136_v50  ;;  %v2970_v26 = vld [vmem:[#allocation2 + $0x8] sm:$0xf]  ;;  %vm6174_vm6 = vmmov %vm6173_vm4  ;;  %s6217_s15 = sshll.u32 %s6219_s10, 3 }
 0xc0d   : > { %v2253_v63 = vpop.permute.xlu1 %2252  ;;  %vm2431_vm3 = vcmask 736256   ;;  %v4086_v31 = vunpack.i.h.bf16 %v5182_v29 }
 0xc0e   : > { %v2256_v0 = vsel %vm1183_vm2, %v5510_v36, %v2253_v63  ;;  %v2257_v1 = vsel %vm1183_vm2, %v2253_v63, %v5537_v52  ;;  %v5737_v11 = vpop.permute.xlu0 %2044  ;;  %v2688_v52 = vmul.f32 %v2683_v23, %v2677_v3  ;;  %vm6162_vm2 = vcmask 769024   ;;  %v2854_v63 = vld [vmem:[#allocation2 + $0x8] sm:$0xf] }
 0xc0f   : > { %2260 = vst [vmem:[#allocation3 + $0x70] sm:$0xf] %v2256_v0  ;;  %2261 = vst [vmem:[#allocation3 + $0x78] sm:$0xf] %v2257_v1  ;;  %2572 = vrot.lane.b32.xlu1 %v2568_v33, %s6117_s17  ;;  %v2930_v4 = vmul.f32 %v4066_v28, %v2918_v42  ;;  %v2860_v33 = vsel %vm6168_vm8, %v6167_v12, %v4051_v21  ;;  %v2807_v43 = vrot.slane %v2801_v13, 4  ;;  %v4081_v23 = vunpack.i.h.bf16 %v5138_v30 }
 0xc10   : > { %2700 = vrot.lane.b32.xlu0 %v2695_v10, %s6122_s16  ;;  %vm6163_vm10 = vmmov %vm6162_vm2  ;;  %v2983_v10 = vmul.f32 %v4071_v7, %v2971_v61  ;;  %v6171_v21 = vunpack.i.l.bf16 %v5178_v46  ;;  %v3099_v42 = vld [vmem:[#allocation2 + $0x10] sm:$0xf]  ;;  %v6172_v46 = vunpack.i.l.bf16 %v5136_v50  ;;  %v3035_v50 = vld [vmem:[#allocation2 + $0x8] sm:$0xf]  ;;  %v4101_v61 = vunpack.i.h.bf16 %v5142_v15 }
 0xc11   : > { %v2314_v36 = vpop.permute.xlu1 %2313  ;;  %v2936_v0 = vrot.slane %v2930_v4, 4 }
 0xc12   : > { %v2317_v37 = vsel %vm6162_vm2, %v5519_v24, %v2314_v36  ;;  %v2318_v2 = vsel %vm6163_vm10, %v2314_v36, %v5550_v6  ;;  %v5749_v44 = vpop.permute.xlu0 %2106  ;;  %v2694_v24 = vrot.slane %v2688_v52, 4  ;;  %v2872_v6 = vrot.slane %v2866_v17, 4 }
 0xc13   : > { %2321 = vst [vmem:[#allocation3 + $0x80] sm:$0xf] %v2317_v37  ;;  %2322 = vst [vmem:[#allocation3 + $0x88] sm:$0xf] %v2318_v2  ;;  %2636 = vrot.lane.b32.xlu1 %v2632_v5, %s4227_s23  ;;  %v2924_v36 = vsel %vm2923_vm11, %v6171_v21, %v4066_v28  ;;  %v3048_v52 = vmul.f32 %v4081_v23, %v3036_v59  ;;  %v2989_v17 = vrot.slane %v2983_v10, 4  ;;  %vm2606_vm2 = vcmask 613376   ;;  %s329_s23 = scalar_lea.vmem %s5934_s9, %s6217_s15 }
 0xc14   : > { %2813 = vrot.lane.b32.xlu0 %v2808_v47, %s4228_s12  ;;  %v2929_v5 = vmul.f32 %v2924_v36, %v2917_v49  ;;  %v2977_v8 = vsel %vm2976_vm1, %v6172_v46, %v4071_v7  ;;  %vm3104_vm10 = vcmask 793600   ;;  %vm6184_vm11 = vcmask 498688  }
 0xc15   : > { %v2335_v56 = vpop.permute.xlu1 %2334  ;;  %vm2846_vm1 = vcmask 474112  }
 0xc16   : > { %v2338_v45 = vsel %vm6165_vm0, %v5426_v38, %v2335_v56  ;;  %v2339_v19 = vsel %vm6166_vm7, %v2335_v56, %v5563_v35  ;;  %v5760_v58 = vpop.permute.xlu0 %2156  ;;  %v2865_v35 = vmul.f32 %v2860_v33, %v2854_v63  ;;  %v2982_v56 = vmul.f32 %v2977_v8, %v2970_v26 }
 0xc17   : > { %2342 = vst [vmem:[#allocation3 + $0x80] sm:$0xf0] %v2338_v45  ;;  %2343 = vst [vmem:[#allocation3 + $0x88] sm:$0xf0] %v2339_v19  ;;  %2698 = vrot.lane.b32.xlu1 %v2694_v24, %s6122_s16  ;;  %v3054_v24 = vrot.slane %v3048_v52, 4  ;;  %v6175_v19 = vunpack.i.l.bf16 %v5138_v30  ;;  %v4100_v30 = vunpack.i.l.bf16 %v5142_v15  ;;  %vm3222_vm0 = vcmask 826368  }
 0xc18   : > { %2877 = vrot.lane.b32.xlu0 %v2872_v6, %s6076_s24  ;;  %v3217_v45 = vld [vmem:[#allocation2 + $0x10] sm:$0xf]  ;;  %v2988_v12 = vrot.slane %v2982_v56, 4  ;;  %v3216_v15 = vld [vmem:[#allocation2 + $0x8] sm:$0xf]  ;;  %vm6180_vm7 = vcmask 506880  }
 0xc19   : > { %v2364_v38 = vpop.permute.xlu1 %2363  ;;  %v3042_v63 = vsel %vm3041_vm5, %v6175_v19, %v4081_v23  ;;  %v3229_v33 = vmul.f32 %v4101_v61, %v3217_v45  ;;  %vm6181_vm8 = vmmov %vm6180_vm7  ;;  %v3250_v19 = vld [vmem:[#allocation2 + $0x8] sm:$0xf]  ;;  %vm2909_vm5 = vcmask 384000  }
 0xc1a   : > { %v2367_v1 = vsel %vm6169_vm12, %v5533_v60, %v2364_v38  ;;  %v2368_v3 = vsel %vm6170_vm14, %v2364_v38, %v5576_v25  ;;  %v5772_v54 = vpop.permute.xlu0 %2220  ;;  %v2871_v25 = vrot.slane %v2865_v35, 4  ;;  %vm6185_vm12 = vmmov %vm6184_vm11  ;;  %vm6187_vm14 = vcmask 490496  }
 0xc1b   : > { %2371 = vst [vmem:[#allocation3 + $0x90] sm:$0xf] %v2367_v1  ;;  %2372 = vst [vmem:[#allocation3 + $0x98] sm:$0xf] %v2368_v3  ;;  %2811 = vrot.lane.b32.xlu1 %v2807_v43, %s4228_s12  ;;  %v6176_v43 = vld [vmem:[#allocation10_spill] sm:$0xff]  ;;  %v6177_v3 = vunpack.i.l.bf16 %v5182_v29  ;;  %v3235_v36 = vrot.slane %v3229_v33, 4  ;;  %v3223_v29 = vsel %vm3222_vm0, %v4100_v30, %v4101_v61 }
 0xc1c   : > { %2941 = vrot.lane.b32.xlu0 %v2936_v0, %s4229_s27  ;;  %v3098_v0 = vld [vmem:[#allocation2 + $0x8] sm:$0xf]  ;;  %v3215_v1 = vld [vmem:[#allocation2] sm:$0xf] }
 0xc1d   : > { %v2428_v60 = vpop.permute.xlu1 %2427  ;;  %v3105_v49 = vsel %vm3104_vm10, %v6177_v3, %v4086_v31  ;;  %v3227_v21 = vmul.f32 %v4100_v30, %v3215_v1  ;;  %v4236_v1 = vmov 0   ;;  %v6189_v30 = vld [vmem:[#allocation11_spill] sm:$0xff]  ;;  %vm6195_vm10 = vcmask 1039360  }
 0xc1e   : > { %v2432_v47 = vsel %vm2431_vm3, %v5546_v41, %v2428_v60  ;;  %v2433_v37 = vsel %vm2431_vm3, %v2428_v60, %v5590_v53  ;;  %v5782_v2 = vpop.permute.xlu0 %2282  ;;  %v2935_v41 = vrot.slane %v2929_v5, 4  ;;  %v3111_v53 = vmul.f32 %v4086_v31, %v3099_v42  ;;  %v6178_v60 = vld [vmem:[#allocation7_spill] sm:$0xff]  ;;  %v6179_v42 = vld [vmem:[#allocation8_spill] sm:$0xff]  ;;  %v3251_v31 = vld [vmem:[#allocation2 + $0x10] sm:$0xf]  ;;  %4117 = vset.pattern.permute.xlu0 %v4236_v1 }
 0xc1f   : > { %2436 = vst [vmem:[#allocation3 + $0xa0] sm:$0xf] %v2432_v47  ;;  %2437 = vst [vmem:[#allocation3 + $0xa8] sm:$0xf] %v2433_v37  ;;  %2875 = vrot.lane.b32.xlu1 %v2871_v25, %s6076_s24  ;;  %v3110_v23 = vmul.f32 %v3105_v49, %v3098_v0  ;;  %s4234_s24 = smov 27   ;;  %v3228_v37 = vmul.f32 %v3223_v29, %v3216_v15  ;;  %v3233_v26 = vrot.slane %v3227_v21, 4 }
 0xc20   : > { %2994 = vrot.lane.b32.xlu0 %v2989_v17, %s4230_s20  ;;  %v3117_v7 = vrot.slane %v3111_v53, 4  ;;  %vm6188_vm3 = vmmov %vm6187_vm14 }
 0xc21   : > { %v2490_v28 = vpop.permute.xlu1 %2489  ;;  %v3116_v47 = vrot.slane %v3110_v23, 4  ;;  %v6190_v23 = vld [vmem:[#allocation12_spill] sm:$0xff]  ;;  %vm6196_vm0 = vmmov %vm6195_vm10 }
 0xc22   : > { %v2493_v13 = vsel %vm6173_vm4, %v5559_v57, %v2490_v28  ;;  %v2494_v4 = vsel %vm6174_vm6, %v2490_v28, %v5603_v55  ;;  %v5793_v6 = vpop.permute.xlu0 %2394  ;;  %v3047_v55 = vmul.f32 %v3042_v63, %v3035_v50  ;;  %v6182_v28 = vld [vmem:[#allocation4_spill] sm:$0xff]  ;;  %vm3027_vm4 = vcmask 351232  }
 0xc23   : > { %2497 = vst [vmem:[#allocation3 + $0xb0] sm:$0xf] %v2493_v13  ;;  %2498 = vst [vmem:[#allocation3 + $0xb8] sm:$0xf] %v2494_v4  ;;  %2939 = vrot.lane.b32.xlu1 %v2935_v41, %s4229_s27  ;;  %v4116_v41 = vunpack.i.h.bf16 %v6182_v28  ;;  %v4115_v56 = vunpack.i.l.bf16 %v6182_v28  ;;  %v6183_v4 = vld [vmem:[#allocation5_spill] sm:$0xff]  ;;  %vm3177_vm6 = vcmask 236544  }
 0xc24   : > { %3059 = vrot.lane.b32.xlu0 %v3054_v24, %s4231_s22  ;;  %v3234_v24 = vrot.slane %v3228_v37, 4  ;;  %v6193_v28 = vld [vmem:[#allocation6_spill] sm:$0xff] }
 0xc25   : > { %v2603_v57 = vpop.permute.xlu1 %2602  ;;  %v3263_v13 = vmul.f32 %v4116_v41, %v3251_v31 }
 0xc26   : > { %v2607_v38 = vsel %vm2606_vm2, %v5572_v40, %v2603_v57  ;;  %v2608_v35 = vsel %vm2606_vm2, %v2603_v57, %v6176_v43  ;;  %v5802_v10 = vpop.permute.xlu0 %2458  ;;  %v3053_v40 = vrot.slane %v3047_v55, 4  ;;  %v6186_v55 = vld [vmem:[#allocation9_spill] sm:$0xff]  ;;  %vm1977_vm2 = vcmask 1006592  }
 0xc27   : > { %2611 = vst [vmem:[#allocation3 + $0xd0] sm:$0xf] %v2607_v38  ;;  %2612 = vst [vmem:[#allocation3 + $0xd8] sm:$0xf] %v2608_v35  ;;  %2992 = vrot.lane.b32.xlu1 %v2988_v12, %s4230_s20  ;;  %v3249_v12 = vld [vmem:[#allocation2] sm:$0xf] }
 0xc28   : > { %3122 = vrot.lane.b32.xlu0 %v3117_v7, %s4232_s21  ;;  %v3331_v35 = vld [vmem:[%s5931_s6] sm:$0x7]  ;;  %v3261_v0 = vmul.f32 %v4115_v56, %v3249_v12 }
 0xc29   : > { %v2667_v59 = vpop.permute.xlu1 %2666 }
 0xc2a   : > { %v2670_v25 = vsel %vm360_vm9, %v6178_v60, %v2667_v59  ;;  %v2671_v5 = vsel %vm360_vm9, %v2667_v59, %v5622_v9  ;;  %v5813_v52 = vpop.permute.xlu0 %2520  ;;  %vm3256_vm9 = vcmask 834560  }
 0xc2b   : > { %2674 = vst [vmem:[#allocation3 + $0xe0] sm:$0xf] %v2670_v25  ;;  %2675 = vst [vmem:[#allocation3 + $0xe8] sm:$0xf] %v2671_v5  ;;  %3057 = vrot.lane.b32.xlu1 %v3053_v40, %s4231_s22  ;;  %v3257_v63 = vsel %vm3256_vm9, %v4115_v56, %v4116_v41  ;;  %v6191_v25 = vld [vmem:[#allocation13_spill] sm:$0xff]  ;;  %vm6199_vm9 = vcmask 900096  }
 0xc2c   : > { %3240 = vrot.lane.b32.xlu0 %v3235_v36, %s4234_s24  ;;  %v3262_v57 = vmul.f32 %v3257_v63, %v3250_v19 }
 0xc2d   : > { %v2729_v17 = vpop.permute.xlu1 %2728 }
 0xc2e   : > { %v2732_v46 = vsel %vm6180_vm7, %v6179_v42, %v2729_v17  ;;  %v2733_v9 = vsel %vm6181_vm8, %v2729_v17, %v5632_v14  ;;  %v5820_v8 = vpop.permute.xlu0 %2570  ;;  %vm6197_vm7 = vcmask 916480  }
 0xc2f   : > { %2736 = vst [vmem:[#allocation3 + $0xf0] sm:$0xf] %v2732_v46  ;;  %2737 = vst [vmem:[#allocation3 + $0xf8] sm:$0xf] %v2733_v9  ;;  %3120 = vrot.lane.b32.xlu1 %v3116_v47, %s4232_s21  ;;  %v6192_v47 = vld [vmem:[#allocation14_spill] sm:$0xff] }
 0xc30   : > { %3236 = vrot.lane.b32.xlu0 %v3233_v26, %s4234_s24  ;;  %vm6198_vm8 = vmmov %vm6197_vm7 }
 0xc31   : > { %v2750_v53 = vpop.permute.xlu1 %2749 }
 0xc32   : > { %v2753_v50 = vsel %vm6184_vm11, %v6183_v4, %v2750_v53  ;;  %v2754_v14 = vsel %vm6185_vm12, %v2750_v53, %v5637_v18  ;;  %v5829_v45 = vpop.permute.xlu0 %2634  ;;  %v5840_v18 = vld [vmem:[%s5930_s5] sm:$0x77]  ;;  %vm6200_vm11 = vmmov %vm6199_vm9  ;;  %vm6201_vm12 = vcmask 883712  }
 0xc33   : > { %2757 = vst [vmem:[#allocation3 + $0xf0] sm:$0xf0] %v2753_v50  ;;  %2758 = vst [vmem:[#allocation3 + $0xf8] sm:$0xf0] %v2754_v14  ;;  %3238 = vrot.lane.b32.xlu1 %v3234_v24, %s4234_s24  ;;  %v3338_v43 = vcombine.high %v5840_v18, %v5840_v18  ;;  %v6194_v24 = vld [vmem:[#allocation15_spill] sm:$0xff] }
 0xc34   : > { %3271 = vrot.lane.b32.xlu0 %v3263_v13, %s4235_s29 }
 0xc35   : > { %v2779_v61 = vpop.permute.xlu1 %2778  ;;  %3508 = vmatprep.mubr.msk.f32.mxu0 %vm1562_vm15, %v3338_v43  ;;  %vm3155_vm15 = vcmask 244736  }
 0xc36   : > { %v2782_v33 = vsel %vm6187_vm14, %v6186_v55, %v2779_v61  ;;  %v2783_v7 = vsel %vm6188_vm3, %v2779_v61, %v5647_v20  ;;  %v5835_v38 = vpop.permute.xlu0 %2696  ;;  %vm6202_vm14 = vmmov %vm6201_vm12  ;;  %vm2226_vm3 = vcmask 867328  }
 0xc37   : > { %2786 = vst [vmem:[#allocation3 + $0x100] sm:$0xf] %v2782_v33  ;;  %2787 = vst [vmem:[#allocation3 + $0x108] sm:$0xf] %v2783_v7  ;;  %3269 = vrot.lane.b32.xlu1 %v3262_v57, %s4235_s29  ;;  %v3282_v33 = vld [vmem:[#allocation3 + $0x10] sm:$0xff] }
 0xc38   : > { %3334 = vperm.xlu0 %4117, %v3331_v35  }
 0xc39   : > { %v2843_v20 = vpop.permute.xlu1 %2842 }
 0xc3a   : > { %v2847_v3 = vsel %vm2846_vm1, %v6189_v30, %v2843_v20  ;;  %v2848_v49 = vsel %vm2846_vm1, %v2843_v20, %v5655_v39  ;;  %v5849_v59 = vpop.permute.xlu0 %2809  ;;  %v3283_v20 = vld [vmem:[#allocation3 + $0x18] sm:$0xff]  ;;  %vm6203_vm1 = vcmask 777216  }
 0xc3b   : > { %2851 = vst [vmem:[#allocation3 + $0x110] sm:$0xf] %v2847_v3  ;;  %2852 = vst [vmem:[#allocation3 + $0x118] sm:$0xf] %v2848_v49  ;;  %3267 = vrot.lane.b32.xlu1 %v3261_v0, %s4235_s29 }
 0xc3d   : > { %v2906_v40 = vpop.permute.xlu1 %2905 }
 0xc3e   : > { %v2910_v21 = vsel %vm2909_vm5, %v6190_v23, %v2906_v40  ;;  %v2911_v36 = vsel %vm2909_vm5, %v2906_v40, %v5665_v48  ;;  %v5854_v60 = vpop.permute.xlu0 %2873  ;;  %vm6204_vm5 = vmmov %vm6203_vm1 }
 0xc3f   : > { %2914 = vst [vmem:[#allocation3 + $0x120] sm:$0xf] %v2910_v21  ;;  %2915 = vst [vmem:[#allocation3 + $0x128] sm:$0xf] %v2911_v36 }
 0xc41   : > { %v3024_v39 = vpop.permute.xlu1 %3023 }
 0xc42   : > { %v3028_v5 = vsel %vm3027_vm4, %v6191_v25, %v3024_v39  ;;  %v3029_v15 = vsel %vm3027_vm4, %v3024_v39, %v5676_v32  ;;  %v5858_v29 = vpop.permute.xlu0 %2937  ;;  %vm2400_vm4 = vcmask 744448  }
 0xc43   : > { %3032 = vst [vmem:[#allocation3 + $0x140] sm:$0xf] %v3028_v5  ;;  %3033 = vst [vmem:[#allocation3 + $0x148] sm:$0xf] %v3029_v15 }
 0xc45   : > { %v3088_v17 = vpop.permute.xlu1 %3087 }
 0xc46   : > { %v3091_v37 = vsel %vm1166_vm13, %v6192_v47, %v3088_v17  ;;  %v3092_v48 = vsel %vm1166_vm13, %v3088_v17, %v5686_v34  ;;  %v5864_v26 = vpop.permute.xlu0 %2990  ;;  %vm3208_vm13 = vcmask 228352  }
 0xc47   : > { %3095 = vst [vmem:[#allocation3 + $0x150] sm:$0xf] %v3091_v37  ;;  %3096 = vst [vmem:[#allocation3 + $0x158] sm:$0xf] %v3092_v48 }
 0xc49   : > { %v3152_v42 = vpop.permute.xlu1 %3151 }
 0xc4a   : > { %v3156_v46 = vsel %vm3155_vm15, %v5653_v51, %v3152_v42  ;;  %v3157_v32 = vsel %vm3155_vm15, %v3152_v42, %v5695_v16  ;;  %v5868_v9 = vpop.permute.xlu0 %3055  ;;  %vm6205_vm15 = vcmask 654336  }
 0xc4b   : > { %3160 = vst [vmem:[#allocation3 + $0x160] sm:$0xf] %v3156_v46  ;;  %3161 = vst [vmem:[#allocation3 + $0x168] sm:$0xf] %v3157_v32 }
 0xc4d   : > { %v3174_v31 = vpop.permute.xlu1 %3173 }
 0xc4e   : > { %v3178_v41 = vsel %vm3177_vm6, %v6193_v28, %v3174_v31  ;;  %v3179_v34 = vsel %vm3177_vm6, %v3174_v31, %v5705_v22  ;;  %v5872_v56 = vpop.permute.xlu0 %3118  ;;  %vm6206_vm6 = vmmov %vm6205_vm15 }
 0xc4f   : > { %3182 = vst [vmem:[#allocation3 + $0x160] sm:$0xf0] %v3178_v41  ;;  %3183 = vst [vmem:[#allocation3 + $0x168] sm:$0xf0] %v3179_v34 }
 0xc51   : > { %v3205_v53 = vpop.permute.xlu1 %3204 }
 0xc52   : > { %v3209_v51 = vsel %vm3208_vm13, %v6194_v24, %v3205_v53  ;;  %v3210_v16 = vsel %vm3208_vm13, %v3205_v53, %v5716_v27  ;;  %v1836_v13 = vpop.permute.xlu0 %1835  ;;  %vm6207_vm13 = vcmask 637952  }
 0xc53   : > { %3213 = vst [vmem:[#allocation3 + $0x170] sm:$0xf] %v3209_v51  ;;  %3214 = vst [vmem:[#allocation3 + $0x178] sm:$0xf] %v3210_v16 }
 0xc55   : > { %v1972_v4 = vpop.permute.xlu1 %1971 }
 0xc56   : > { %v1974_v50 = vpop.permute.xlu0 %1973 }
 0xc57   : > { %v1978_v14 = vsel %vm1977_vm2, %v1972_v4, %v1974_v50 }
 0xc58   : > { %1982 = vst [vmem:[#allocation3 + $0x20] sm:$0xf0] %v1978_v14 }
 0xc59   : > { %v1834_v19 = vpop.permute.xlu1 %1833 }
 0xc5a   : > { %v1837_v22 = vsel %vm6195_vm10, %v5726_v62, %v1834_v19  ;;  %v1838_v63 = vsel %vm6196_vm0, %v1834_v19, %v1836_v13  ;;  %v2049_v61 = vpop.permute.xlu0 %2048  ;;  %vm6209_vm10 = vcmask 621568  }
 0xc5b   : > { %1841 = vst [vmem:[#allocation3] sm:$0xf0] %v1837_v22  ;;  %1842 = vst [vmem:[#allocation3 + $0x8] sm:$0xf0] %v1838_v63 }
 0xc5c   : > { %vm6210_vm0 = vmmov %vm6209_vm10 }
 0xc5d   : > { %v1976_v57 = vpop.permute.xlu1 %1975 }
 0xc5e   : > { %v1979_v12 = vsel %vm1977_vm2, %v1974_v50, %v1976_v57  ;;  %v2111_v27 = vpop.permute.xlu0 %2110  ;;  %vm6208_vm2 = vmmov %vm6207_vm13 }
 0xc5f   : > { %1983 = vst [vmem:[#allocation3 + $0x28] sm:$0xf0] %v1979_v12  ;;  %v3284_v21 = vld [vmem:[#allocation3 + $0x20] sm:$0xff] }
 0xc61   : > { %v2047_v55 = vpop.permute.xlu1 %2046 }
 0xc62   : > { %v2050_v7 = vsel %vm6197_vm7, %v5737_v11, %v2047_v55  ;;  %v2051_v43 = vsel %vm6198_vm8, %v2047_v55, %v2049_v61  ;;  %v2161_v35 = vpop.permute.xlu0 %2160  ;;  %v3281_v0 = vld [vmem:[#allocation3 + $0x8] sm:$0xff]  ;;  %v3280_v62 = vld [vmem:[#allocation3] sm:$0xff]  ;;  %vm2640_vm7 = vcmask 605184   ;;  %vm6211_vm8 = vcmask 515072  }
 0xc63   : > { %2054 = vst [vmem:[#allocation3 + $0x30] sm:$0xf0] %v2050_v7  ;;  %2055 = vst [vmem:[#allocation3 + $0x38] sm:$0xf0] %v2051_v43  ;;  %v3662_v1 = vpack.c.bf16 %v3283_v20, %v3281_v0  ;;  %v3664_v30 = vpack.c.bf16 %v3282_v33, %v3280_v62  ;;  %v3297_v33 = vld [vmem:[#allocation3 + $0x88] sm:$0xff]  ;;  %v3296_v0 = vld [vmem:[#allocation3 + $0x80] sm:$0xff] }
 0xc65   : > { %3663 = vmatprep.subr.bf16.mxu0 %v3662_v1  ;;  %v2109_v3 = vpop.permute.xlu1 %2108 }
 0xc66   : > { %v2112_v49 = vsel %vm6199_vm9, %v5749_v44, %v2109_v3  ;;  %v2113_v40 = vsel %vm6200_vm11, %v2109_v3, %v2111_v27  ;;  %v2225_v23 = vpop.permute.xlu0 %2224  ;;  %3665 = vmatpush1.bf16.msra.mxu0 %v3664_v30  ;;  %v3285_v5 = vld [vmem:[#allocation3 + $0x28] sm:$0xff]  ;;  %vm6212_vm9 = vmmov %vm6211_vm8  ;;  %vm2815_vm11 = vcmask 482304  }
 0xc67   : > { %2116 = vst [vmem:[#allocation3 + $0x40] sm:$0xf0] %v2112_v49  ;;  %2117 = vst [vmem:[#allocation3 + $0x48] sm:$0xf0] %v2113_v40 }
 0xc69   : > { %v2159_v11 = vpop.permute.xlu1 %2158 }
 0xc6a   : > { %v2162_v36 = vsel %vm6201_vm12, %v5760_v58, %v2159_v11  ;;  %v2163_v39 = vsel %vm6202_vm14, %v2159_v11, %v2161_v35  ;;  %v2287_v25 = vpop.permute.xlu0 %2286  ;;  %v3287_v15 = vld [vmem:[#allocation3 + $0x38] sm:$0xff]  ;;  %v3286_v17 = vld [vmem:[#allocation3 + $0x30] sm:$0xff]  ;;  %vm6213_vm12 = vcmask 392192  }
 0xc6b   : > { %2166 = vst [vmem:[#allocation3 + $0x50] sm:$0xf0] %v2162_v36  ;;  %2167 = vst [vmem:[#allocation3 + $0x58] sm:$0xf0] %v2163_v39  ;;  %v3666_v44 = vpack.c.bf16 %v3287_v15, %v3285_v5  ;;  %v3668_v47 = vpack.c.bf16 %v3286_v17, %v3284_v21 }
 0xc6c   : > { %vm6214_vm14 = vmmov %vm6213_vm12 }
 0xc6d   : > { %3667 = vmatprep.subr.bf16.mxu0 %v3666_v44  ;;  %v2223_v37 = vpop.permute.xlu1 %2222 }
 0xc6e   : > { %v2227_v48 = vsel %vm2226_vm3, %v5772_v54, %v2223_v37  ;;  %v2228_v42 = vsel %vm2226_vm3, %v2223_v37, %v2225_v23  ;;  %v2399_v46 = vpop.permute.xlu0 %2398  ;;  %3669 = vmatpush1.bf16.msra.mxu0 %v3668_v47  ;;  %v3289_v32 = vld [vmem:[#allocation3 + $0x48] sm:$0xff]  ;;  %v3288_v53 = vld [vmem:[#allocation3 + $0x40] sm:$0xff]  ;;  %vm2943_vm3 = vcmask 375808  }
 0xc6f   : > { %2231 = vst [vmem:[#allocation3 + $0x60] sm:$0xf0] %v2227_v48  ;;  %2232 = vst [vmem:[#allocation3 + $0x68] sm:$0xf0] %v2228_v42 }
 0xc71   : > { %v2285_v58 = vpop.permute.xlu1 %2284 }
 0xc72   : > { %v2288_v31 = vsel %vm6203_vm1, %v5782_v2, %v2285_v58  ;;  %v2289_v28 = vsel %vm6204_vm5, %v2285_v58, %v2287_v25  ;;  %v2463_v41 = vpop.permute.xlu0 %2462  ;;  %v3291_v34 = vld [vmem:[#allocation3 + $0x58] sm:$0xff]  ;;  %v3290_v24 = vld [vmem:[#allocation3 + $0x50] sm:$0xff]  ;;  %vm2996_vm1 = vcmask 359424   ;;  %vm3061_vm5 = vcmask 343040  }
 0xc73   : > { %2292 = vst [vmem:[#allocation3 + $0x70] sm:$0xf0] %v2288_v31  ;;  %2293 = vst [vmem:[#allocation3 + $0x78] sm:$0xf0] %v2289_v28  ;;  %v3670_v51 = vpack.c.bf16 %v3291_v34, %v3289_v32  ;;  %v3672_v54 = vpack.c.bf16 %v3290_v24, %v3288_v53  ;;  %v3311_v53 = vld [vmem:[#allocation3 + $0xf8] sm:$0xff] }
 0xc75   : > { %3671 = vmatprep.subr.bf16.mxu0 %v3670_v51  ;;  %v2397_v16 = vpop.permute.xlu1 %2396 }
 0xc76   : > { %v2401_v13 = vsel %vm2400_vm4, %v5793_v6, %v2397_v16  ;;  %v2402_v4 = vsel %vm2400_vm4, %v2397_v16, %v2399_v46  ;;  %v2525_v50 = vpop.permute.xlu0 %2524  ;;  %3673 = vmatpush1.bf16.msra.mxu0 %v3672_v54  ;;  %v3293_v14 = vld [vmem:[#allocation3 + $0x68] sm:$0xff]  ;;  %v3292_v57 = vld [vmem:[#allocation3 + $0x60] sm:$0xff]  ;;  %vm3124_vm4 = vcmask 252928  }
 0xc77   : > { %2405 = vst [vmem:[#allocation3 + $0x90] sm:$0xf0] %v2401_v13  ;;  %2406 = vst [vmem:[#allocation3 + $0x98] sm:$0xf0] %v2402_v4  ;;  %v3310_v13 = vld [vmem:[#allocation3 + $0xf0] sm:$0xff] }
 0xc79   : > { %v2461_v2 = vpop.permute.xlu1 %2460 }
 0xc7a   : > { %v2464_v19 = vsel %vm6205_vm15, %v5802_v10, %v2461_v2  ;;  %v2465_v22 = vsel %vm6206_vm6, %v2461_v2, %v2463_v41  ;;  %v2575_v63 = vpop.permute.xlu0 %2574  ;;  %v3295_v61 = vld [vmem:[#allocation3 + $0x78] sm:$0xff]  ;;  %v3294_v12 = vld [vmem:[#allocation3 + $0x70] sm:$0xff]  ;;  %vm3242_vm15 = vcmask 220160   ;;  %vm3273_vm6 = vcmask 211968  }
 0xc7b   : > { %2468 = vst [vmem:[#allocation3 + $0xa0] sm:$0xf0] %v2464_v19  ;;  %2469 = vst [vmem:[#allocation3 + $0xa8] sm:$0xf0] %v2465_v22  ;;  %v3674_v27 = vpack.c.bf16 %v3295_v61, %v3293_v14  ;;  %v3676_v6 = vpack.c.bf16 %v3294_v12, %v3292_v57 }
 0xc7d   : > { %3675 = vmatprep.subr.bf16.mxu0 %v3674_v27  ;;  %v2523_v55 = vpop.permute.xlu1 %2522 }
 0xc7e   : > { %v2526_v7 = vsel %vm6207_vm13, %v5813_v52, %v2523_v55  ;;  %v2527_v43 = vsel %vm6208_vm2, %v2523_v55, %v2525_v50  ;;  %v2639_v35 = vpop.permute.xlu0 %2638  ;;  %3677 = vmatpush1.bf16.msra.mxu0 %v3676_v6  ;;  %v3299_v10 = vld [vmem:[#allocation3 + $0x98] sm:$0xff]  ;;  %v3298_v20 = vld [vmem:[#allocation3 + $0x90] sm:$0xff]  ;;  %vm6215_vm13 = vcmask 1043456  }
 0xc7f   : > { %2530 = vst [vmem:[#allocation3 + $0xb0] sm:$0xf0] %v2526_v7  ;;  %2531 = vst [vmem:[#allocation3 + $0xb8] sm:$0xf0] %v2527_v43  ;;  %v3678_v62 = vpack.c.bf16 %v3299_v10, %v3297_v33  ;;  %v3680_v1 = vpack.c.bf16 %v3298_v20, %v3296_v0 }
 0xc80   : > { %vm6216_vm2 = vmmov %vm6215_vm13 }
 0xc81   : > { %3679 = vmatprep.subr.bf16.mxu0 %v3678_v62  ;;  %v2573_v30 = vpop.permute.xlu1 %2572 }
 0xc82   : > { %v2576_v3 = vsel %vm6209_vm10, %v5820_v8, %v2573_v30  ;;  %v2577_v49 = vsel %vm6210_vm0, %v2573_v30, %v2575_v63  ;;  %v2701_v40 = vpop.permute.xlu0 %2700  ;;  %3681 = vmatpush1.bf16.msra.mxu0 %v3680_v1  ;;  %v3301_v23 = vld [vmem:[#allocation3 + $0xa8] sm:$0xff]  ;;  %v3300_v25 = vld [vmem:[#allocation3 + $0xa0] sm:$0xff] }
 0xc83   : > { %2580 = vst [vmem:[#allocation3 + $0xc0] sm:$0xf0] %v2576_v3  ;;  %2581 = vst [vmem:[#allocation3 + $0xc8] sm:$0xf0] %v2577_v49 }
 0xc85   : > { %v2637_v52 = vpop.permute.xlu1 %2636 }
 0xc86   : > { %v2641_v11 = vsel %vm2640_vm7, %v5829_v45, %v2637_v52  ;;  %v2642_v21 = vsel %vm2640_vm7, %v2637_v52, %v2639_v35  ;;  %v2814_v36 = vpop.permute.xlu0 %2813  ;;  %v3303_v39 = vld [vmem:[#allocation3 + $0xb8] sm:$0xff]  ;;  %v3302_v5 = vld [vmem:[#allocation3 + $0xb0] sm:$0xff] }
 0xc87   : > { %2645 = vst [vmem:[#allocation3 + $0xd0] sm:$0xf0] %v2641_v11  ;;  %2646 = vst [vmem:[#allocation3 + $0xd8] sm:$0xf0] %v2642_v21  ;;  %v3682_v15 = vpack.c.bf16 %v3303_v39, %v3301_v23  ;;  %v3684_v8 = vpack.c.bf16 %v3302_v5, %v3300_v25 }
 0xc89   : > { %3683 = vmatprep.subr.bf16.mxu0 %v3682_v15  ;;  %v2699_v17 = vpop.permute.xlu1 %2698 }
 0xc8a   : > { %v2702_v44 = vsel %vm6211_vm8, %v5835_v38, %v2699_v17  ;;  %v2703_v47 = vsel %vm6212_vm9, %v2699_v17, %v2701_v40  ;;  %v2878_v37 = vpop.permute.xlu0 %2877  ;;  %3685 = vmatpush1.bf16.msra.mxu0 %v3684_v8  ;;  %v3305_v48 = vld [vmem:[#allocation3 + $0xc8] sm:$0xff]  ;;  %v3304_v31 = vld [vmem:[#allocation3 + $0xc0] sm:$0xff] }
 0xc8b   : > { %2706 = vst [vmem:[#allocation3 + $0xe0] sm:$0xf0] %v2702_v44  ;;  %2707 = vst [vmem:[#allocation3 + $0xe8] sm:$0xf0] %v2703_v47  ;;  %v3325_v47 = vld [vmem:[#allocation3 + $0x168] sm:$0xff] }
 0xc8d   : > { %v2812_v45 = vpop.permute.xlu1 %2811 }
 0xc8e   : > { %v2816_v42 = vsel %vm2815_vm11, %v5849_v59, %v2812_v45  ;;  %v2817_v46 = vsel %vm2815_vm11, %v2812_v45, %v2814_v36  ;;  %v2942_v58 = vpop.permute.xlu0 %2941  ;;  %v3307_v32 = vld [vmem:[#allocation3 + $0xd8] sm:$0xff]  ;;  %v3306_v28 = vld [vmem:[#allocation3 + $0xd0] sm:$0xff] }
 0xc8f   : > { %2820 = vst [vmem:[#allocation3 + $0x100] sm:$0xf0] %v2816_v42  ;;  %2821 = vst [vmem:[#allocation3 + $0x108] sm:$0xf0] %v2817_v46  ;;  %v3686_v41 = vpack.c.bf16 %v3307_v32, %v3305_v48  ;;  %v3688_v38 = vpack.c.bf16 %v3306_v28, %v3304_v31  ;;  %v3324_v48 = vld [vmem:[#allocation3 + $0x160] sm:$0xff] }
 0xc91   : > { %3687 = vmatprep.subr.bf16.mxu0 %v3686_v41  ;;  %v2876_v34 = vpop.permute.xlu1 %2875 }
 0xc92   : > { %v2879_v24 = vsel %vm6213_vm12, %v5854_v60, %v2876_v34  ;;  %v2880_v51 = vsel %vm6214_vm14, %v2876_v34, %v2878_v37  ;;  %v2995_v54 = vpop.permute.xlu0 %2994  ;;  %3689 = vmatpush1.bf16.msra.mxu0 %v3688_v38  ;;  %v3309_v59 = vld [vmem:[#allocation3 + $0xe8] sm:$0xff]  ;;  %v3308_v16 = vld [vmem:[#allocation3 + $0xe0] sm:$0xff] }
 0xc93   : > { %2883 = vst [vmem:[#allocation3 + $0x110] sm:$0xf0] %v2879_v24  ;;  %2884 = vst [vmem:[#allocation3 + $0x118] sm:$0xf0] %v2880_v51  ;;  %v3690_v4 = vpack.c.bf16 %v3311_v53, %v3309_v59  ;;  %v3692_v50 = vpack.c.bf16 %v3310_v13, %v3308_v16 }
 0xc95   : > { %3691 = vmatprep.subr.bf16.mxu0 %v3690_v4  ;;  %v2940_v2 = vpop.permute.xlu1 %2939 }
 0xc96   : > { %v2944_v14 = vsel %vm2943_vm3, %v5858_v29, %v2940_v2  ;;  %v2945_v19 = vsel %vm2943_vm3, %v2940_v2, %v2942_v58  ;;  %v3060_v22 = vpop.permute.xlu0 %3059  ;;  %3693 = vmatpush1.bf16.msra.mxu0 %v3692_v50  ;;  %v3313_v63 = vld [vmem:[#allocation3 + $0x108] sm:$0xff]  ;;  %v3312_v6 = vld [vmem:[#allocation3 + $0x100] sm:$0xff] }
 0xc97   : > { %2948 = vst [vmem:[#allocation3 + $0x120] sm:$0xf0] %v2944_v14  ;;  %2949 = vst [vmem:[#allocation3 + $0x128] sm:$0xf0] %v2945_v19 }
 0xc99   : > { %v2993_v60 = vpop.permute.xlu1 %2992 }
 0xc9a   : > { %v2997_v61 = vsel %vm2996_vm1, %v5864_v26, %v2993_v60  ;;  %v2998_v57 = vsel %vm2996_vm1, %v2993_v60, %v2995_v54  ;;  %v3123_v12 = vpop.permute.xlu0 %3122  ;;  %v3315_v27 = vld [vmem:[#allocation3 + $0x118] sm:$0xff]  ;;  %v3314_v55 = vld [vmem:[#allocation3 + $0x110] sm:$0xff] }
 0xc9b   : > { %3001 = vst [vmem:[#allocation3 + $0x130] sm:$0xf0] %v2997_v61  ;;  %3002 = vst [vmem:[#allocation3 + $0x138] sm:$0xf0] %v2998_v57  ;;  %v3694_v33 = vpack.c.bf16 %v3315_v27, %v3313_v63  ;;  %v3696_v29 = vpack.c.bf16 %v3314_v55, %v3312_v6 }
 0xc9d   : > { %3695 = vmatprep.subr.bf16.mxu0 %v3694_v33  ;;  %v3058_v7 = vpop.permute.xlu1 %3057 }
 0xc9e   : > { %v3062_v43 = vsel %vm3061_vm5, %v5868_v9, %v3058_v7  ;;  %v3063_v35 = vsel %vm3061_vm5, %v3058_v7, %v3060_v22  ;;  %v3241_v10 = vpop.permute.xlu0 %3240  ;;  %3697 = vmatpush1.bf16.msra.mxu0 %v3696_v29  ;;  %v3317_v0 = vld [vmem:[#allocation3 + $0x128] sm:$0xff]  ;;  %v3316_v30 = vld [vmem:[#allocation3 + $0x120] sm:$0xff] }
 0xc9f   : > { %3066 = vst [vmem:[#allocation3 + $0x140] sm:$0xf0] %v3062_v43  ;;  %3067 = vst [vmem:[#allocation3 + $0x148] sm:$0xf0] %v3063_v35 }
 0xca1   : > { %v3121_v26 = vpop.permute.xlu1 %3120 }
 0xca2   : > { %v3125_v20 = vsel %vm3124_vm4, %v5872_v56, %v3121_v26  ;;  %v3126_v62 = vsel %vm3124_vm4, %v3121_v26, %v3123_v12  ;;  %v3319_v1 = vld [vmem:[#allocation3 + $0x138] sm:$0xff]  ;;  %v3318_v3 = vld [vmem:[#allocation3 + $0x130] sm:$0xff]  ;;  %v3237_v49 = vpop.permute.xlu0 %3236 }
 0xca3   : > { %3129 = vst [vmem:[#allocation3 + $0x150] sm:$0xf0] %v3125_v20  ;;  %3130 = vst [vmem:[#allocation3 + $0x158] sm:$0xf0] %v3126_v62  ;;  %v3698_v40 = vpack.c.bf16 %v3319_v1, %v3317_v0  ;;  %v3700_v9 = vpack.c.bf16 %v3318_v3, %v3316_v30 }
 0xca5   : > { %3699 = vmatprep.subr.bf16.mxu0 %v3698_v40  ;;  %v3239_v52 = vpop.permute.xlu1 %3238 }
 0xca6   : > { %v3243_v23 = vsel %vm3242_vm15, %v3237_v49, %v3239_v52  ;;  %v3244_v11 = vsel %vm3242_vm15, %v3239_v52, %v3241_v10  ;;  %3701 = vmatpush1.bf16.msra.mxu0 %v3700_v9  ;;  %v3272_v21 = vpop.permute.xlu0 %3271  ;;  %v3321_v36 = vld [vmem:[#allocation3 + $0x148] sm:$0xff]  ;;  %v3320_v5 = vld [vmem:[#allocation3 + $0x140] sm:$0xff] }
 0xca7   : > { %3247 = vst [vmem:[#allocation3 + $0x170] sm:$0xf0] %v3243_v23  ;;  %3248 = vst [vmem:[#allocation3 + $0x178] sm:$0xf0] %v3244_v11 }
 0xca9   : > { %v3270_v56 = vpop.permute.xlu1 %3269 }
 0xcaa   : > { %v3275_v39 = vsel %vm3273_vm6, %v3270_v56, %v3272_v21  ;;  %v3323_v25 = vld [vmem:[#allocation3 + $0x158] sm:$0xff]  ;;  %v3322_v15 = vld [vmem:[#allocation3 + $0x150] sm:$0xff] }
 0xcab   : > { %3279 = vst [vmem:[#allocation3 + $0x188] sm:$0xf] %v3275_v39  ;;  %v3702_v8 = vpack.c.bf16 %v3323_v25, %v3321_v36  ;;  %v3704_v17 = vpack.c.bf16 %v3322_v15, %v3320_v5 }
 0xcad   : > { %3703 = vmatprep.subr.bf16.mxu0 %v3702_v8  ;;  %v3268_v44 = vpop.permute.xlu1 %3267 }
 0xcae   : > { %v3274_v37 = vsel %vm3273_vm6, %v3268_v44, %v3270_v56  ;;  %3705 = vmatpush1.bf16.msra.mxu0 %v3704_v17  ;;  %v3327_v45 = vld [vmem:[#allocation3 + $0x178] sm:$0xff]  ;;  %v3326_v42 = vld [vmem:[#allocation3 + $0x170] sm:$0xff] }
 0xcaf   : > { %3278 = vst [vmem:[#allocation3 + $0x180] sm:$0xf] %v3274_v37  ;;  %v3706_v46 = vpack.c.bf16 %v3327_v45, %v3325_v47  ;;  %v3708_v58 = vpack.c.bf16 %v3326_v42, %v3324_v48 }
 0xcb1   : > { %3707 = vmatprep.subr.bf16.mxu0 %v3706_v46 }
 0xcb2   : > { %3709 = vmatpush1.bf16.msra.mxu0 %v3708_v58  ;;  %v3329_v32 = vld [vmem:[#allocation3 + $0x188] sm:$0xf] }
 0xcb3   : > { %3506 = vmatprep.subr.msk.mxu0 %vm6215_vm13, %v3329_v32 }
 0xcb6   : > { %v3328_v31 = vld [vmem:[#allocation3 + $0x180] sm:$0xf] }
 0xcb7   : > { %3507 = vmatpush1.msk.msra.mxu0 %vm6216_vm2, %v3328_v31  ;;  %v3335_v28 = vpop.permute.xlu0 %3334 }
 0xcb8   : > { %3412 = vmatmul.mubr.f32.vlgmr.msra.gmra.mrb[4].mxu0 %v5840_v18 }
 0xd8b   : > { %v3413_v41 = vpop.f32.mrb[4].mxu0 }
 0xd8c   : > { %v3414_v38 = vadd.f32 %v3413_v41, %v3335_v28  ;;  %v3415_v34 = vpop.f32.mrb[5].mxu0 }
 0xd8d   : > { %v3416_v53 = vadd.f32 %v3415_v34, %v3335_v28 }
 0xd8e   : > { %4126 = vtanh.f32 %v3414_v38 }
 0xd8f   : > { %4128 = vtanh.f32 %v3416_v53 }
 0xd98   : > { %v4127_v24 = vpop.eup %4126 }
 0xd99   : > { %v4129_v51 = vpop.eup %4128 }
 0xd9a   : > { %v3422_v54 = vcombine.low %v4127_v24, %v4129_v51 }
 0xd9c   : > { %3424 = vst [vmem:[%s329_s23] sm:$0x77] %v3422_v54 }
 0xd9d PF: > { %s19_s30 = sadd.s32 1, %s4136_s30  }
 0xd9e   : > { %p16_p4 = scmp.ge.s32.totalorder %s19_s30, 4  }
 0xda0   :  { %18 = sbr.rel (!%p16_p4) target bundleno = 1 (0x1), region = 86 }

</bundles_post_ra>
